<compile_context>
chip_gen: v5e
topology: v5e:2x2
jax: 0.10.0
libtpu: 0.0.40
codegen_flags: <defaults>
</compile_context>

<pallas_src>
import functools

import jax
import jax.numpy as jnp
from jax import lax
from jax.experimental import pallas as pl
from jax.experimental.pallas import tpu as pltpu


def _portfolio_mog_kernel(x_ref, wg_ref, bg_ref, q_ref, r_ref,
                          wh_ref, bh_ref, out_ref,
                          *, seq_len, batch, feat, hidden,
                          mog_iterations, trade_limit):
    B, F, H = batch, feat, hidden

    # Hoist all weight loads out of the recurrence.
    Wg = wg_ref[...]          # (F+H, 4H)  fused [Wih; Whh], cellgate cols pre-scaled x2
    bg = bg_ref[...]          # (1, 4H)    fused bih + bhh,  cellgate cols pre-scaled x2
    Q = q_ref[...]            # (H, F)
    R = r_ref[...]            # (F, H)

    ht = jnp.zeros((B, H), jnp.float32)
    Ct = jnp.zeros((B, H), jnp.float32)

    # Static unroll over time: seq_len is a Python int, so every slice below is
    # static and the per-step bodies can be software-pipelined by the scheduler.
    for t in range(seq_len):
        xt = x_ref[:, t, :]   # (B, F) — static sublane slice, no wrapper transpose

        # --- mogrification (static unroll; steps are serially dependent) ---
        for i in range(1, mog_iterations + 1):
            if i % 2 == 0:
                ht = 2.0 * jax.nn.sigmoid(
                    jnp.dot(xt, R, preferred_element_type=jnp.float32)) * ht
            else:
                xt = 2.0 * jax.nn.sigmoid(
                    jnp.dot(ht, Q, preferred_element_type=jnp.float32)) * xt

        # --- single fused gate matmul: (B, F+H) @ (F+H, 4H) ---
        zt = jnp.concatenate([xt, ht], axis=1)                      # (B, F+H)
        gates = jnp.dot(zt, Wg, preferred_element_type=jnp.float32) + bg

        # One EUP pass over the full 128-lane gate tensor; tanh(cellgate) is
        # recovered as 2*sigmoid(2*cellgate) - 1 (the x2 lives in Wg/bg).
        s = jax.nn.sigmoid(gates)                                   # (B, 4H)
        it = s[:, 0 * H:1 * H]
        ft = s[:, 1 * H:2 * H]
        ct_cand = 2.0 * s[:, 2 * H:3 * H] - 1.0
        ot = s[:, 3 * H:4 * H]

        Ct = ft * Ct + it * ct_cand
        ht = ot * jnp.tanh(Ct)

    # last_output = hn[-1, :]  → last batch row of the final hidden state
    # (matches the PyTorch module, where hn has shape (batch, hidden)).
    last = ht[B - 1:B, :]                                           # (1, H)

    # --- fused heads: one matmul, one lane-contiguous (1, F) store ---
    head = jnp.dot(last, wh_ref[...],
                   preferred_element_type=jnp.float32) + bh_ref[...]  # (1, F)
    col = lax.broadcasted_iota(jnp.int32, (1, F), 1)
    out_ref[...] = jnp.where(
        col == 0,
        jnp.maximum(head, 0.0),                        # premium: ReLU  (col 0)
        jnp.clip(head, -trade_limit, trade_limit))     # trade: clamp  (cols 1:)


def fuse_params(params):
    """Pre-fuse weights once (outside the per-call hot path)."""
    H = params["Whh"].shape[0]
    Wg = jnp.concatenate([params["Wih"], params["Whh"]], axis=0)    # (F+H, 4H)
    bg = params["bih"] + params["bhh"]                              # (1, 4H)
    # Pre-scale cellgate columns by 2 so tanh(cg) = 2*sigmoid(2*cg) - 1 in-kernel.
    Wg = Wg.at[:, 2 * H:3 * H].multiply(2.0)
    bg = bg.at[:, 2 * H:3 * H].multiply(2.0)
    Wh = jnp.concatenate([params["Wp"], params["Wt"]], axis=1)      # (H, F)
    bh = jnp.concatenate([params["bp"], params["bt"]], axis=1)      # (1, F)
    return {"W_gate": Wg, "b_gate": bg, "Q": params["Q"], "R": params["R"],
            "W_head": Wh, "b_head": bh}


def portfolio_mog_forward(x, fused, *, mog_iterations, trade_limit):
    """x: (batch, seq, feature) float32 — same convention as the PyTorch module."""
    B, S, F = x.shape
    H = fused["Q"].shape[0]

    kernel = functools.partial(
        _portfolio_mog_kernel,
        seq_len=S, batch=B, feat=F, hidden=H,
        mog_iterations=mog_iterations, trade_limit=float(trade_limit))

    vmem = pl.BlockSpec(memory_space=pltpu.MemorySpace.VMEM)
    out = pl.pallas_call(
        kernel,
        out_shape=jax.ShapeDtypeStruct((1, F), jnp.float32),
        in_specs=[vmem] * 7,
        out_specs=vmem,
    )(x.astype(jnp.float32),
      fused["W_gate"], fused["b_gate"], fused["Q"], fused["R"],
      fused["W_head"], fused["b_head"])

    premium = out[0, :1]        # (1,)
    trade = out[0, 1:]          # (F-1,)
    return premium, trade


# ------------------------- pure-JAX reference -------------------------------
def _reference_forward(x, params, *, mog_iterations, trade_limit):
    B, S, F = x.shape
    H = params["Whh"].shape[0]
    ht = jnp.zeros((B, H), jnp.float32)
    Ct = jnp.zeros((B, H), jnp.float32)
    for t in range(S):
        xt = x[:, t, :]
        for i in range(1, mog_iterations + 1):
            if i % 2 == 0:
                ht = 2.0 * jax.nn.sigmoid(xt @ params["R"]) * ht
            else:
                xt = 2.0 * jax.nn.sigmoid(ht @ params["Q"]) * xt
        gates = xt @ params["Wih"] + params["bih"] + ht @ params["Whh"] + params["bhh"]
        ig, fg, cg, og = jnp.split(gates, 4, axis=1)
        Ct = jax.nn.sigmoid(fg) * Ct + jax.nn.sigmoid(ig) * jnp.tanh(cg)
        ht = jax.nn.sigmoid(og) * jnp.tanh(Ct)
    last = ht[-1:, :]
    premium = jnp.maximum(last @ params["Wp"] + params["bp"], 0.0)
    trade = jnp.clip(last @ params["Wt"] + params["bt"], -trade_limit, trade_limit)
    return premium.reshape(1), trade.reshape(F - 1)


# --------------------------- parameter init ---------------------------------
def _xavier(key, shape):
    fan_in, fan_out = shape[0], shape[1]
    bound = (6.0 / (fan_in + fan_out)) ** 0.5
    return jax.random.uniform(key, shape, jnp.float32, -bound, bound)


def init_params(key, input_size, hidden_size):
    ks = jax.random.split(key, 8)
    F, H = input_size, hidden_size
    return {
        # MogLSTM parameters (xavier for matrices, zeros for biases — as in init_weights)
        "Wih": _xavier(ks[0], (F, 4 * H)),
        "Whh": _xavier(ks[1], (H, 4 * H)),
        "bih": jnp.zeros((1, 4 * H), jnp.float32),
        "bhh": jnp.zeros((1, 4 * H), jnp.float32),
        "Q": _xavier(ks[2], (H, F)),
        "R": _xavier(ks[3], (F, H)),
        # Heads: stored pre-transposed as (in, out) so the kernel does last @ W
        "Wp": _xavier(ks[4], (H, 1)),
        "bp": jax.random.uniform(ks[5], (1, 1), jnp.float32, -0.1, 0.1),
        "Wt": _xavier(ks[6], (H, F - 1)),
        "bt": jax.random.uniform(ks[7], (1, F - 1), jnp.float32, -0.1, 0.1),
    }


if __name__ == "__main__":
    batch, seq, input_size, hidden_size = 2, 8, 16, 32
    mog_iterations, trade_limit = 5, 10

    key = jax.random.PRNGKey(0)
    k_x, k_p = jax.random.split(key)
    x = jax.random.normal(k_x, (batch, seq, input_size), jnp.float32)
    params = init_params(k_p, input_size, hidden_size)
    fused = fuse_params(params)

    premium, trade = portfolio_mog_forward(
        x, fused, mog_iterations=mog_iterations, trade_limit=trade_limit)
    jax.block_until_ready((premium, trade))

    premium_ref, trade_ref = _reference_forward(
        x, params, mog_iterations=mog_iterations, trade_limit=trade_limit)
    assert premium.shape == (1,) and trade.shape == (input_size - 1,)
    assert jnp.allclose(premium, premium_ref, rtol=1e-3, atol=1e-3)
    assert jnp.allclose(trade, trade_ref, rtol=1e-3, atol=1e-3)

    print("KERNEL_OK")
</pallas_src>

<mosaic_0001>
module attributes {stable_mosaic.version = 11 : i64} {
  func.func @_portfolio_mog_kernel(%arg0: memref<2x8x16xf32, #tpu.memory_space<vmem>>, %arg1: memref<48x128xf32, #tpu.memory_space<vmem>>, %arg2: memref<1x128xf32, #tpu.memory_space<vmem>>, %arg3: memref<32x16xf32, #tpu.memory_space<vmem>>, %arg4: memref<16x32xf32, #tpu.memory_space<vmem>>, %arg5: memref<32x16xf32, #tpu.memory_space<vmem>>, %arg6: memref<1x16xf32, #tpu.memory_space<vmem>>, %arg7: memref<1x16xf32, #tpu.memory_space<vmem>>) attributes {dimension_semantics = [], scalar_prefetch = 0 : i64, scratch_operands = 0 : i64, tpu.core_type = #tpu.core_type<tc>} {
    %c0 = arith.constant 0 : index
    %c0_0 = arith.constant 0 : index
    %0 = vector.load %arg1[%c0, %c0_0] : memref<48x128xf32, #tpu.memory_space<vmem>>, vector<48x128xf32>
    %c0_1 = arith.constant 0 : index
    %c0_2 = arith.constant 0 : index
    %1 = vector.load %arg2[%c0_1, %c0_2] : memref<1x128xf32, #tpu.memory_space<vmem>>, vector<1x128xf32>
    %c0_3 = arith.constant 0 : index
    %c0_4 = arith.constant 0 : index
    %2 = vector.load %arg3[%c0_3, %c0_4] : memref<32x16xf32, #tpu.memory_space<vmem>>, vector<32x16xf32>
    %c0_5 = arith.constant 0 : index
    %c0_6 = arith.constant 0 : index
    %3 = vector.load %arg4[%c0_5, %c0_6] : memref<16x32xf32, #tpu.memory_space<vmem>>, vector<16x32xf32>
    %cst = arith.constant 0.000000e+00 : f32
    %4 = vector.broadcast %cst : f32 to vector<2x32xf32>
    %cst_7 = arith.constant 0.000000e+00 : f32
    %5 = vector.broadcast %cst_7 : f32 to vector<2x32xf32>
    %c0_8 = arith.constant 0 : index
    %c0_9 = arith.constant 0 : index
    %c0_10 = arith.constant 0 : index
    %6 = vector.load %arg0[%c0_8, %c0_9, %c0_10] : memref<2x8x16xf32, #tpu.memory_space<vmem>>, vector<2x1x16xf32>
    %7 = vector.shape_cast %6 : vector<2x1x16xf32> to vector<2x16xf32>
    %cst_11 = arith.constant dense<0.000000e+00> : vector<2x16xf32>
    %8 = tpu.matmul %4, %2, %cst_11 {dimension_numbers = #tpu.dot_dimension_numbers<[1], [0], [0], [1], [0, 0, 1, 1], [], []>} : vector<2x32xf32>, vector<32x16xf32>, vector<2x16xf32> -> vector<2x16xf32>
    %9 = arith.negf %8 : vector<2x16xf32>
    %10 = math.exp %9 : vector<2x16xf32>
    %cst_12 = arith.constant 1.000000e+00 : f32
    %11 = vector.broadcast %cst_12 : f32 to vector<2x16xf32>
    %12 = arith.addf %11, %10 : vector<2x16xf32>
    %13 = arith.divf %11, %12 : vector<2x16xf32>
    %cst_13 = arith.constant 2.000000e+00 : f32
    %14 = vector.broadcast %cst_13 : f32 to vector<2x16xf32>
    %15 = arith.mulf %14, %13 : vector<2x16xf32>
    %16 = arith.mulf %15, %7 : vector<2x16xf32>
    %cst_14 = arith.constant dense<0.000000e+00> : vector<2x32xf32>
    %17 = tpu.matmul %16, %3, %cst_14 {dimension_numbers = #tpu.dot_dimension_numbers<[1], [0], [0], [1], [0, 0, 1, 1], [], []>} : vector<2x16xf32>, vector<16x32xf32>, vector<2x32xf32> -> vector<2x32xf32>
    %18 = arith.negf %17 : vector<2x32xf32>
    %19 = math.exp %18 : vector<2x32xf32>
    %cst_15 = arith.constant 1.000000e+00 : f32
    %20 = vector.broadcast %cst_15 : f32 to vector<2x32xf32>
    %21 = arith.addf %20, %19 : vector<2x32xf32>
    %22 = arith.divf %20, %21 : vector<2x32xf32>
    %cst_16 = arith.constant 2.000000e+00 : f32
    %23 = vector.broadcast %cst_16 : f32 to vector<2x32xf32>
    %24 = arith.mulf %23, %22 : vector<2x32xf32>
    %25 = arith.mulf %24, %4 : vector<2x32xf32>
    %cst_17 = arith.constant dense<0.000000e+00> : vector<2x16xf32>
    %26 = tpu.matmul %25, %2, %cst_17 {dimension_numbers = #tpu.dot_dimension_numbers<[1], [0], [0], [1], [0, 0, 1, 1], [], []>} : vector<2x32xf32>, vector<32x16xf32>, vector<2x16xf32> -> vector<2x16xf32>
    %27 = arith.negf %26 : vector<2x16xf32>
    %28 = math.exp %27 : vector<2x16xf32>
    %cst_18 = arith.constant 1.000000e+00 : f32
    %29 = vector.broadcast %cst_18 : f32 to vector<2x16xf32>
    %30 = arith.addf %29, %28 : vector<2x16xf32>
    %31 = arith.divf %29, %30 : vector<2x16xf32>
    %cst_19 = arith.constant 2.000000e+00 : f32
    %32 = vector.broadcast %cst_19 : f32 to vector<2x16xf32>
    %33 = arith.mulf %32, %31 : vector<2x16xf32>
    %34 = arith.mulf %33, %16 : vector<2x16xf32>
    %cst_20 = arith.constant dense<0.000000e+00> : vector<2x32xf32>
    %35 = tpu.matmul %34, %3, %cst_20 {dimension_numbers = #tpu.dot_dimension_numbers<[1], [0], [0], [1], [0, 0, 1, 1], [], []>} : vector<2x16xf32>, vector<16x32xf32>, vector<2x32xf32> -> vector<2x32xf32>
    %36 = arith.negf %35 : vector<2x32xf32>
    %37 = math.exp %36 : vector<2x32xf32>
    %cst_21 = arith.constant 1.000000e+00 : f32
    %38 = vector.broadcast %cst_21 : f32 to vector<2x32xf32>
    %39 = arith.addf %38, %37 : vector<2x32xf32>
    %40 = arith.divf %38, %39 : vector<2x32xf32>
    %cst_22 = arith.constant 2.000000e+00 : f32
    %41 = vector.broadcast %cst_22 : f32 to vector<2x32xf32>
    %42 = arith.mulf %41, %40 : vector<2x32xf32>
    %43 = arith.mulf %42, %25 : vector<2x32xf32>
    %cst_23 = arith.constant dense<0.000000e+00> : vector<2x16xf32>
    %44 = tpu.matmul %43, %2, %cst_23 {dimension_numbers = #tpu.dot_dimension_numbers<[1], [0], [0], [1], [0, 0, 1, 1], [], []>} : vector<2x32xf32>, vector<32x16xf32>, vector<2x16xf32> -> vector<2x16xf32>
    %45 = arith.negf %44 : vector<2x16xf32>
    %46 = math.exp %45 : vector<2x16xf32>
    %cst_24 = arith.constant 1.000000e+00 : f32
    %47 = vector.broadcast %cst_24 : f32 to vector<2x16xf32>
    %48 = arith.addf %47, %46 : vector<2x16xf32>
    %49 = arith.divf %47, %48 : vector<2x16xf32>
    %cst_25 = arith.constant 2.000000e+00 : f32
    %50 = vector.broadcast %cst_25 : f32 to vector<2x16xf32>
    %51 = arith.mulf %50, %49 : vector<2x16xf32>
    %52 = arith.mulf %51, %34 : vector<2x16xf32>
    %53 = tpu.concatenate %52, %43 in 1 : vector<2x16xf32>, vector<2x32xf32> -> vector<2x48xf32>
    %cst_26 = arith.constant dense<0.000000e+00> : vector<2x128xf32>
    %54 = tpu.matmul %53, %0, %cst_26 {dimension_numbers = #tpu.dot_dimension_numbers<[1], [0], [0], [1], [0, 0, 1, 1], [], []>} : vector<2x48xf32>, vector<48x128xf32>, vector<2x128xf32> -> vector<2x128xf32>
    %55 = vector.broadcast %1 : vector<1x128xf32> to vector<2x128xf32>
    %56 = arith.addf %54, %55 : vector<2x128xf32>
    %57 = arith.negf %56 : vector<2x128xf32>
    %58 = math.exp %57 : vector<2x128xf32>
    %cst_27 = arith.constant 1.000000e+00 : f32
    %59 = vector.broadcast %cst_27 : f32 to vector<2x128xf32>
    %60 = arith.addf %59, %58 : vector<2x128xf32>
    %61 = arith.divf %59, %60 : vector<2x128xf32>
    %62 = vector.extract_strided_slice %61 {offsets = [0, 0], sizes = [2, 32], strides = [1, 1]} : vector<2x128xf32> to vector<2x32xf32>
    %63 = vector.extract_strided_slice %61 {offsets = [0, 32], sizes = [2, 32], strides = [1, 1]} : vector<2x128xf32> to vector<2x32xf32>
    %64 = vector.extract_strided_slice %61 {offsets = [0, 64], sizes = [2, 32], strides = [1, 1]} : vector<2x128xf32> to vector<2x32xf32>
    %cst_28 = arith.constant 2.000000e+00 : f32
    %65 = vector.broadcast %cst_28 : f32 to vector<2x32xf32>
    %66 = arith.mulf %65, %64 : vector<2x32xf32>
    %cst_29 = arith.constant 1.000000e+00 : f32
    %67 = vector.broadcast %cst_29 : f32 to vector<2x32xf32>
    %68 = arith.subf %66, %67 : vector<2x32xf32>
    %69 = vector.extract_strided_slice %61 {offsets = [0, 96], sizes = [2, 32], strides = [1, 1]} : vector<2x128xf32> to vector<2x32xf32>
    %70 = arith.mulf %63, %5 : vector<2x32xf32>
    %71 = arith.mulf %62, %68 : vector<2x32xf32>
    %72 = arith.addf %70, %71 : vector<2x32xf32>
    %73 = math.tanh %72 : vector<2x32xf32>
    %74 = arith.mulf %69, %73 : vector<2x32xf32>
    %c0_30 = arith.constant 0 : index
    %c1 = arith.constant 1 : index
    %c0_31 = arith.constant 0 : index
    %75 = vector.load %arg0[%c0_30, %c1, %c0_31] : memref<2x8x16xf32, #tpu.memory_space<vmem>>, vector<2x1x16xf32>
    %76 = vector.shape_cast %75 : vector<2x1x16xf32> to vector<2x16xf32>
    %cst_32 = arith.constant dense<0.000000e+00> : vector<2x16xf32>
    %77 = tpu.matmul %74, %2, %cst_32 {dimension_numbers = #tpu.dot_dimension_numbers<[1], [0], [0], [1], [0, 0, 1, 1], [], []>} : vector<2x32xf32>, vector<32x16xf32>, vector<2x16xf32> -> vector<2x16xf32>
    %78 = arith.negf %77 : vector<2x16xf32>
    %79 = math.exp %78 : vector<2x16xf32>
    %cst_33 = arith.constant 1.000000e+00 : f32
    %80 = vector.broadcast %cst_33 : f32 to vector<2x16xf32>
    %81 = arith.addf %80, %79 : vector<2x16xf32>
    %82 = arith.divf %80, %81 : vector<2x16xf32>
    %cst_34 = arith.constant 2.000000e+00 : f32
    %83 = vector.broadcast %cst_34 : f32 to vector<2x16xf32>
    %84 = arith.mulf %83, %82 : vector<2x16xf32>
    %85 = arith.mulf %84, %76 : vector<2x16xf32>
    %cst_35 = arith.constant dense<0.000000e+00> : vector<2x32xf32>
    %86 = tpu.matmul %85, %3, %cst_35 {dimension_numbers = #tpu.dot_dimension_numbers<[1], [0], [0], [1], [0, 0, 1, 1], [], []>} : vector<2x16xf32>, vector<16x32xf32>, vector<2x32xf32> -> vector<2x32xf32>
    %87 = arith.negf %86 : vector<2x32xf32>
    %88 = math.exp %87 : vector<2x32xf32>
    %cst_36 = arith.constant 1.000000e+00 : f32
    %89 = vector.broadcast %cst_36 : f32 to vector<2x32xf32>
    %90 = arith.addf %89, %88 : vector<2x32xf32>
    %91 = arith.divf %89, %90 : vector<2x32xf32>
    %cst_37 = arith.constant 2.000000e+00 : f32
    %92 = vector.broadcast %cst_37 : f32 to vector<2x32xf32>
    %93 = arith.mulf %92, %91 : vector<2x32xf32>
    %94 = arith.mulf %93, %74 : vector<2x32xf32>
    %cst_38 = arith.constant dense<0.000000e+00> : vector<2x16xf32>
    %95 = tpu.matmul %94, %2, %cst_38 {dimension_numbers = #tpu.dot_dimension_numbers<[1], [0], [0], [1], [0, 0, 1, 1], [], []>} : vector<2x32xf32>, vector<32x16xf32>, vector<2x16xf32> -> vector<2x16xf32>
    %96 = arith.negf %95 : vector<2x16xf32>
    %97 = math.exp %96 : vector<2x16xf32>
    %cst_39 = arith.constant 1.000000e+00 : f32
    %98 = vector.broadcast %cst_39 : f32 to vector<2x16xf32>
    %99 = arith.addf %98, %97 : vector<2x16xf32>
    %100 = arith.divf %98, %99 : vector<2x16xf32>
    %cst_40 = arith.constant 2.000000e+00 : f32
    %101 = vector.broadcast %cst_40 : f32 to vector<2x16xf32>
    %102 = arith.mulf %101, %100 : vector<2x16xf32>
    %103 = arith.mulf %102, %85 : vector<2x16xf32>
    %cst_41 = arith.constant dense<0.000000e+00> : vector<2x32xf32>
    %104 = tpu.matmul %103, %3, %cst_41 {dimension_numbers = #tpu.dot_dimension_numbers<[1], [0], [0], [1], [0, 0, 1, 1], [], []>} : vector<2x16xf32>, vector<16x32xf32>, vector<2x32xf32> -> vector<2x32xf32>
    %105 = arith.negf %104 : vector<2x32xf32>
    %106 = math.exp %105 : vector<2x32xf32>
    %cst_42 = arith.constant 1.000000e+00 : f32
    %107 = vector.broadcast %cst_42 : f32 to vector<2x32xf32>
    %108 = arith.addf %107, %106 : vector<2x32xf32>
    %109 = arith.divf %107, %108 : vector<2x32xf32>
    %cst_43 = arith.constant 2.000000e+00 : f32
    %110 = vector.broadcast %cst_43 : f32 to vector<2x32xf32>
    %111 = arith.mulf %110, %109 : vector<2x32xf32>
    %112 = arith.mulf %111, %94 : vector<2x32xf32>
    %cst_44 = arith.constant dense<0.000000e+00> : vector<2x16xf32>
    %113 = tpu.matmul %112, %2, %cst_44 {dimension_numbers = #tpu.dot_dimension_numbers<[1], [0], [0], [1], [0, 0, 1, 1], [], []>} : vector<2x32xf32>, vector<32x16xf32>, vector<2x16xf32> -> vector<2x16xf32>
    %114 = arith.negf %113 : vector<2x16xf32>
    %115 = math.exp %114 : vector<2x16xf32>
    %cst_45 = arith.constant 1.000000e+00 : f32
    %116 = vector.broadcast %cst_45 : f32 to vector<2x16xf32>
    %117 = arith.addf %116, %115 : vector<2x16xf32>
    %118 = arith.divf %116, %117 : vector<2x16xf32>
    %cst_46 = arith.constant 2.000000e+00 : f32
    %119 = vector.broadcast %cst_46 : f32 to vector<2x16xf32>
    %120 = arith.mulf %119, %118 : vector<2x16xf32>
    %121 = arith.mulf %120, %103 : vector<2x16xf32>
    %122 = tpu.concatenate %121, %112 in 1 : vector<2x16xf32>, vector<2x32xf32> -> vector<2x48xf32>
    %cst_47 = arith.constant dense<0.000000e+00> : vector<2x128xf32>
    %123 = tpu.matmul %122, %0, %cst_47 {dimension_numbers = #tpu.dot_dimension_numbers<[1], [0], [0], [1], [0, 0, 1, 1], [], []>} : vector<2x48xf32>, vector<48x128xf32>, vector<2x128xf32> -> vector<2x128xf32>
    %124 = vector.broadcast %1 : vector<1x128xf32> to vector<2x128xf32>
    %125 = arith.addf %123, %124 : vector<2x128xf32>
    %126 = arith.negf %125 : vector<2x128xf32>
    %127 = math.exp %126 : vector<2x128xf32>
    %cst_48 = arith.constant 1.000000e+00 : f32
    %128 = vector.broadcast %cst_48 : f32 to vector<2x128xf32>
    %129 = arith.addf %128, %127 : vector<2x128xf32>
    %130 = arith.divf %128, %129 : vector<2x128xf32>
    %131 = vector.extract_strided_slice %130 {offsets = [0, 0], sizes = [2, 32], strides = [1, 1]} : vector<2x128xf32> to vector<2x32xf32>
    %132 = vector.extract_strided_slice %130 {offsets = [0, 32], sizes = [2, 32], strides = [1, 1]} : vector<2x128xf32> to vector<2x32xf32>
    %133 = vector.extract_strided_slice %130 {offsets = [0, 64], sizes = [2, 32], strides = [1, 1]} : vector<2x128xf32> to vector<2x32xf32>
    %cst_49 = arith.constant 2.000000e+00 : f32
    %134 = vector.broadcast %cst_49 : f32 to vector<2x32xf32>
    %135 = arith.mulf %134, %133 : vector<2x32xf32>
    %cst_50 = arith.constant 1.000000e+00 : f32
    %136 = vector.broadcast %cst_50 : f32 to vector<2x32xf32>
    %137 = arith.subf %135, %136 : vector<2x32xf32>
    %138 = vector.extract_strided_slice %130 {offsets = [0, 96], sizes = [2, 32], strides = [1, 1]} : vector<2x128xf32> to vector<2x32xf32>
    %139 = arith.mulf %132, %72 : vector<2x32xf32>
    %140 = arith.mulf %131, %137 : vector<2x32xf32>
    %141 = arith.addf %139, %140 : vector<2x32xf32>
    %142 = math.tanh %141 : vector<2x32xf32>
    %143 = arith.mulf %138, %142 : vector<2x32xf32>
    %c0_51 = arith.constant 0 : index
    %c2 = arith.constant 2 : index
    %c0_52 = arith.constant 0 : index
    %144 = vector.load %arg0[%c0_51, %c2, %c0_52] : memref<2x8x16xf32, #tpu.memory_space<vmem>>, vector<2x1x16xf32>
    %145 = vector.shape_cast %144 : vector<2x1x16xf32> to vector<2x16xf32>
    %cst_53 = arith.constant dense<0.000000e+00> : vector<2x16xf32>
    %146 = tpu.matmul %143, %2, %cst_53 {dimension_numbers = #tpu.dot_dimension_numbers<[1], [0], [0], [1], [0, 0, 1, 1], [], []>} : vector<2x32xf32>, vector<32x16xf32>, vector<2x16xf32> -> vector<2x16xf32>
    %147 = arith.negf %146 : vector<2x16xf32>
    %148 = math.exp %147 : vector<2x16xf32>
    %cst_54 = arith.constant 1.000000e+00 : f32
    %149 = vector.broadcast %cst_54 : f32 to vector<2x16xf32>
    %150 = arith.addf %149, %148 : vector<2x16xf32>
    %151 = arith.divf %149, %150 : vector<2x16xf32>
    %cst_55 = arith.constant 2.000000e+00 : f32
    %152 = vector.broadcast %cst_55 : f32 to vector<2x16xf32>
    %153 = arith.mulf %152, %151 : vector<2x16xf32>
    %154 = arith.mulf %153, %145 : vector<2x16xf32>
    %cst_56 = arith.constant dense<0.000000e+00> : vector<2x32xf32>
    %155 = tpu.matmul %154, %3, %cst_56 {dimension_numbers = #tpu.dot_dimension_numbers<[1], [0], [0], [1], [0, 0, 1, 1], [], []>} : vector<2x16xf32>, vector<16x32xf32>, vector<2x32xf32> -> vector<2x32xf32>
    %156 = arith.negf %155 : vector<2x32xf32>
    %157 = math.exp %156 : vector<2x32xf32>
    %cst_57 = arith.constant 1.000000e+00 : f32
    %158 = vector.broadcast %cst_57 : f32 to vector<2x32xf32>
    %159 = arith.addf %158, %157 : vector<2x32xf32>
    %160 = arith.divf %158, %159 : vector<2x32xf32>
    %cst_58 = arith.constant 2.000000e+00 : f32
    %161 = vector.broadcast %cst_58 : f32 to vector<2x32xf32>
    %162 = arith.mulf %161, %160 : vector<2x32xf32>
    %163 = arith.mulf %162, %143 : vector<2x32xf32>
    %cst_59 = arith.constant dense<0.000000e+00> : vector<2x16xf32>
    %164 = tpu.matmul %163, %2, %cst_59 {dimension_numbers = #tpu.dot_dimension_numbers<[1], [0], [0], [1], [0, 0, 1, 1], [], []>} : vector<2x32xf32>, vector<32x16xf32>, vector<2x16xf32> -> vector<2x16xf32>
    %165 = arith.negf %164 : vector<2x16xf32>
    %166 = math.exp %165 : vector<2x16xf32>
    %cst_60 = arith.constant 1.000000e+00 : f32
    %167 = vector.broadcast %cst_60 : f32 to vector<2x16xf32>
    %168 = arith.addf %167, %166 : vector<2x16xf32>
    %169 = arith.divf %167, %168 : vector<2x16xf32>
    %cst_61 = arith.constant 2.000000e+00 : f32
    %170 = vector.broadcast %cst_61 : f32 to vector<2x16xf32>
    %171 = arith.mulf %170, %169 : vector<2x16xf32>
    %172 = arith.mulf %171, %154 : vector<2x16xf32>
    %cst_62 = arith.constant dense<0.000000e+00> : vector<2x32xf32>
    %173 = tpu.matmul %172, %3, %cst_62 {dimension_numbers = #tpu.dot_dimension_numbers<[1], [0], [0], [1], [0, 0, 1, 1], [], []>} : vector<2x16xf32>, vector<16x32xf32>, vector<2x32xf32> -> vector<2x32xf32>
    %174 = arith.negf %173 : vector<2x32xf32>
    %175 = math.exp %174 : vector<2x32xf32>
    %cst_63 = arith.constant 1.000000e+00 : f32
    %176 = vector.broadcast %cst_63 : f32 to vector<2x32xf32>
    %177 = arith.addf %176, %175 : vector<2x32xf32>
    %178 = arith.divf %176, %177 : vector<2x32xf32>
    %cst_64 = arith.constant 2.000000e+00 : f32
    %179 = vector.broadcast %cst_64 : f32 to vector<2x32xf32>
    %180 = arith.mulf %179, %178 : vector<2x32xf32>
    %181 = arith.mulf %180, %163 : vector<2x32xf32>
    %cst_65 = arith.constant dense<0.000000e+00> : vector<2x16xf32>
    %182 = tpu.matmul %181, %2, %cst_65 {dimension_numbers = #tpu.dot_dimension_numbers<[1], [0], [0], [1], [0, 0, 1, 1], [], []>} : vector<2x32xf32>, vector<32x16xf32>, vector<2x16xf32> -> vector<2x16xf32>
    %183 = arith.negf %182 : vector<2x16xf32>
    %184 = math.exp %183 : vector<2x16xf32>
    %cst_66 = arith.constant 1.000000e+00 : f32
    %185 = vector.broadcast %cst_66 : f32 to vector<2x16xf32>
    %186 = arith.addf %185, %184 : vector<2x16xf32>
    %187 = arith.divf %185, %186 : vector<2x16xf32>
    %cst_67 = arith.constant 2.000000e+00 : f32
    %188 = vector.broadcast %cst_67 : f32 to vector<2x16xf32>
    %189 = arith.mulf %188, %187 : vector<2x16xf32>
    %190 = arith.mulf %189, %172 : vector<2x16xf32>
    %191 = tpu.concatenate %190, %181 in 1 : vector<2x16xf32>, vector<2x32xf32> -> vector<2x48xf32>
    %cst_68 = arith.constant dense<0.000000e+00> : vector<2x128xf32>
    %192 = tpu.matmul %191, %0, %cst_68 {dimension_numbers = #tpu.dot_dimension_numbers<[1], [0], [0], [1], [0, 0, 1, 1], [], []>} : vector<2x48xf32>, vector<48x128xf32>, vector<2x128xf32> -> vector<2x128xf32>
    %193 = vector.broadcast %1 : vector<1x128xf32> to vector<2x128xf32>
    %194 = arith.addf %192, %193 : vector<2x128xf32>
    %195 = arith.negf %194 : vector<2x128xf32>
    %196 = math.exp %195 : vector<2x128xf32>
    %cst_69 = arith.constant 1.000000e+00 : f32
    %197 = vector.broadcast %cst_69 : f32 to vector<2x128xf32>
    %198 = arith.addf %197, %196 : vector<2x128xf32>
    %199 = arith.divf %197, %198 : vector<2x128xf32>
    %200 = vector.extract_strided_slice %199 {offsets = [0, 0], sizes = [2, 32], strides = [1, 1]} : vector<2x128xf32> to vector<2x32xf32>
    %201 = vector.extract_strided_slice %199 {offsets = [0, 32], sizes = [2, 32], strides = [1, 1]} : vector<2x128xf32> to vector<2x32xf32>
    %202 = vector.extract_strided_slice %199 {offsets = [0, 64], sizes = [2, 32], strides = [1, 1]} : vector<2x128xf32> to vector<2x32xf32>
    %cst_70 = arith.constant 2.000000e+00 : f32
    %203 = vector.broadcast %cst_70 : f32 to vector<2x32xf32>
    %204 = arith.mulf %203, %202 : vector<2x32xf32>
    %cst_71 = arith.constant 1.000000e+00 : f32
    %205 = vector.broadcast %cst_71 : f32 to vector<2x32xf32>
    %206 = arith.subf %204, %205 : vector<2x32xf32>
    %207 = vector.extract_strided_slice %199 {offsets = [0, 96], sizes = [2, 32], strides = [1, 1]} : vector<2x128xf32> to vector<2x32xf32>
    %208 = arith.mulf %201, %141 : vector<2x32xf32>
    %209 = arith.mulf %200, %206 : vector<2x32xf32>
    %210 = arith.addf %208, %209 : vector<2x32xf32>
    %211 = math.tanh %210 : vector<2x32xf32>
    %212 = arith.mulf %207, %211 : vector<2x32xf32>
    %c0_72 = arith.constant 0 : index
    %c3 = arith.constant 3 : index
    %c0_73 = arith.constant 0 : index
    %213 = vector.load %arg0[%c0_72, %c3, %c0_73] : memref<2x8x16xf32, #tpu.memory_space<vmem>>, vector<2x1x16xf32>
    %214 = vector.shape_cast %213 : vector<2x1x16xf32> to vector<2x16xf32>
    %cst_74 = arith.constant dense<0.000000e+00> : vector<2x16xf32>
    %215 = tpu.matmul %212, %2, %cst_74 {dimension_numbers = #tpu.dot_dimension_numbers<[1], [0], [0], [1], [0, 0, 1, 1], [], []>} : vector<2x32xf32>, vector<32x16xf32>, vector<2x16xf32> -> vector<2x16xf32>
    %216 = arith.negf %215 : vector<2x16xf32>
    %217 = math.exp %216 : vector<2x16xf32>
    %cst_75 = arith.constant 1.000000e+00 : f32
    %218 = vector.broadcast %cst_75 : f32 to vector<2x16xf32>
    %219 = arith.addf %218, %217 : vector<2x16xf32>
    %220 = arith.divf %218, %219 : vector<2x16xf32>
    %cst_76 = arith.constant 2.000000e+00 : f32
    %221 = vector.broadcast %cst_76 : f32 to vector<2x16xf32>
    %222 = arith.mulf %221, %220 : vector<2x16xf32>
    %223 = arith.mulf %222, %214 : vector<2x16xf32>
    %cst_77 = arith.constant dense<0.000000e+00> : vector<2x32xf32>
    %224 = tpu.matmul %223, %3, %cst_77 {dimension_numbers = #tpu.dot_dimension_numbers<[1], [0], [0], [1], [0, 0, 1, 1], [], []>} : vector<2x16xf32>, vector<16x32xf32>, vector<2x32xf32> -> vector<2x32xf32>
    %225 = arith.negf %224 : vector<2x32xf32>
    %226 = math.exp %225 : vector<2x32xf32>
    %cst_78 = arith.constant 1.000000e+00 : f32
    %227 = vector.broadcast %cst_78 : f32 to vector<2x32xf32>
    %228 = arith.addf %227, %226 : vector<2x32xf32>
    %229 = arith.divf %227, %228 : vector<2x32xf32>
    %cst_79 = arith.constant 2.000000e+00 : f32
    %230 = vector.broadcast %cst_79 : f32 to vector<2x32xf32>
    %231 = arith.mulf %230, %229 : vector<2x32xf32>
    %232 = arith.mulf %231, %212 : vector<2x32xf32>
    %cst_80 = arith.constant dense<0.000000e+00> : vector<2x16xf32>
    %233 = tpu.matmul %232, %2, %cst_80 {dimension_numbers = #tpu.dot_dimension_numbers<[1], [0], [0], [1], [0, 0, 1, 1], [], []>} : vector<2x32xf32>, vector<32x16xf32>, vector<2x16xf32> -> vector<2x16xf32>
    %234 = arith.negf %233 : vector<2x16xf32>
    %235 = math.exp %234 : vector<2x16xf32>
    %cst_81 = arith.constant 1.000000e+00 : f32
    %236 = vector.broadcast %cst_81 : f32 to vector<2x16xf32>
    %237 = arith.addf %236, %235 : vector<2x16xf32>
    %238 = arith.divf %236, %237 : vector<2x16xf32>
    %cst_82 = arith.constant 2.000000e+00 : f32
    %239 = vector.broadcast %cst_82 : f32 to vector<2x16xf32>
    %240 = arith.mulf %239, %238 : vector<2x16xf32>
    %241 = arith.mulf %240, %223 : vector<2x16xf32>
    %cst_83 = arith.constant dense<0.000000e+00> : vector<2x32xf32>
    %242 = tpu.matmul %241, %3, %cst_83 {dimension_numbers = #tpu.dot_dimension_numbers<[1], [0], [0], [1], [0, 0, 1, 1], [], []>} : vector<2x16xf32>, vector<16x32xf32>, vector<2x32xf32> -> vector<2x32xf32>
    %243 = arith.negf %242 : vector<2x32xf32>
    %244 = math.exp %243 : vector<2x32xf32>
    %cst_84 = arith.constant 1.000000e+00 : f32
    %245 = vector.broadcast %cst_84 : f32 to vector<2x32xf32>
    %246 = arith.addf %245, %244 : vector<2x32xf32>
    %247 = arith.divf %245, %246 : vector<2x32xf32>
    %cst_85 = arith.constant 2.000000e+00 : f32
    %248 = vector.broadcast %cst_85 : f32 to vector<2x32xf32>
    %249 = arith.mulf %248, %247 : vector<2x32xf32>
    %250 = arith.mulf %249, %232 : vector<2x32xf32>
    %cst_86 = arith.constant dense<0.000000e+00> : vector<2x16xf32>
    %251 = tpu.matmul %250, %2, %cst_86 {dimension_numbers = #tpu.dot_dimension_numbers<[1], [0], [0], [1], [0, 0, 1, 1], [], []>} : vector<2x32xf32>, vector<32x16xf32>, vector<2x16xf32> -> vector<2x16xf32>
    %252 = arith.negf %251 : vector<2x16xf32>
    %253 = math.exp %252 : vector<2x16xf32>
    %cst_87 = arith.constant 1.000000e+00 : f32
    %254 = vector.broadcast %cst_87 : f32 to vector<2x16xf32>
    %255 = arith.addf %254, %253 : vector<2x16xf32>
    %256 = arith.divf %254, %255 : vector<2x16xf32>
    %cst_88 = arith.constant 2.000000e+00 : f32
    %257 = vector.broadcast %cst_88 : f32 to vector<2x16xf32>
    %258 = arith.mulf %257, %256 : vector<2x16xf32>
    %259 = arith.mulf %258, %241 : vector<2x16xf32>
    %260 = tpu.concatenate %259, %250 in 1 : vector<2x16xf32>, vector<2x32xf32> -> vector<2x48xf32>
    %cst_89 = arith.constant dense<0.000000e+00> : vector<2x128xf32>
    %261 = tpu.matmul %260, %0, %cst_89 {dimension_numbers = #tpu.dot_dimension_numbers<[1], [0], [0], [1], [0, 0, 1, 1], [], []>} : vector<2x48xf32>, vector<48x128xf32>, vector<2x128xf32> -> vector<2x128xf32>
    %262 = vector.broadcast %1 : vector<1x128xf32> to vector<2x128xf32>
    %263 = arith.addf %261, %262 : vector<2x128xf32>
    %264 = arith.negf %263 : vector<2x128xf32>
    %265 = math.exp %264 : vector<2x128xf32>
    %cst_90 = arith.constant 1.000000e+00 : f32
    %266 = vector.broadcast %cst_90 : f32 to vector<2x128xf32>
    %267 = arith.addf %266, %265 : vector<2x128xf32>
    %268 = arith.divf %266, %267 : vector<2x128xf32>
    %269 = vector.extract_strided_slice %268 {offsets = [0, 0], sizes = [2, 32], strides = [1, 1]} : vector<2x128xf32> to vector<2x32xf32>
    %270 = vector.extract_strided_slice %268 {offsets = [0, 32], sizes = [2, 32], strides = [1, 1]} : vector<2x128xf32> to vector<2x32xf32>
    %271 = vector.extract_strided_slice %268 {offsets = [0, 64], sizes = [2, 32], strides = [1, 1]} : vector<2x128xf32> to vector<2x32xf32>
    %cst_91 = arith.constant 2.000000e+00 : f32
    %272 = vector.broadcast %cst_91 : f32 to vector<2x32xf32>
    %273 = arith.mulf %272, %271 : vector<2x32xf32>
    %cst_92 = arith.constant 1.000000e+00 : f32
    %274 = vector.broadcast %cst_92 : f32 to vector<2x32xf32>
    %275 = arith.subf %273, %274 : vector<2x32xf32>
    %276 = vector.extract_strided_slice %268 {offsets = [0, 96], sizes = [2, 32], strides = [1, 1]} : vector<2x128xf32> to vector<2x32xf32>
    %277 = arith.mulf %270, %210 : vector<2x32xf32>
    %278 = arith.mulf %269, %275 : vector<2x32xf32>
    %279 = arith.addf %277, %278 : vector<2x32xf32>
    %280 = math.tanh %279 : vector<2x32xf32>
    %281 = arith.mulf %276, %280 : vector<2x32xf32>
    %c0_93 = arith.constant 0 : index
    %c4 = arith.constant 4 : index
    %c0_94 = arith.constant 0 : index
    %282 = vector.load %arg0[%c0_93, %c4, %c0_94] : memref<2x8x16xf32, #tpu.memory_space<vmem>>, vector<2x1x16xf32>
    %283 = vector.shape_cast %282 : vector<2x1x16xf32> to vector<2x16xf32>
    %cst_95 = arith.constant dense<0.000000e+00> : vector<2x16xf32>
    %284 = tpu.matmul %281, %2, %cst_95 {dimension_numbers = #tpu.dot_dimension_numbers<[1], [0], [0], [1], [0, 0, 1, 1], [], []>} : vector<2x32xf32>, vector<32x16xf32>, vector<2x16xf32> -> vector<2x16xf32>
    %285 = arith.negf %284 : vector<2x16xf32>
    %286 = math.exp %285 : vector<2x16xf32>
    %cst_96 = arith.constant 1.000000e+00 : f32
    %287 = vector.broadcast %cst_96 : f32 to vector<2x16xf32>
    %288 = arith.addf %287, %286 : vector<2x16xf32>
    %289 = arith.divf %287, %288 : vector<2x16xf32>
    %cst_97 = arith.constant 2.000000e+00 : f32
    %290 = vector.broadcast %cst_97 : f32 to vector<2x16xf32>
    %291 = arith.mulf %290, %289 : vector<2x16xf32>
    %292 = arith.mulf %291, %283 : vector<2x16xf32>
    %cst_98 = arith.constant dense<0.000000e+00> : vector<2x32xf32>
    %293 = tpu.matmul %292, %3, %cst_98 {dimension_numbers = #tpu.dot_dimension_numbers<[1], [0], [0], [1], [0, 0, 1, 1], [], []>} : vector<2x16xf32>, vector<16x32xf32>, vector<2x32xf32> -> vector<2x32xf32>
    %294 = arith.negf %293 : vector<2x32xf32>
    %295 = math.exp %294 : vector<2x32xf32>
    %cst_99 = arith.constant 1.000000e+00 : f32
    %296 = vector.broadcast %cst_99 : f32 to vector<2x32xf32>
    %297 = arith.addf %296, %295 : vector<2x32xf32>
    %298 = arith.divf %296, %297 : vector<2x32xf32>
    %cst_100 = arith.constant 2.000000e+00 : f32
    %299 = vector.broadcast %cst_100 : f32 to vector<2x32xf32>
    %300 = arith.mulf %299, %298 : vector<2x32xf32>
    %301 = arith.mulf %300, %281 : vector<2x32xf32>
    %cst_101 = arith.constant dense<0.000000e+00> : vector<2x16xf32>
    %302 = tpu.matmul %301, %2, %cst_101 {dimension_numbers = #tpu.dot_dimension_numbers<[1], [0], [0], [1], [0, 0, 1, 1], [], []>} : vector<2x32xf32>, vector<32x16xf32>, vector<2x16xf32> -> vector<2x16xf32>
    %303 = arith.negf %302 : vector<2x16xf32>
    %304 = math.exp %303 : vector<2x16xf32>
    %cst_102 = arith.constant 1.000000e+00 : f32
    %305 = vector.broadcast %cst_102 : f32 to vector<2x16xf32>
    %306 = arith.addf %305, %304 : vector<2x16xf32>
    %307 = arith.divf %305, %306 : vector<2x16xf32>
    %cst_103 = arith.constant 2.000000e+00 : f32
    %308 = vector.broadcast %cst_103 : f32 to vector<2x16xf32>
    %309 = arith.mulf %308, %307 : vector<2x16xf32>
    %310 = arith.mulf %309, %292 : vector<2x16xf32>
    %cst_104 = arith.constant dense<0.000000e+00> : vector<2x32xf32>
    %311 = tpu.matmul %310, %3, %cst_104 {dimension_numbers = #tpu.dot_dimension_numbers<[1], [0], [0], [1], [0, 0, 1, 1], [], []>} : vector<2x16xf32>, vector<16x32xf32>, vector<2x32xf32> -> vector<2x32xf32>
    %312 = arith.negf %311 : vector<2x32xf32>
    %313 = math.exp %312 : vector<2x32xf32>
    %cst_105 = arith.constant 1.000000e+00 : f32
    %314 = vector.broadcast %cst_105 : f32 to vector<2x32xf32>
    %315 = arith.addf %314, %313 : vector<2x32xf32>
    %316 = arith.divf %314, %315 : vector<2x32xf32>
    %cst_106 = arith.constant 2.000000e+00 : f32
    %317 = vector.broadcast %cst_106 : f32 to vector<2x32xf32>
    %318 = arith.mulf %317, %316 : vector<2x32xf32>
    %319 = arith.mulf %318, %301 : vector<2x32xf32>
    %cst_107 = arith.constant dense<0.000000e+00> : vector<2x16xf32>
    %320 = tpu.matmul %319, %2, %cst_107 {dimension_numbers = #tpu.dot_dimension_numbers<[1], [0], [0], [1], [0, 0, 1, 1], [], []>} : vector<2x32xf32>, vector<32x16xf32>, vector<2x16xf32> -> vector<2x16xf32>
    %321 = arith.negf %320 : vector<2x16xf32>
    %322 = math.exp %321 : vector<2x16xf32>
    %cst_108 = arith.constant 1.000000e+00 : f32
    %323 = vector.broadcast %cst_108 : f32 to vector<2x16xf32>
    %324 = arith.addf %323, %322 : vector<2x16xf32>
    %325 = arith.divf %323, %324 : vector<2x16xf32>
    %cst_109 = arith.constant 2.000000e+00 : f32
    %326 = vector.broadcast %cst_109 : f32 to vector<2x16xf32>
    %327 = arith.mulf %326, %325 : vector<2x16xf32>
    %328 = arith.mulf %327, %310 : vector<2x16xf32>
    %329 = tpu.concatenate %328, %319 in 1 : vector<2x16xf32>, vector<2x32xf32> -> vector<2x48xf32>
    %cst_110 = arith.constant dense<0.000000e+00> : vector<2x128xf32>
    %330 = tpu.matmul %329, %0, %cst_110 {dimension_numbers = #tpu.dot_dimension_numbers<[1], [0], [0], [1], [0, 0, 1, 1], [], []>} : vector<2x48xf32>, vector<48x128xf32>, vector<2x128xf32> -> vector<2x128xf32>
    %331 = vector.broadcast %1 : vector<1x128xf32> to vector<2x128xf32>
    %332 = arith.addf %330, %331 : vector<2x128xf32>
    %333 = arith.negf %332 : vector<2x128xf32>
    %334 = math.exp %333 : vector<2x128xf32>
    %cst_111 = arith.constant 1.000000e+00 : f32
    %335 = vector.broadcast %cst_111 : f32 to vector<2x128xf32>
    %336 = arith.addf %335, %334 : vector<2x128xf32>
    %337 = arith.divf %335, %336 : vector<2x128xf32>
    %338 = vector.extract_strided_slice %337 {offsets = [0, 0], sizes = [2, 32], strides = [1, 1]} : vector<2x128xf32> to vector<2x32xf32>
    %339 = vector.extract_strided_slice %337 {offsets = [0, 32], sizes = [2, 32], strides = [1, 1]} : vector<2x128xf32> to vector<2x32xf32>
    %340 = vector.extract_strided_slice %337 {offsets = [0, 64], sizes = [2, 32], strides = [1, 1]} : vector<2x128xf32> to vector<2x32xf32>
    %cst_112 = arith.constant 2.000000e+00 : f32
    %341 = vector.broadcast %cst_112 : f32 to vector<2x32xf32>
    %342 = arith.mulf %341, %340 : vector<2x32xf32>
    %cst_113 = arith.constant 1.000000e+00 : f32
    %343 = vector.broadcast %cst_113 : f32 to vector<2x32xf32>
    %344 = arith.subf %342, %343 : vector<2x32xf32>
    %345 = vector.extract_strided_slice %337 {offsets = [0, 96], sizes = [2, 32], strides = [1, 1]} : vector<2x128xf32> to vector<2x32xf32>
    %346 = arith.mulf %339, %279 : vector<2x32xf32>
    %347 = arith.mulf %338, %344 : vector<2x32xf32>
    %348 = arith.addf %346, %347 : vector<2x32xf32>
    %349 = math.tanh %348 : vector<2x32xf32>
    %350 = arith.mulf %345, %349 : vector<2x32xf32>
    %c0_114 = arith.constant 0 : index
    %c5 = arith.constant 5 : index
    %c0_115 = arith.constant 0 : index
    %351 = vector.load %arg0[%c0_114, %c5, %c0_115] : memref<2x8x16xf32, #tpu.memory_space<vmem>>, vector<2x1x16xf32>
    %352 = vector.shape_cast %351 : vector<2x1x16xf32> to vector<2x16xf32>
    %cst_116 = arith.constant dense<0.000000e+00> : vector<2x16xf32>
    %353 = tpu.matmul %350, %2, %cst_116 {dimension_numbers = #tpu.dot_dimension_numbers<[1], [0], [0], [1], [0, 0, 1, 1], [], []>} : vector<2x32xf32>, vector<32x16xf32>, vector<2x16xf32> -> vector<2x16xf32>
    %354 = arith.negf %353 : vector<2x16xf32>
    %355 = math.exp %354 : vector<2x16xf32>
    %cst_117 = arith.constant 1.000000e+00 : f32
    %356 = vector.broadcast %cst_117 : f32 to vector<2x16xf32>
    %357 = arith.addf %356, %355 : vector<2x16xf32>
    %358 = arith.divf %356, %357 : vector<2x16xf32>
    %cst_118 = arith.constant 2.000000e+00 : f32
    %359 = vector.broadcast %cst_118 : f32 to vector<2x16xf32>
    %360 = arith.mulf %359, %358 : vector<2x16xf32>
    %361 = arith.mulf %360, %352 : vector<2x16xf32>
    %cst_119 = arith.constant dense<0.000000e+00> : vector<2x32xf32>
    %362 = tpu.matmul %361, %3, %cst_119 {dimension_numbers = #tpu.dot_dimension_numbers<[1], [0], [0], [1], [0, 0, 1, 1], [], []>} : vector<2x16xf32>, vector<16x32xf32>, vector<2x32xf32> -> vector<2x32xf32>
    %363 = arith.negf %362 : vector<2x32xf32>
    %364 = math.exp %363 : vector<2x32xf32>
    %cst_120 = arith.constant 1.000000e+00 : f32
    %365 = vector.broadcast %cst_120 : f32 to vector<2x32xf32>
    %366 = arith.addf %365, %364 : vector<2x32xf32>
    %367 = arith.divf %365, %366 : vector<2x32xf32>
    %cst_121 = arith.constant 2.000000e+00 : f32
    %368 = vector.broadcast %cst_121 : f32 to vector<2x32xf32>
    %369 = arith.mulf %368, %367 : vector<2x32xf32>
    %370 = arith.mulf %369, %350 : vector<2x32xf32>
    %cst_122 = arith.constant dense<0.000000e+00> : vector<2x16xf32>
    %371 = tpu.matmul %370, %2, %cst_122 {dimension_numbers = #tpu.dot_dimension_numbers<[1], [0], [0], [1], [0, 0, 1, 1], [], []>} : vector<2x32xf32>, vector<32x16xf32>, vector<2x16xf32> -> vector<2x16xf32>
    %372 = arith.negf %371 : vector<2x16xf32>
    %373 = math.exp %372 : vector<2x16xf32>
    %cst_123 = arith.constant 1.000000e+00 : f32
    %374 = vector.broadcast %cst_123 : f32 to vector<2x16xf32>
    %375 = arith.addf %374, %373 : vector<2x16xf32>
    %376 = arith.divf %374, %375 : vector<2x16xf32>
    %cst_124 = arith.constant 2.000000e+00 : f32
    %377 = vector.broadcast %cst_124 : f32 to vector<2x16xf32>
    %378 = arith.mulf %377, %376 : vector<2x16xf32>
    %379 = arith.mulf %378, %361 : vector<2x16xf32>
    %cst_125 = arith.constant dense<0.000000e+00> : vector<2x32xf32>
    %380 = tpu.matmul %379, %3, %cst_125 {dimension_numbers = #tpu.dot_dimension_numbers<[1], [0], [0], [1], [0, 0, 1, 1], [], []>} : vector<2x16xf32>, vector<16x32xf32>, vector<2x32xf32> -> vector<2x32xf32>
    %381 = arith.negf %380 : vector<2x32xf32>
    %382 = math.exp %381 : vector<2x32xf32>
    %cst_126 = arith.constant 1.000000e+00 : f32
    %383 = vector.broadcast %cst_126 : f32 to vector<2x32xf32>
    %384 = arith.addf %383, %382 : vector<2x32xf32>
    %385 = arith.divf %383, %384 : vector<2x32xf32>
    %cst_127 = arith.constant 2.000000e+00 : f32
    %386 = vector.broadcast %cst_127 : f32 to vector<2x32xf32>
    %387 = arith.mulf %386, %385 : vector<2x32xf32>
    %388 = arith.mulf %387, %370 : vector<2x32xf32>
    %cst_128 = arith.constant dense<0.000000e+00> : vector<2x16xf32>
    %389 = tpu.matmul %388, %2, %cst_128 {dimension_numbers = #tpu.dot_dimension_numbers<[1], [0], [0], [1], [0, 0, 1, 1], [], []>} : vector<2x32xf32>, vector<32x16xf32>, vector<2x16xf32> -> vector<2x16xf32>
    %390 = arith.negf %389 : vector<2x16xf32>
    %391 = math.exp %390 : vector<2x16xf32>
    %cst_129 = arith.constant 1.000000e+00 : f32
    %392 = vector.broadcast %cst_129 : f32 to vector<2x16xf32>
    %393 = arith.addf %392, %391 : vector<2x16xf32>
    %394 = arith.divf %392, %393 : vector<2x16xf32>
    %cst_130 = arith.constant 2.000000e+00 : f32
    %395 = vector.broadcast %cst_130 : f32 to vector<2x16xf32>
    %396 = arith.mulf %395, %394 : vector<2x16xf32>
    %397 = arith.mulf %396, %379 : vector<2x16xf32>
    %398 = tpu.concatenate %397, %388 in 1 : vector<2x16xf32>, vector<2x32xf32> -> vector<2x48xf32>
    %cst_131 = arith.constant dense<0.000000e+00> : vector<2x128xf32>
    %399 = tpu.matmul %398, %0, %cst_131 {dimension_numbers = #tpu.dot_dimension_numbers<[1], [0], [0], [1], [0, 0, 1, 1], [], []>} : vector<2x48xf32>, vector<48x128xf32>, vector<2x128xf32> -> vector<2x128xf32>
    %400 = vector.broadcast %1 : vector<1x128xf32> to vector<2x128xf32>
    %401 = arith.addf %399, %400 : vector<2x128xf32>
    %402 = arith.negf %401 : vector<2x128xf32>
    %403 = math.exp %402 : vector<2x128xf32>
    %cst_132 = arith.constant 1.000000e+00 : f32
    %404 = vector.broadcast %cst_132 : f32 to vector<2x128xf32>
    %405 = arith.addf %404, %403 : vector<2x128xf32>
    %406 = arith.divf %404, %405 : vector<2x128xf32>
    %407 = vector.extract_strided_slice %406 {offsets = [0, 0], sizes = [2, 32], strides = [1, 1]} : vector<2x128xf32> to vector<2x32xf32>
    %408 = vector.extract_strided_slice %406 {offsets = [0, 32], sizes = [2, 32], strides = [1, 1]} : vector<2x128xf32> to vector<2x32xf32>
    %409 = vector.extract_strided_slice %406 {offsets = [0, 64], sizes = [2, 32], strides = [1, 1]} : vector<2x128xf32> to vector<2x32xf32>
    %cst_133 = arith.constant 2.000000e+00 : f32
    %410 = vector.broadcast %cst_133 : f32 to vector<2x32xf32>
    %411 = arith.mulf %410, %409 : vector<2x32xf32>
    %cst_134 = arith.constant 1.000000e+00 : f32
    %412 = vector.broadcast %cst_134 : f32 to vector<2x32xf32>
    %413 = arith.subf %411, %412 : vector<2x32xf32>
    %414 = vector.extract_strided_slice %406 {offsets = [0, 96], sizes = [2, 32], strides = [1, 1]} : vector<2x128xf32> to vector<2x32xf32>
    %415 = arith.mulf %408, %348 : vector<2x32xf32>
    %416 = arith.mulf %407, %413 : vector<2x32xf32>
    %417 = arith.addf %415, %416 : vector<2x32xf32>
    %418 = math.tanh %417 : vector<2x32xf32>
    %419 = arith.mulf %414, %418 : vector<2x32xf32>
    %c0_135 = arith.constant 0 : index
    %c6 = arith.constant 6 : index
    %c0_136 = arith.constant 0 : index
    %420 = vector.load %arg0[%c0_135, %c6, %c0_136] : memref<2x8x16xf32, #tpu.memory_space<vmem>>, vector<2x1x16xf32>
    %421 = vector.shape_cast %420 : vector<2x1x16xf32> to vector<2x16xf32>
    %cst_137 = arith.constant dense<0.000000e+00> : vector<2x16xf32>
    %422 = tpu.matmul %419, %2, %cst_137 {dimension_numbers = #tpu.dot_dimension_numbers<[1], [0], [0], [1], [0, 0, 1, 1], [], []>} : vector<2x32xf32>, vector<32x16xf32>, vector<2x16xf32> -> vector<2x16xf32>
    %423 = arith.negf %422 : vector<2x16xf32>
    %424 = math.exp %423 : vector<2x16xf32>
    %cst_138 = arith.constant 1.000000e+00 : f32
    %425 = vector.broadcast %cst_138 : f32 to vector<2x16xf32>
    %426 = arith.addf %425, %424 : vector<2x16xf32>
    %427 = arith.divf %425, %426 : vector<2x16xf32>
    %cst_139 = arith.constant 2.000000e+00 : f32
    %428 = vector.broadcast %cst_139 : f32 to vector<2x16xf32>
    %429 = arith.mulf %428, %427 : vector<2x16xf32>
    %430 = arith.mulf %429, %421 : vector<2x16xf32>
    %cst_140 = arith.constant dense<0.000000e+00> : vector<2x32xf32>
    %431 = tpu.matmul %430, %3, %cst_140 {dimension_numbers = #tpu.dot_dimension_numbers<[1], [0], [0], [1], [0, 0, 1, 1], [], []>} : vector<2x16xf32>, vector<16x32xf32>, vector<2x32xf32> -> vector<2x32xf32>
    %432 = arith.negf %431 : vector<2x32xf32>
    %433 = math.exp %432 : vector<2x32xf32>
    %cst_141 = arith.constant 1.000000e+00 : f32
    %434 = vector.broadcast %cst_141 : f32 to vector<2x32xf32>
    %435 = arith.addf %434, %433 : vector<2x32xf32>
    %436 = arith.divf %434, %435 : vector<2x32xf32>
    %cst_142 = arith.constant 2.000000e+00 : f32
    %437 = vector.broadcast %cst_142 : f32 to vector<2x32xf32>
    %438 = arith.mulf %437, %436 : vector<2x32xf32>
    %439 = arith.mulf %438, %419 : vector<2x32xf32>
    %cst_143 = arith.constant dense<0.000000e+00> : vector<2x16xf32>
    %440 = tpu.matmul %439, %2, %cst_143 {dimension_numbers = #tpu.dot_dimension_numbers<[1], [0], [0], [1], [0, 0, 1, 1], [], []>} : vector<2x32xf32>, vector<32x16xf32>, vector<2x16xf32> -> vector<2x16xf32>
    %441 = arith.negf %440 : vector<2x16xf32>
    %442 = math.exp %441 : vector<2x16xf32>
    %cst_144 = arith.constant 1.000000e+00 : f32
    %443 = vector.broadcast %cst_144 : f32 to vector<2x16xf32>
    %444 = arith.addf %443, %442 : vector<2x16xf32>
    %445 = arith.divf %443, %444 : vector<2x16xf32>
    %cst_145 = arith.constant 2.000000e+00 : f32
    %446 = vector.broadcast %cst_145 : f32 to vector<2x16xf32>
    %447 = arith.mulf %446, %445 : vector<2x16xf32>
    %448 = arith.mulf %447, %430 : vector<2x16xf32>
    %cst_146 = arith.constant dense<0.000000e+00> : vector<2x32xf32>
    %449 = tpu.matmul %448, %3, %cst_146 {dimension_numbers = #tpu.dot_dimension_numbers<[1], [0], [0], [1], [0, 0, 1, 1], [], []>} : vector<2x16xf32>, vector<16x32xf32>, vector<2x32xf32> -> vector<2x32xf32>
    %450 = arith.negf %449 : vector<2x32xf32>
    %451 = math.exp %450 : vector<2x32xf32>
    %cst_147 = arith.constant 1.000000e+00 : f32
    %452 = vector.broadcast %cst_147 : f32 to vector<2x32xf32>
    %453 = arith.addf %452, %451 : vector<2x32xf32>
    %454 = arith.divf %452, %453 : vector<2x32xf32>
    %cst_148 = arith.constant 2.000000e+00 : f32
    %455 = vector.broadcast %cst_148 : f32 to vector<2x32xf32>
    %456 = arith.mulf %455, %454 : vector<2x32xf32>
    %457 = arith.mulf %456, %439 : vector<2x32xf32>
    %cst_149 = arith.constant dense<0.000000e+00> : vector<2x16xf32>
    %458 = tpu.matmul %457, %2, %cst_149 {dimension_numbers = #tpu.dot_dimension_numbers<[1], [0], [0], [1], [0, 0, 1, 1], [], []>} : vector<2x32xf32>, vector<32x16xf32>, vector<2x16xf32> -> vector<2x16xf32>
    %459 = arith.negf %458 : vector<2x16xf32>
    %460 = math.exp %459 : vector<2x16xf32>
    %cst_150 = arith.constant 1.000000e+00 : f32
    %461 = vector.broadcast %cst_150 : f32 to vector<2x16xf32>
    %462 = arith.addf %461, %460 : vector<2x16xf32>
    %463 = arith.divf %461, %462 : vector<2x16xf32>
    %cst_151 = arith.constant 2.000000e+00 : f32
    %464 = vector.broadcast %cst_151 : f32 to vector<2x16xf32>
    %465 = arith.mulf %464, %463 : vector<2x16xf32>
    %466 = arith.mulf %465, %448 : vector<2x16xf32>
    %467 = tpu.concatenate %466, %457 in 1 : vector<2x16xf32>, vector<2x32xf32> -> vector<2x48xf32>
    %cst_152 = arith.constant dense<0.000000e+00> : vector<2x128xf32>
    %468 = tpu.matmul %467, %0, %cst_152 {dimension_numbers = #tpu.dot_dimension_numbers<[1], [0], [0], [1], [0, 0, 1, 1], [], []>} : vector<2x48xf32>, vector<48x128xf32>, vector<2x128xf32> -> vector<2x128xf32>
    %469 = vector.broadcast %1 : vector<1x128xf32> to vector<2x128xf32>
    %470 = arith.addf %468, %469 : vector<2x128xf32>
    %471 = arith.negf %470 : vector<2x128xf32>
    %472 = math.exp %471 : vector<2x128xf32>
    %cst_153 = arith.constant 1.000000e+00 : f32
    %473 = vector.broadcast %cst_153 : f32 to vector<2x128xf32>
    %474 = arith.addf %473, %472 : vector<2x128xf32>
    %475 = arith.divf %473, %474 : vector<2x128xf32>
    %476 = vector.extract_strided_slice %475 {offsets = [0, 0], sizes = [2, 32], strides = [1, 1]} : vector<2x128xf32> to vector<2x32xf32>
    %477 = vector.extract_strided_slice %475 {offsets = [0, 32], sizes = [2, 32], strides = [1, 1]} : vector<2x128xf32> to vector<2x32xf32>
    %478 = vector.extract_strided_slice %475 {offsets = [0, 64], sizes = [2, 32], strides = [1, 1]} : vector<2x128xf32> to vector<2x32xf32>
    %cst_154 = arith.constant 2.000000e+00 : f32
    %479 = vector.broadcast %cst_154 : f32 to vector<2x32xf32>
    %480 = arith.mulf %479, %478 : vector<2x32xf32>
    %cst_155 = arith.constant 1.000000e+00 : f32
    %481 = vector.broadcast %cst_155 : f32 to vector<2x32xf32>
    %482 = arith.subf %480, %481 : vector<2x32xf32>
    %483 = vector.extract_strided_slice %475 {offsets = [0, 96], sizes = [2, 32], strides = [1, 1]} : vector<2x128xf32> to vector<2x32xf32>
    %484 = arith.mulf %477, %417 : vector<2x32xf32>
    %485 = arith.mulf %476, %482 : vector<2x32xf32>
    %486 = arith.addf %484, %485 : vector<2x32xf32>
    %487 = math.tanh %486 : vector<2x32xf32>
    %488 = arith.mulf %483, %487 : vector<2x32xf32>
    %c0_156 = arith.constant 0 : index
    %c7 = arith.constant 7 : index
    %c0_157 = arith.constant 0 : index
    %489 = vector.load %arg0[%c0_156, %c7, %c0_157] : memref<2x8x16xf32, #tpu.memory_space<vmem>>, vector<2x1x16xf32>
    %490 = vector.shape_cast %489 : vector<2x1x16xf32> to vector<2x16xf32>
    %cst_158 = arith.constant dense<0.000000e+00> : vector<2x16xf32>
    %491 = tpu.matmul %488, %2, %cst_158 {dimension_numbers = #tpu.dot_dimension_numbers<[1], [0], [0], [1], [0, 0, 1, 1], [], []>} : vector<2x32xf32>, vector<32x16xf32>, vector<2x16xf32> -> vector<2x16xf32>
    %492 = arith.negf %491 : vector<2x16xf32>
    %493 = math.exp %492 : vector<2x16xf32>
    %cst_159 = arith.constant 1.000000e+00 : f32
    %494 = vector.broadcast %cst_159 : f32 to vector<2x16xf32>
    %495 = arith.addf %494, %493 : vector<2x16xf32>
    %496 = arith.divf %494, %495 : vector<2x16xf32>
    %cst_160 = arith.constant 2.000000e+00 : f32
    %497 = vector.broadcast %cst_160 : f32 to vector<2x16xf32>
    %498 = arith.mulf %497, %496 : vector<2x16xf32>
    %499 = arith.mulf %498, %490 : vector<2x16xf32>
    %cst_161 = arith.constant dense<0.000000e+00> : vector<2x32xf32>
    %500 = tpu.matmul %499, %3, %cst_161 {dimension_numbers = #tpu.dot_dimension_numbers<[1], [0], [0], [1], [0, 0, 1, 1], [], []>} : vector<2x16xf32>, vector<16x32xf32>, vector<2x32xf32> -> vector<2x32xf32>
    %501 = arith.negf %500 : vector<2x32xf32>
    %502 = math.exp %501 : vector<2x32xf32>
    %cst_162 = arith.constant 1.000000e+00 : f32
    %503 = vector.broadcast %cst_162 : f32 to vector<2x32xf32>
    %504 = arith.addf %503, %502 : vector<2x32xf32>
    %505 = arith.divf %503, %504 : vector<2x32xf32>
    %cst_163 = arith.constant 2.000000e+00 : f32
    %506 = vector.broadcast %cst_163 : f32 to vector<2x32xf32>
    %507 = arith.mulf %506, %505 : vector<2x32xf32>
    %508 = arith.mulf %507, %488 : vector<2x32xf32>
    %cst_164 = arith.constant dense<0.000000e+00> : vector<2x16xf32>
    %509 = tpu.matmul %508, %2, %cst_164 {dimension_numbers = #tpu.dot_dimension_numbers<[1], [0], [0], [1], [0, 0, 1, 1], [], []>} : vector<2x32xf32>, vector<32x16xf32>, vector<2x16xf32> -> vector<2x16xf32>
    %510 = arith.negf %509 : vector<2x16xf32>
    %511 = math.exp %510 : vector<2x16xf32>
    %cst_165 = arith.constant 1.000000e+00 : f32
    %512 = vector.broadcast %cst_165 : f32 to vector<2x16xf32>
    %513 = arith.addf %512, %511 : vector<2x16xf32>
    %514 = arith.divf %512, %513 : vector<2x16xf32>
    %cst_166 = arith.constant 2.000000e+00 : f32
    %515 = vector.broadcast %cst_166 : f32 to vector<2x16xf32>
    %516 = arith.mulf %515, %514 : vector<2x16xf32>
    %517 = arith.mulf %516, %499 : vector<2x16xf32>
    %cst_167 = arith.constant dense<0.000000e+00> : vector<2x32xf32>
    %518 = tpu.matmul %517, %3, %cst_167 {dimension_numbers = #tpu.dot_dimension_numbers<[1], [0], [0], [1], [0, 0, 1, 1], [], []>} : vector<2x16xf32>, vector<16x32xf32>, vector<2x32xf32> -> vector<2x32xf32>
    %519 = arith.negf %518 : vector<2x32xf32>
    %520 = math.exp %519 : vector<2x32xf32>
    %cst_168 = arith.constant 1.000000e+00 : f32
    %521 = vector.broadcast %cst_168 : f32 to vector<2x32xf32>
    %522 = arith.addf %521, %520 : vector<2x32xf32>
    %523 = arith.divf %521, %522 : vector<2x32xf32>
    %cst_169 = arith.constant 2.000000e+00 : f32
    %524 = vector.broadcast %cst_169 : f32 to vector<2x32xf32>
    %525 = arith.mulf %524, %523 : vector<2x32xf32>
    %526 = arith.mulf %525, %508 : vector<2x32xf32>
    %cst_170 = arith.constant dense<0.000000e+00> : vector<2x16xf32>
    %527 = tpu.matmul %526, %2, %cst_170 {dimension_numbers = #tpu.dot_dimension_numbers<[1], [0], [0], [1], [0, 0, 1, 1], [], []>} : vector<2x32xf32>, vector<32x16xf32>, vector<2x16xf32> -> vector<2x16xf32>
    %528 = arith.negf %527 : vector<2x16xf32>
    %529 = math.exp %528 : vector<2x16xf32>
    %cst_171 = arith.constant 1.000000e+00 : f32
    %530 = vector.broadcast %cst_171 : f32 to vector<2x16xf32>
    %531 = arith.addf %530, %529 : vector<2x16xf32>
    %532 = arith.divf %530, %531 : vector<2x16xf32>
    %cst_172 = arith.constant 2.000000e+00 : f32
    %533 = vector.broadcast %cst_172 : f32 to vector<2x16xf32>
    %534 = arith.mulf %533, %532 : vector<2x16xf32>
    %535 = arith.mulf %534, %517 : vector<2x16xf32>
    %536 = tpu.concatenate %535, %526 in 1 : vector<2x16xf32>, vector<2x32xf32> -> vector<2x48xf32>
    %cst_173 = arith.constant dense<0.000000e+00> : vector<2x128xf32>
    %537 = tpu.matmul %536, %0, %cst_173 {dimension_numbers = #tpu.dot_dimension_numbers<[1], [0], [0], [1], [0, 0, 1, 1], [], []>} : vector<2x48xf32>, vector<48x128xf32>, vector<2x128xf32> -> vector<2x128xf32>
    %538 = vector.broadcast %1 : vector<1x128xf32> to vector<2x128xf32>
    %539 = arith.addf %537, %538 : vector<2x128xf32>
    %540 = arith.negf %539 : vector<2x128xf32>
    %541 = math.exp %540 : vector<2x128xf32>
    %cst_174 = arith.constant 1.000000e+00 : f32
    %542 = vector.broadcast %cst_174 : f32 to vector<2x128xf32>
    %543 = arith.addf %542, %541 : vector<2x128xf32>
    %544 = arith.divf %542, %543 : vector<2x128xf32>
    %545 = vector.extract_strided_slice %544 {offsets = [0, 0], sizes = [2, 32], strides = [1, 1]} : vector<2x128xf32> to vector<2x32xf32>
    %546 = vector.extract_strided_slice %544 {offsets = [0, 32], sizes = [2, 32], strides = [1, 1]} : vector<2x128xf32> to vector<2x32xf32>
    %547 = vector.extract_strided_slice %544 {offsets = [0, 64], sizes = [2, 32], strides = [1, 1]} : vector<2x128xf32> to vector<2x32xf32>
    %cst_175 = arith.constant 2.000000e+00 : f32
    %548 = vector.broadcast %cst_175 : f32 to vector<2x32xf32>
    %549 = arith.mulf %548, %547 : vector<2x32xf32>
    %cst_176 = arith.constant 1.000000e+00 : f32
    %550 = vector.broadcast %cst_176 : f32 to vector<2x32xf32>
    %551 = arith.subf %549, %550 : vector<2x32xf32>
    %552 = vector.extract_strided_slice %544 {offsets = [0, 96], sizes = [2, 32], strides = [1, 1]} : vector<2x128xf32> to vector<2x32xf32>
    %553 = arith.mulf %546, %486 : vector<2x32xf32>
    %554 = arith.mulf %545, %551 : vector<2x32xf32>
    %555 = arith.addf %553, %554 : vector<2x32xf32>
    %556 = math.tanh %555 : vector<2x32xf32>
    %557 = arith.mulf %552, %556 : vector<2x32xf32>
    %558 = vector.extract_strided_slice %557 {offsets = [1, 0], sizes = [1, 32], strides = [1, 1]} : vector<2x32xf32> to vector<1x32xf32>
    %c0_177 = arith.constant 0 : index
    %c0_178 = arith.constant 0 : index
    %559 = vector.load %arg5[%c0_177, %c0_178] : memref<32x16xf32, #tpu.memory_space<vmem>>, vector<32x16xf32>
    %cst_179 = arith.constant dense<0.000000e+00> : vector<1x16xf32>
    %560 = tpu.matmul %558, %559, %cst_179 {dimension_numbers = #tpu.dot_dimension_numbers<[1], [0], [0], [1], [0, 0, 1, 1], [], []>} : vector<1x32xf32>, vector<32x16xf32>, vector<1x16xf32> -> vector<1x16xf32>
    %c0_180 = arith.constant 0 : index
    %c0_181 = arith.constant 0 : index
    %561 = vector.load %arg6[%c0_180, %c0_181] : memref<1x16xf32, #tpu.memory_space<vmem>>, vector<1x16xf32>
    %562 = arith.addf %560, %561 : vector<1x16xf32>
    %563 = tpu.iota {dimensions = array<i32: 1>} : vector<1x16xi32>
    %c0_i32 = arith.constant 0 : i32
    %564 = vector.broadcast %c0_i32 : i32 to vector<1x16xi32>
    %565 = arith.cmpi eq, %563, %564 : vector<1x16xi32>
    %cst_182 = arith.constant 0.000000e+00 : f32
    %566 = vector.broadcast %cst_182 : f32 to vector<1x16xf32>
    %567 = arith.maximumf %562, %566 : vector<1x16xf32>
    %cst_183 = arith.constant -1.000000e+01 : f32
    %cst_184 = arith.constant 1.000000e+01 : f32
    %568 = vector.broadcast %cst_183 : f32 to vector<1x16xf32>
    %569 = arith.maximumf %568, %562 : vector<1x16xf32>
    %570 = vector.broadcast %cst_184 : f32 to vector<1x16xf32>
    %571 = arith.minimumf %570, %569 : vector<1x16xf32>
    %572 = arith.select %565, %567, %571 : vector<1x16xi1>, vector<1x16xf32>
    %c0_185 = arith.constant 0 : index
    %c0_186 = arith.constant 0 : index
    %573 = vector.load %arg7[%c0_185, %c0_186] : memref<1x16xf32, #tpu.memory_space<vmem>>, vector<1x16xf32>
    tpu.vector_store %arg7[%c0_185, %c0_186], %572 {strides = array<i32>} : memref<1x16xf32, #tpu.memory_space<vmem>>, vector<1x16xf32>,
    return
  }
}

</mosaic_0001>

<bundles_post_ra>
// kernel: tpu_custom_call.1
= control target key start
LH: loop header
LB: loop body
LE: loop exit
PB: predicated region body
PF: predicated region fallthrough
CT: control target
= control target key end

     0   :  { %s3435_s0 = inlined_call_operand.vmem [shape: f32[2,8,16], index: 0, kind: input, shape index: {}]   ;;  %s3436_s1 = inlined_call_operand.vmem [shape: f32[48,128], index: 1, kind: input, shape index: {}]   ;;  %s3437_s2 = inlined_call_operand.vmem [shape: f32[1,128], index: 2, kind: input, shape index: {}]   ;;  %s3438_s3 = inlined_call_operand.vmem [shape: f32[32,16], index: 3, kind: input, shape index: {}]   ;;  %s3439_s4 = inlined_call_operand.vmem [shape: f32[16,32], index: 4, kind: input, shape index: {}]   ;;  %s3440_s5 = inlined_call_operand.vmem [shape: f32[32,16], index: 5, kind: input, shape index: {}]   ;;  %s3441_s6 = inlined_call_operand.vmem [shape: f32[1,16], index: 6, kind: input, shape index: {}]   ;;  %s3442_s7 = inlined_call_operand.hbm [shape: f32[1,16], index: 7, kind: output, shape index: {}]  }
   0x1   :  { %v2879_v0 = vld [vmem:[%s3438_s3 + $0x18] sm:$0xff]  ;;  %v2884_v1 = vld [vmem:[%s3438_s3 + $0x10] sm:$0xff] }
   0x2   :  { %58 = vmatpush.msra.mxu0 %v2879_v0  ;;  %241 = vmatpush.msra.mxu1 %v2879_v0 }
   0x3   :  { %12 = vsyncpa [#allocation3], 0  ;;  %v2891_v2 = vld [vmem:[%s3438_s3 + $0x8] sm:$0xff]  ;;  %v2898_v3 = vld [vmem:[%s3438_s3] sm:$0xff]  ;;  %v2831_v4 = vmov 0.0   ;;  %vm89_vm2 = vcmask 1041409  }
   0x4   :  { %59 = vmatpush.msra.mxu0 %v2884_v1  ;;  %242 = vmatpush.msra.mxu1 %v2884_v1  ;;  %v2915_v5 = vld [vmem:[%s3439_s4 + $0x8] sm:$0xff]  ;;  %v2920_v6 = vld [vmem:[%s3439_s4] sm:$0xff]  ;;  %vm93_vm5 = vcmask 130048   ;;  %vm42_vm10 = vcmask 261120   ;;  %s2832_s17 = smov 16   ;;  %s2833_s9 = smov 64  }
   0x5   :  { %111 = vmatpush.msra.mxu2 %v2915_v5  ;;  %199 = vmatpush.msra.mxu3 %v2915_v5  ;;  %v41_v14 = vld [vmem:[%s3435_s0 + $0x8] sm:$0x1]  ;;  %v40_v19 = vld [vmem:[%s3435_s0] sm:$0x1]  ;;  %s2834_s10 = smov 32   ;;  %s2835_s12 = smov [#allocation2]  }
   0x6   :  { %60 = vmatpush.msra.mxu0 %v2891_v2  ;;  %243 = vmatpush.msra.mxu1 %v2891_v2  ;;  %v88_v18 = vrot.slane %v41_v14, 7  ;;  %s2451_s15 = sshll.u32 %s3442_s7, 4  ;;  %s2452_s15 = int_to_ptr.hbm [resolvable:$true] %s2451_s15 }
   0x7   :  { %112 = vmatpush.msra.mxu2 %v2920_v6  ;;  %200 = vmatpush.msra.mxu3 %v2920_v6 }
   0x8   :  { %61 = vmatpush.msra.mxu0 %v2898_v3  ;;  %244 = vmatpush.msra.mxu1 %v2898_v3  ;;  %v90_v24 = vsel %vm89_vm2, %v88_v18, %v40_v19  ;;  %v2966_v18 = vld [vmem:[%s3436_s1 + $0x20] sm:$0xff]  ;;  %v2971_v19 = vld [vmem:[%s3436_s1 + $0x18] sm:$0xff] }
   0x9   :  { %62 = vmatmul.f32.vlgmr.msra.gmra.mxu0 %v2831_v4  ;;  %153 = vmatpush.msrb.mxu2 %v2879_v0 }
   0xa   :  { %452 = vmatpush.msrb.mxu1 %v2879_v0  ;;  %358 = vmatpush.msrb.mxu0 %v2879_v0 }
   0xb   :  { %154 = vmatpush.msrb.mxu2 %v2884_v1 }
   0xc   :  { %453 = vmatpush.msrb.mxu1 %v2884_v1  ;;  %359 = vmatpush.msrb.mxu0 %v2884_v1 }
   0xd   :  { %155 = vmatpush.msrb.mxu2 %v2891_v2 }
   0xe   :  { %454 = vmatpush.msrb.mxu1 %v2891_v2  ;;  %360 = vmatpush.msrb.mxu0 %v2891_v2 }
   0xf   :  { %156 = vmatpush.msrb.mxu2 %v2898_v3 }
  0x10   :  { %455 = vmatpush.msrb.mxu1 %v2898_v3  ;;  %361 = vmatpush.msrb.mxu0 %v2898_v3 }
  0x12   :  { %498 = vmatpush.msra.mxu0 %v2915_v5 }
  0x14   :  { %499 = vmatpush.msra.mxu0 %v2920_v6 }
  0x86   :  { %v63_v7 = vpop.f32.mrf.mxu0 }
  0x87   :  { %v2460_v8 = vmul.f32 -1.442695, %v63_v7 }
  0x89   :  { %2571 = vpow2.f32 %v2460_v8 }
  0x8f   :  { %v2572_v9 = vpop.eup %2571 }
  0x90   :  { %v69_v10 = vadd.f32 1.0, %v2572_v9 }
  0x92   :  { %2573 = vrcp.f32 %v69_v10  ;;  %v81_v15 = vand.u32 2147483648, %v69_v10  ;;  %v79_v17 = vand.u32 2147483647, %v69_v10  ;;  %vm75_vm1 = vweird.f32 %v69_v10 }
  0x94   :  { %v82_v21 = vor.u32 1.1754944e-38, %v81_v15  ;;  %vm80_vm4 = vcmp.eq.f32.partialorder %v79_v17, 8.507059e+37  ;;  %v2960_v17 = vld [vmem:[%s3436_s1 + $0x28] sm:$0xff] }
  0x95   :  { %291 = vmatpush.msrb.mxu3 %v2960_v17 }
  0x97   :  { %292 = vmatpush.msrb.mxu3 %v2966_v18 }
  0x98   :  { %v2574_v11 = vpop.eup %2573 }
  0x99   :  { %v71_v12 = vmul.f32 %v2574_v11, %v69_v10  ;;  %vm76_vm0 = vweird.f32 %v2574_v11  ;;  %293 = vmatpush.msrb.mxu3 %v2971_v19 }
  0x9a   :  { %vm77_vm3 = vmor %vm75_vm1, %vm76_vm0 }
  0x9b   :  { %v72_v13 = vsub.f32 1.0, %v71_v12 }
  0x9d   :  { %v73_v16 = vmul.f32 %v2574_v11, %v72_v13 }
  0x9f   :  { %v74_v20 = vadd.f32 %v2574_v11, %v73_v16 }
  0xa1   :  { %v78_v22 = vsel %vm77_vm3, %v2574_v11, %v74_v20  ;;  %v2977_v20 = vld [vmem:[%s3436_s1 + $0x10] sm:$0xff] }
  0xa2   :  { %v83_v23 = vsel %vm80_vm4, %v82_v21, %v78_v22  ;;  %v2983_v21 = vld [vmem:[%s3436_s1 + $0x8] sm:$0xff]  ;;  %294 = vmatpush.msrb.mxu3 %v2977_v20  ;;  %v2989_v22 = vld [vmem:[%s3436_s1] sm:$0xff] }
  0xa3   :  { %v85_v25 = vmul.f32 2.0, %v83_v23 }
  0xa4   :  { %295 = vmatpush.msrb.mxu3 %v2983_v21 }
  0xa5   :  { %v92_v26 = vmul.f32 %v90_v24, %v85_v25 }
  0xa6   :  { %296 = vmatpush.msrb.mxu3 %v2989_v22 }
  0xa7   :  { %2461 = vmatmul.msk.f32.vlgmr.msra.gmra.mxu2 %vm93_vm5, %v92_v26 }
  0xa8   :  { %409 = vmatpush.msra.mxu2 %v2915_v5 }
  0xaa   :  { %410 = vmatpush.msra.mxu2 %v2920_v6 }
 0x12a   :  { %v114_v27 = vpop.f32.mrf.mxu2 }
 0x12b   :  { %v2462_v28 = vmul.f32 -1.442695, %v114_v27 }
 0x12d   :  { %2575 = vpow2.f32 %v2462_v28 }
 0x133   :  { %v2576_v29 = vpop.eup %2575 }
 0x134   :  { %v120_v30 = vadd.f32 1.0, %v2576_v29 }
 0x136   :  { %2577 = vrcp.f32 %v120_v30  ;;  %v132_v34 = vand.u32 2147483648, %v120_v30  ;;  %v130_v36 = vand.u32 2147483647, %v120_v30  ;;  %vm126_vm7 = vweird.f32 %v120_v30 }
 0x138   :  { %v133_v38 = vor.u32 1.1754944e-38, %v132_v34  ;;  %vm131_vm9 = vcmp.eq.f32.partialorder %v130_v36, 8.507059e+37 }
 0x13c   :  { %v2578_v31 = vpop.eup %2577 }
 0x13d   :  { %v122_v32 = vmul.f32 %v2578_v31, %v120_v30  ;;  %vm127_vm6 = vweird.f32 %v2578_v31 }
 0x13e   :  { %vm128_vm8 = vmor %vm126_vm7, %vm127_vm6 }
 0x13f   :  { %v123_v33 = vsub.f32 1.0, %v122_v32 }
 0x141   :  { %v124_v35 = vmul.f32 %v2578_v31, %v123_v33 }
 0x143   :  { %v125_v37 = vadd.f32 %v2578_v31, %v124_v35 }
 0x145   :  { %v129_v39 = vsel %vm128_vm8, %v2578_v31, %v125_v37 }
 0x146   :  { %v134_v40 = vsel %vm131_vm9, %v133_v38, %v129_v39  ;;  %vm277_vm9 = vcmask 392192  }
 0x147   :  { %v136_v41 = vmul.f32 2.0, %v134_v40 }
 0x149   :  { %v137_v42 = vmul.f32 0.0, %v136_v41  ;;  %v3009_v41 = vld [vmem:[%s3437_s2] ss:$0 sm:$0xff] }
 0x14b   :  { %2463 = vmatmul.msk.f32.vlgmr.msrb.gmra.mxu2 %vm42_vm10, %v137_v42 }
 0x14c   :  { %540 = vmatpush.msrb.mxu2 %v2879_v0 }
 0x14e   :  { %541 = vmatpush.msrb.mxu2 %v2884_v1 }
 0x150   :  { %542 = vmatpush.msrb.mxu2 %v2891_v2 }
 0x152   :  { %543 = vmatpush.msrb.mxu2 %v2898_v3 }
 0x1ce   :  { %v158_v43 = vpop.f32.mrf.mxu2 }
 0x1cf   :  { %v2464_v44 = vmul.f32 -1.442695, %v158_v43 }
 0x1d1   :  { %2579 = vpow2.f32 %v2464_v44 }
 0x1d7   :  { %v2580_v45 = vpop.eup %2579 }
 0x1d8   :  { %v164_v46 = vadd.f32 1.0, %v2580_v45 }
 0x1da   :  { %2581 = vrcp.f32 %v164_v46  ;;  %v176_v50 = vand.u32 2147483648, %v164_v46  ;;  %v174_v52 = vand.u32 2147483647, %v164_v46  ;;  %vm170_vm12 = vweird.f32 %v164_v46 }
 0x1dc   :  { %v177_v54 = vor.u32 1.1754944e-38, %v176_v50  ;;  %vm175_vm14 = vcmp.eq.f32.partialorder %v174_v52, 8.507059e+37 }
 0x1e0   :  { %v2582_v47 = vpop.eup %2581 }
 0x1e1   :  { %v166_v48 = vmul.f32 %v2582_v47, %v164_v46  ;;  %vm171_vm11 = vweird.f32 %v2582_v47 }
 0x1e2   :  { %vm172_vm13 = vmor %vm170_vm12, %vm171_vm11 }
 0x1e3   :  { %v167_v49 = vsub.f32 1.0, %v166_v48 }
 0x1e5   :  { %v168_v51 = vmul.f32 %v2582_v47, %v167_v49 }
 0x1e7   :  { %v169_v53 = vadd.f32 %v2582_v47, %v168_v51 }
 0x1e9   :  { %v173_v55 = vsel %vm172_vm13, %v2582_v47, %v169_v53 }
 0x1ea   :  { %v178_v56 = vsel %vm175_vm14, %v177_v54, %v173_v55 }
 0x1eb   :  { %v180_v57 = vmul.f32 2.0, %v178_v56 }
 0x1ed   :  { %v2947_v58 = vmul.f32 %v180_v57, %v92_v26 }
 0x1ef   :  { %2465 = vmatmul.msk.f32.vlgmr.msra.gmra.mxu3 %vm93_vm5, %v2947_v58 }
 0x1f0   :  { %586 = vmatpush.msra.mxu3 %v2960_v17 }
 0x1f2   :  { %587 = vmatpush.msra.mxu3 %v2966_v18 }
 0x1f4   :  { %588 = vmatpush.msra.mxu3 %v2971_v19 }
 0x1f6   :  { %589 = vmatpush.msra.mxu3 %v2977_v20 }
 0x1f8   :  { %590 = vmatpush.msra.mxu3 %v2983_v21 }
 0x1fa   :  { %591 = vmatpush.msra.mxu3 %v2989_v22 }
 0x272   :  { %v202_v59 = vpop.f32.mrf.mxu3 }
 0x273   :  { %v2466_v60 = vmul.f32 -1.442695, %v202_v59 }
 0x275   :  { %2583 = vpow2.f32 %v2466_v60 }
 0x27b   :  { %v2584_v61 = vpop.eup %2583 }
 0x27c   :  { %v208_v62 = vadd.f32 1.0, %v2584_v61 }
 0x27e   :  { %2585 = vrcp.f32 %v208_v62  ;;  %v220_v8 = vand.u32 2147483648, %v208_v62  ;;  %v218_v10 = vand.u32 2147483647, %v208_v62  ;;  %vm214_vm0 = vweird.f32 %v208_v62 }
 0x280   :  { %v221_v12 = vor.u32 1.1754944e-38, %v220_v8  ;;  %vm219_vm3 = vcmp.eq.f32.partialorder %v218_v10, 8.507059e+37 }
 0x284   :  { %v2586_v63 = vpop.eup %2585 }
 0x285   :  { %v210_v4 = vmul.f32 %v2586_v63, %v208_v62  ;;  %vm215_vm15 = vweird.f32 %v2586_v63 }
 0x286   :  { %vm216_vm1 = vmor %vm214_vm0, %vm215_vm15 }
 0x287   :  { %v211_v7 = vsub.f32 1.0, %v210_v4 }
 0x289   :  { %v212_v9 = vmul.f32 %v2586_v63, %v211_v7 }
 0x28b   :  { %v213_v11 = vadd.f32 %v2586_v63, %v212_v9 }
 0x28d   :  { %v217_v13 = vsel %vm216_vm1, %v2586_v63, %v213_v11 }
 0x28e   :  { %v222_v14 = vsel %vm219_vm3, %v221_v12, %v217_v13 }
 0x28f   :  { %v224_v15 = vmul.f32 2.0, %v222_v14 }
 0x291   :  { %v225_v16 = vmul.f32 %v224_v15, %v137_v42 }
 0x293   :  { %270 = vrot.lane.b32.xlu0 %v225_v16, %s2832_s17  ;;  %2467 = vmatmul.msk.f32.vlgmr.msra.gmra.mxu1 %vm42_vm10, %v225_v16 }
 0x294   :  { %653 = vmatpush.msra.mxu1 %v2879_v0 }
 0x296   :  { %654 = vmatpush.msra.mxu1 %v2884_v1 }
 0x298   :  { %655 = vmatpush.msra.mxu1 %v2891_v2 }
 0x29a   :  { %656 = vmatpush.msra.mxu1 %v2898_v3 }
 0x305   :  { %v271_v39 = vpop.permute.xlu0 %270 }
 0x310   :  { %v246_v23 = vpop.f32.mrf.mxu1 }
 0x311   :  { %v2468_v24 = vmul.f32 -1.442695, %v246_v23  ;;  %v340_v23 = vld [vmem:[%s3435_s0 + $0x9] sm:$0x1] }
 0x313   :  { %2587 = vpow2.f32 %v2468_v24 }
 0x319   :  { %v2588_v25 = vpop.eup %2587 }
 0x31a   :  { %v252_v26 = vadd.f32 1.0, %v2588_v25 }
 0x31c   :  { %2589 = vrcp.f32 %v252_v26  ;;  %v264_v30 = vand.u32 2147483648, %v252_v26  ;;  %v262_v32 = vand.u32 2147483647, %v252_v26  ;;  %vm258_vm6 = vweird.f32 %v252_v26 }
 0x31e   :  { %v265_v34 = vor.u32 1.1754944e-38, %v264_v30  ;;  %vm263_vm8 = vcmp.eq.f32.partialorder %v262_v32, 8.507059e+37 }
 0x322   :  { %v2590_v27 = vpop.eup %2589 }
 0x323   :  { %v254_v28 = vmul.f32 %v2590_v27, %v252_v26  ;;  %vm259_vm4 = vweird.f32 %v2590_v27 }
 0x324   :  { %vm260_vm7 = vmor %vm258_vm6, %vm259_vm4 }
 0x325   :  { %v255_v29 = vsub.f32 1.0, %v254_v28 }
 0x327   :  { %v256_v31 = vmul.f32 %v2590_v27, %v255_v29  ;;  %v339_v29 = vld [vmem:[%s3435_s0 + $0x1] sm:$0x1] }
 0x329   :  { %v257_v33 = vadd.f32 %v2590_v27, %v256_v31 }
 0x32b   :  { %v261_v35 = vsel %vm260_vm7, %v2590_v27, %v257_v33  ;;  %v388_v27 = vrot.slane %v340_v23, 7 }
 0x32c   :  { %v266_v36 = vsel %vm263_vm8, %v265_v34, %v261_v35 }
 0x32d   :  { %v268_v37 = vmul.f32 2.0, %v266_v36  ;;  %v389_v33 = vsel %vm89_vm2, %v388_v27, %v339_v29 }
 0x32f   :  { %v269_v38 = vmul.f32 %v268_v37, %v2947_v58 }
 0x331   :  { %v273_v40 = vsel %vm93_vm5, %v269_v38, %v271_v39 }
 0x332   :  { %2469 = vmatmul.msk.f32.vlgmr.msrb.gmra.mxu3 %vm277_vm9, %v273_v40 }
 0x333   :  { %835 = vmatpush.msrb.mxu3 %v2879_v0 }
 0x335   :  { %836 = vmatpush.msrb.mxu3 %v2884_v1 }
 0x337   :  { %837 = vmatpush.msrb.mxu3 %v2891_v2 }
 0x339   :  { %838 = vmatpush.msrb.mxu3 %v2898_v3 }
 0x3b5   :  { %v298_v42 = vpop.f32.mrf.mxu3 }
 0x3b6   :  { %v299_v43 = vadd.f32 %v3009_v41, %v298_v42 }
 0x3b8   :  { %v2470_v44 = vmul.f32 -1.442695, %v299_v43 }
 0x3ba   :  { %2591 = vpow2.f32 %v2470_v44 }
 0x3c0   :  { %v2592_v45 = vpop.eup %2591 }
 0x3c1   :  { %v304_v46 = vadd.f32 1.0, %v2592_v45 }
 0x3c3   :  { %2593 = vrcp.f32 %v304_v46  ;;  %v316_v50 = vand.u32 2147483648, %v304_v46  ;;  %v314_v52 = vand.u32 2147483647, %v304_v46  ;;  %vm310_vm12 = vweird.f32 %v304_v46 }
 0x3c5   :  { %v317_v54 = vor.u32 1.1754944e-38, %v316_v50  ;;  %vm315_vm14 = vcmp.eq.f32.partialorder %v314_v52, 8.507059e+37 }
 0x3c9   :  { %v2594_v47 = vpop.eup %2593 }
 0x3ca   :  { %v306_v48 = vmul.f32 %v2594_v47, %v304_v46  ;;  %vm311_vm11 = vweird.f32 %v2594_v47 }
 0x3cb   :  { %vm312_vm13 = vmor %vm310_vm12, %vm311_vm11 }
 0x3cc   :  { %v307_v49 = vsub.f32 1.0, %v306_v48 }
 0x3ce   :  { %v308_v51 = vmul.f32 %v2594_v47, %v307_v49 }
 0x3d0   :  { %v309_v53 = vadd.f32 %v2594_v47, %v308_v51 }
 0x3d2   :  { %v313_v55 = vsel %vm312_vm13, %v2594_v47, %v309_v53 }
 0x3d3   :  { %v318_v56 = vsel %vm315_vm14, %v317_v54, %v313_v55 }
 0x3d4   :  { %v320_v57 = vmul.f32 2.0, %v318_v56  ;;  %v322_v61 = vmul.f32 0.0, %v318_v56 }
 0x3d6   :  { %v2471_v58 = vadd.f32 -1.0, %v320_v57 }
 0x3d8   :  { %324 = vrot.lane.b32.xlu0 %v2471_v58, %s2833_s9 }
 0x44a   :  { %v325_v59 = vpop.permute.xlu0 %324 }
 0x44b   :  { %v327_v60 = vmul.f32 %v325_v59, %v318_v56 }
 0x44d   :  { %329 = vrot.lane.b32.xlu1 %v327_v60, %s2834_s10 }
 0x4bf   :  { %v330_v62 = vpop.permute.xlu1 %329 }
 0x4c0   :  { %v3014_v63 = vadd.f32 %v330_v62, %v322_v61 }
 0x4c2   :  { %2595 = vtanh.f32 %v3014_v63 }
 0x4c8   :  { %v2596_v4 = vpop.eup %2595 }
 0x4c9   :  { %335 = vrot.lane.b32.xlu1 %v2596_v4, %s2833_s9 }
 0x53b   :  { %v336_v7 = vpop.permute.xlu1 %335 }
 0x53c   :  { %v338_v8 = vmul.f32 %v336_v7, %v318_v56 }
 0x53e   :  { %342 = vrot.lane.b32.xlu2 %v338_v8, %s2834_s10 }
 0x598   :  { %v343_v9 = vpop.permute.xlu2 %342 }
 0x599   :  { %2472 = vmatmul.msk.f32.vlgmr.msrb.gmra.mxu0 %vm42_vm10, %v343_v9 }
 0x59a   :  { %704 = vmatpush.msrb.mxu0 %v2915_v5 }
 0x59c   :  { %705 = vmatpush.msrb.mxu0 %v2920_v6 }
 0x616   :  { %v363_v10 = vpop.f32.mrf.mxu0 }
 0x617   :  { %v2473_v11 = vmul.f32 -1.442695, %v363_v10 }
 0x619   :  { %2597 = vpow2.f32 %v2473_v11 }
 0x61f   :  { %v2598_v12 = vpop.eup %2597 }
 0x620   :  { %v369_v13 = vadd.f32 1.0, %v2598_v12 }
 0x622   :  { %2599 = vrcp.f32 %v369_v13  ;;  %v381_v24 = vand.u32 2147483648, %v369_v13  ;;  %v379_v26 = vand.u32 2147483647, %v369_v13  ;;  %vm375_vm0 = vweird.f32 %v369_v13 }
 0x624   :  { %v382_v30 = vor.u32 1.1754944e-38, %v381_v24  ;;  %vm380_vm3 = vcmp.eq.f32.partialorder %v379_v26, 8.507059e+37 }
 0x628   :  { %v2600_v14 = vpop.eup %2599 }
 0x629   :  { %v371_v15 = vmul.f32 %v2600_v14, %v369_v13  ;;  %vm376_vm15 = vweird.f32 %v2600_v14 }
 0x62a   :  { %vm377_vm1 = vmor %vm375_vm0, %vm376_vm15 }
 0x62b   :  { %v372_v16 = vsub.f32 1.0, %v371_v15 }
 0x62d   :  { %v373_v25 = vmul.f32 %v2600_v14, %v372_v16 }
 0x62f   :  { %v374_v28 = vadd.f32 %v2600_v14, %v373_v25 }
 0x631   :  { %v378_v31 = vsel %vm377_vm1, %v2600_v14, %v374_v28 }
 0x632   :  { %v383_v32 = vsel %vm380_vm3, %v382_v30, %v378_v31 }
 0x633   :  { %v385_v34 = vmul.f32 2.0, %v383_v32 }
 0x635   :  { %v391_v35 = vmul.f32 %v389_v33, %v385_v34 }
 0x637   :  { %2474 = vmatmul.msk.f32.vlgmr.msra.gmra.mxu2 %vm93_vm5, %v391_v35 }
 0x638   :  { %747 = vmatpush.msra.mxu2 %v2879_v0 }
 0x63a   :  { %748 = vmatpush.msra.mxu2 %v2884_v1 }
 0x63c   :  { %749 = vmatpush.msra.mxu2 %v2891_v2 }
 0x63e   :  { %750 = vmatpush.msra.mxu2 %v2898_v3 }
 0x6ba   :  { %v412_v36 = vpop.f32.mrf.mxu2 }
 0x6bb   :  { %v2475_v37 = vmul.f32 -1.442695, %v412_v36 }
 0x6bd   :  { %2601 = vpow2.f32 %v2475_v37 }
 0x6c3   :  { %v2602_v38 = vpop.eup %2601 }
 0x6c4   :  { %v418_v39 = vadd.f32 1.0, %v2602_v38 }
 0x6c6   :  { %2603 = vrcp.f32 %v418_v39  ;;  %v430_v44 = vand.u32 2147483648, %v418_v39  ;;  %v428_v46 = vand.u32 2147483647, %v418_v39  ;;  %vm424_vm6 = vweird.f32 %v418_v39 }
 0x6c8   :  { %v431_v48 = vor.u32 1.1754944e-38, %v430_v44  ;;  %vm429_vm8 = vcmp.eq.f32.partialorder %v428_v46, 8.507059e+37 }
 0x6cc   :  { %v2604_v40 = vpop.eup %2603 }
 0x6cd   :  { %v420_v42 = vmul.f32 %v2604_v40, %v418_v39  ;;  %vm425_vm4 = vweird.f32 %v2604_v40 }
 0x6ce   :  { %vm426_vm7 = vmor %vm424_vm6, %vm425_vm4 }
 0x6cf   :  { %v421_v43 = vsub.f32 1.0, %v420_v42 }
 0x6d1   :  { %v422_v45 = vmul.f32 %v2604_v40, %v421_v43 }
 0x6d3   :  { %v423_v47 = vadd.f32 %v2604_v40, %v422_v45 }
 0x6d5   :  { %v427_v49 = vsel %vm426_vm7, %v2604_v40, %v423_v47 }
 0x6d6   :  { %v432_v50 = vsel %vm429_vm8, %v431_v48, %v427_v49 }
 0x6d7   :  { %v434_v51 = vmul.f32 2.0, %v432_v50 }
 0x6d9   :  { %v436_v52 = vmul.f32 %v434_v51, %v343_v9 }
 0x6db   :  { %2476 = vmatmul.msk.f32.vlgmr.msrb.gmra.mxu1 %vm42_vm10, %v436_v52 }
 0x6dc   :  { %793 = vmatpush.msrb.mxu1 %v2915_v5 }
 0x6de   :  { %794 = vmatpush.msrb.mxu1 %v2920_v6 }
 0x758   :  { %v457_v53 = vpop.f32.mrf.mxu1 }
 0x759   :  { %v2477_v54 = vmul.f32 -1.442695, %v457_v53 }
 0x75b   :  { %2605 = vpow2.f32 %v2477_v54 }
 0x761   :  { %v2606_v55 = vpop.eup %2605 }
 0x762   :  { %v463_v56 = vadd.f32 1.0, %v2606_v55 }
 0x764   :  { %2607 = vrcp.f32 %v463_v56  ;;  %v475_v60 = vand.u32 2147483648, %v463_v56  ;;  %v473_v62 = vand.u32 2147483647, %v463_v56  ;;  %vm469_vm12 = vweird.f32 %v463_v56 }
 0x766   :  { %v476_v7 = vor.u32 1.1754944e-38, %v475_v60  ;;  %vm474_vm14 = vcmp.eq.f32.partialorder %v473_v62, 8.507059e+37 }
 0x76a   :  { %v2608_v57 = vpop.eup %2607 }
 0x76b   :  { %v465_v58 = vmul.f32 %v2608_v57, %v463_v56  ;;  %vm470_vm11 = vweird.f32 %v2608_v57 }
 0x76c   :  { %vm471_vm13 = vmor %vm469_vm12, %vm470_vm11 }
 0x76d   :  { %v466_v59 = vsub.f32 1.0, %v465_v58 }
 0x76f   :  { %v467_v61 = vmul.f32 %v2608_v57, %v466_v59 }
 0x771   :  { %v468_v4 = vadd.f32 %v2608_v57, %v467_v61 }
 0x773   :  { %v472_v8 = vsel %vm471_vm13, %v2608_v57, %v468_v4 }
 0x774   :  { %v477_v9 = vsel %vm474_vm14, %v476_v7, %v472_v8 }
 0x775   :  { %v479_v10 = vmul.f32 2.0, %v477_v9 }
 0x777   :  { %v480_v11 = vmul.f32 %v479_v10, %v391_v35 }
 0x779   :  { %2478 = vmatmul.msk.f32.vlgmr.msra.gmra.mxu0 %vm93_vm5, %v480_v11 }
 0x77a   :  { %881 = vmatpush.msra.mxu0 %v2960_v17 }
 0x77c   :  { %882 = vmatpush.msra.mxu0 %v2966_v18 }
 0x77e   :  { %883 = vmatpush.msra.mxu0 %v2971_v19 }
 0x780   :  { %884 = vmatpush.msra.mxu0 %v2977_v20 }
 0x782   :  { %885 = vmatpush.msra.mxu0 %v2983_v21 }
 0x784   :  { %886 = vmatpush.msra.mxu0 %v2989_v22 }
 0x7f6   :  { %v501_v12 = vpop.f32.mrf.mxu0 }
 0x7f7   :  { %v2479_v13 = vmul.f32 -1.442695, %v501_v12 }
 0x7f9   :  { %2609 = vpow2.f32 %v2479_v13 }
 0x7ff   :  { %v2610_v14 = vpop.eup %2609 }
 0x800   :  { %v507_v15 = vadd.f32 1.0, %v2610_v14 }
 0x802   :  { %2611 = vrcp.f32 %v507_v15  ;;  %v519_v25 = vand.u32 2147483648, %v507_v15  ;;  %v517_v27 = vand.u32 2147483647, %v507_v15  ;;  %vm513_vm0 = vweird.f32 %v507_v15 }
 0x804   :  { %v520_v29 = vor.u32 1.1754944e-38, %v519_v25  ;;  %vm518_vm3 = vcmp.eq.f32.partialorder %v517_v27, 8.507059e+37 }
 0x808   :  { %v2612_v16 = vpop.eup %2611 }
 0x809   :  { %v509_v23 = vmul.f32 %v2612_v16, %v507_v15  ;;  %vm514_vm15 = vweird.f32 %v2612_v16 }
 0x80a   :  { %vm515_vm1 = vmor %vm513_vm0, %vm514_vm15 }
 0x80b   :  { %v510_v24 = vsub.f32 1.0, %v509_v23 }
 0x80d   :  { %v511_v26 = vmul.f32 %v2612_v16, %v510_v24 }
 0x80f   :  { %v512_v28 = vadd.f32 %v2612_v16, %v511_v26 }
 0x811   :  { %v516_v30 = vsel %vm515_vm1, %v2612_v16, %v512_v28 }
 0x812   :  { %v521_v31 = vsel %vm518_vm3, %v520_v29, %v516_v30 }
 0x813   :  { %v523_v32 = vmul.f32 2.0, %v521_v31 }
 0x815   :  { %v524_v33 = vmul.f32 %v523_v32, %v436_v52 }
 0x817   :  { %569 = vrot.lane.b32.xlu2 %v524_v33, %s2832_s17  ;;  %2480 = vmatmul.msk.f32.vlgmr.msrb.gmra.mxu2 %vm42_vm10, %v524_v33 }
 0x818   :  { %948 = vmatpush.msrb.mxu2 %v2879_v0 }
 0x81a   :  { %949 = vmatpush.msrb.mxu2 %v2884_v1 }
 0x81c   :  { %950 = vmatpush.msrb.mxu2 %v2891_v2 }
 0x81e   :  { %951 = vmatpush.msrb.mxu2 %v2898_v3 }
 0x871   :  { %v570_v51 = vpop.permute.xlu2 %569 }
 0x89a   :  { %v545_v34 = vpop.f32.mrf.mxu2 }
 0x89b   :  { %v2481_v35 = vmul.f32 -1.442695, %v545_v34  ;;  %v635_v34 = vld [vmem:[%s3435_s0 + $0xa] sm:$0x1] }
 0x89d   :  { %2613 = vpow2.f32 %v2481_v35 }
 0x8a3   :  { %v2614_v36 = vpop.eup %2613 }
 0x8a4   :  { %v551_v37 = vadd.f32 1.0, %v2614_v36 }
 0x8a6   :  { %2615 = vrcp.f32 %v551_v37  ;;  %v563_v42 = vand.u32 2147483648, %v551_v37  ;;  %v561_v44 = vand.u32 2147483647, %v551_v37  ;;  %vm557_vm6 = vweird.f32 %v551_v37 }
 0x8a8   :  { %v564_v46 = vor.u32 1.1754944e-38, %v563_v42  ;;  %vm562_vm8 = vcmp.eq.f32.partialorder %v561_v44, 8.507059e+37 }
 0x8ac   :  { %v2616_v38 = vpop.eup %2615 }
 0x8ad   :  { %v553_v39 = vmul.f32 %v2616_v38, %v551_v37  ;;  %vm558_vm4 = vweird.f32 %v2616_v38 }
 0x8ae   :  { %vm559_vm7 = vmor %vm557_vm6, %vm558_vm4 }
 0x8af   :  { %v554_v40 = vsub.f32 1.0, %v553_v39 }
 0x8b1   :  { %v555_v43 = vmul.f32 %v2616_v38, %v554_v40  ;;  %v634_v40 = vld [vmem:[%s3435_s0 + $0x2] sm:$0x1] }
 0x8b3   :  { %v556_v45 = vadd.f32 %v2616_v38, %v555_v43 }
 0x8b5   :  { %v560_v47 = vsel %vm559_vm7, %v2616_v38, %v556_v45  ;;  %v683_v38 = vrot.slane %v635_v34, 7  ;;  %v3101_v34 = vld [vmem:[%s3438_s3 + $0x10] sm:$0xff] }
 0x8b6   :  { %v565_v48 = vsel %vm562_vm8, %v564_v46, %v560_v47 }
 0x8b7   :  { %v567_v49 = vmul.f32 2.0, %v565_v48  ;;  %v684_v45 = vsel %vm89_vm2, %v683_v38, %v634_v40 }
 0x8b9   :  { %v568_v50 = vmul.f32 %v567_v49, %v480_v11 }
 0x8bb   :  { %v572_v52 = vsel %vm93_vm5, %v568_v50, %v570_v51 }
 0x8bc   :  { %2482 = vmatmul.msk.f32.vlgmr.msra.gmra.mxu3 %vm277_vm9, %v572_v52 }
 0x8bd   :  { %1042 = vmatpush.msra.mxu3 %v2879_v0 }
 0x8bf   :  { %1043 = vmatpush.msra.mxu3 %v2884_v1 }
 0x8c1   :  { %1044 = vmatpush.msra.mxu3 %v2891_v2 }
 0x8c3   :  { %1045 = vmatpush.msra.mxu3 %v2898_v3 }
 0x93f   :  { %v593_v53 = vpop.f32.mrf.mxu3 }
 0x940   :  { %v594_v54 = vadd.f32 %v3009_v41, %v593_v53 }
 0x942   :  { %v2483_v55 = vmul.f32 -1.442695, %v594_v54 }
 0x944   :  { %2617 = vpow2.f32 %v2483_v55 }
 0x94a   :  { %v2618_v56 = vpop.eup %2617 }
 0x94b   :  { %v599_v57 = vadd.f32 1.0, %v2618_v56 }
 0x94d   :  { %2619 = vrcp.f32 %v599_v57  ;;  %v611_v61 = vand.u32 2147483648, %v599_v57  ;;  %v609_v4 = vand.u32 2147483647, %v599_v57  ;;  %vm605_vm12 = vweird.f32 %v599_v57 }
 0x94f   :  { %v612_v8 = vor.u32 1.1754944e-38, %v611_v61  ;;  %vm610_vm14 = vcmp.eq.f32.partialorder %v609_v4, 8.507059e+37 }
 0x953   :  { %v2620_v58 = vpop.eup %2619 }
 0x954   :  { %v601_v59 = vmul.f32 %v2620_v58, %v599_v57  ;;  %vm606_vm11 = vweird.f32 %v2620_v58 }
 0x955   :  { %vm607_vm13 = vmor %vm605_vm12, %vm606_vm11 }
 0x956   :  { %v602_v60 = vsub.f32 1.0, %v601_v59 }
 0x958   :  { %v603_v62 = vmul.f32 %v2620_v58, %v602_v60 }
 0x95a   :  { %v604_v7 = vadd.f32 %v2620_v58, %v603_v62 }
 0x95c   :  { %v608_v9 = vsel %vm607_vm13, %v2620_v58, %v604_v7 }
 0x95d   :  { %v613_v10 = vsel %vm610_vm14, %v612_v8, %v608_v9 }
 0x95e   :  { %v615_v11 = vmul.f32 2.0, %v613_v10  ;;  %v617_v15 = vmul.f32 %v613_v10, %v3014_v63 }
 0x960   :  { %v2484_v12 = vadd.f32 -1.0, %v615_v11 }
 0x962   :  { %619 = vrot.lane.b32.xlu0 %v2484_v12, %s2833_s9 }
 0x9d4   :  { %v620_v13 = vpop.permute.xlu0 %619 }
 0x9d5   :  { %v622_v14 = vmul.f32 %v620_v13, %v613_v10 }
 0x9d7   :  { %624 = vrot.lane.b32.xlu1 %v622_v14, %s2834_s10 }
 0xa49   :  { %v625_v16 = vpop.permute.xlu1 %624 }
 0xa4a   :  { %v3060_v23 = vadd.f32 %v625_v16, %v617_v15 }
 0xa4c   :  { %2621 = vtanh.f32 %v3060_v23 }
 0xa52   :  { %v2622_v24 = vpop.eup %2621 }
 0xa53   :  { %630 = vrot.lane.b32.xlu2 %v2622_v24, %s2833_s9 }
 0xaad   :  { %v631_v25 = vpop.permute.xlu2 %630 }
 0xaae   :  { %v633_v26 = vmul.f32 %v631_v25, %v613_v10 }
 0xab0   :  { %637 = vrot.lane.b32.xlu0 %v633_v26, %s2834_s10 }
 0xb22   :  { %v638_v27 = vpop.permute.xlu0 %637 }
 0xb23   :  { %2485 = vmatmul.msk.f32.vlgmr.msra.gmra.mxu1 %vm42_vm10, %v638_v27 }
 0xb24   :  { %999 = vmatpush.msra.mxu1 %v2915_v5 }
 0xb26   :  { %1000 = vmatpush.msra.mxu1 %v2920_v6 }
 0xba0   :  { %v658_v63 = vpop.f32.mrf.mxu1 }
 0xba1   :  { %v2486_v28 = vmul.f32 -1.442695, %v658_v63 }
 0xba3   :  { %2623 = vpow2.f32 %v2486_v28 }
 0xba9   :  { %v2624_v29 = vpop.eup %2623 }
 0xbaa   :  { %v664_v30 = vadd.f32 1.0, %v2624_v29 }
 0xbac   :  { %2625 = vrcp.f32 %v664_v30  ;;  %v676_v35 = vand.u32 2147483648, %v664_v30  ;;  %v674_v37 = vand.u32 2147483647, %v664_v30  ;;  %vm670_vm0 = vweird.f32 %v664_v30 }
 0xbae   :  { %v677_v42 = vor.u32 1.1754944e-38, %v676_v35  ;;  %vm675_vm3 = vcmp.eq.f32.partialorder %v674_v37, 8.507059e+37  ;;  %v3107_v35 = vld [vmem:[%s3438_s3 + $0x8] sm:$0xff] }
 0xbb2   :  { %v2626_v31 = vpop.eup %2625 }
 0xbb3   :  { %v666_v32 = vmul.f32 %v2626_v31, %v664_v30  ;;  %vm671_vm15 = vweird.f32 %v2626_v31 }
 0xbb4   :  { %vm672_vm1 = vmor %vm670_vm0, %vm671_vm15 }
 0xbb5   :  { %v667_v33 = vsub.f32 1.0, %v666_v32 }
 0xbb7   :  { %v668_v36 = vmul.f32 %v2626_v31, %v667_v33  ;;  %v3095_v33 = vld [vmem:[%s3438_s3 + $0x18] sm:$0xff] }
 0xbb9   :  { %v669_v39 = vadd.f32 %v2626_v31, %v668_v36  ;;  %v3113_v36 = vld [vmem:[%s3438_s3] sm:$0xff] }
 0xbbb   :  { %v673_v43 = vsel %vm672_vm1, %v2626_v31, %v669_v39 }
 0xbbc   :  { %v678_v44 = vsel %vm675_vm3, %v677_v42, %v673_v43 }
 0xbbd   :  { %v680_v46 = vmul.f32 2.0, %v678_v44 }
 0xbbf   :  { %v686_v47 = vmul.f32 %v684_v45, %v680_v46 }
 0xbc1   :  { %2487 = vmatmul.msk.f32.vlgmr.msrb.gmra.mxu0 %vm93_vm5, %v686_v47 }
 0xbc2   :  { %1130 = vmatpush.msrb.mxu0 %v2879_v0 }
 0xbc4   :  { %1131 = vmatpush.msrb.mxu0 %v2884_v1 }
 0xbc6   :  { %1132 = vmatpush.msrb.mxu0 %v2891_v2 }
 0xbc8   :  { %1133 = vmatpush.msrb.mxu0 %v2898_v3 }
 0xc3e   :  { %v707_v48 = vpop.f32.mrf.mxu0 }
 0xc3f   :  { %v2488_v49 = vmul.f32 -1.442695, %v707_v48 }
 0xc41   :  { %2627 = vpow2.f32 %v2488_v49 }
 0xc47   :  { %v2628_v50 = vpop.eup %2627 }
 0xc48   :  { %v713_v51 = vadd.f32 1.0, %v2628_v50 }
 0xc4a   :  { %2629 = vrcp.f32 %v713_v51  ;;  %v725_v55 = vand.u32 2147483648, %v713_v51  ;;  %v723_v57 = vand.u32 2147483647, %v713_v51  ;;  %vm719_vm6 = vweird.f32 %v713_v51 }
 0xc4c   :  { %v726_v1 = vor.u32 1.1754944e-38, %v725_v55  ;;  %vm724_vm8 = vcmp.eq.f32.partialorder %v723_v57, 8.507059e+37 }
 0xc50   :  { %v2630_v52 = vpop.eup %2629 }
 0xc51   :  { %v715_v53 = vmul.f32 %v2630_v52, %v713_v51  ;;  %vm720_vm4 = vweird.f32 %v2630_v52 }
 0xc52   :  { %vm721_vm7 = vmor %vm719_vm6, %vm720_vm4 }
 0xc53   :  { %v716_v54 = vsub.f32 1.0, %v715_v53 }
 0xc55   :  { %v717_v56 = vmul.f32 %v2630_v52, %v716_v54 }
 0xc57   :  { %v718_v0 = vadd.f32 %v2630_v52, %v717_v56 }
 0xc59   :  { %v722_v2 = vsel %vm721_vm7, %v2630_v52, %v718_v0 }
 0xc5a   :  { %v727_v3 = vsel %vm724_vm8, %v726_v1, %v722_v2 }
 0xc5b   :  { %v729_v58 = vmul.f32 2.0, %v727_v3 }
 0xc5d   :  { %v731_v59 = vmul.f32 %v729_v58, %v638_v27 }
 0xc5f   :  { %2489 = vmatmul.msk.f32.vlgmr.msra.gmra.mxu2 %vm42_vm10, %v731_v59 }
 0xc60   :  { %1088 = vmatpush.msra.mxu2 %v2915_v5 }
 0xc62   :  { %1089 = vmatpush.msra.mxu2 %v2920_v6 }
 0xce2   :  { %v752_v60 = vpop.f32.mrf.mxu2 }
 0xce3   :  { %v2490_v61 = vmul.f32 -1.442695, %v752_v60 }
 0xce5   :  { %2631 = vpow2.f32 %v2490_v61 }
 0xceb   :  { %v2632_v62 = vpop.eup %2631 }
 0xcec   :  { %v758_v4 = vadd.f32 1.0, %v2632_v62 }
 0xcee   :  { %2633 = vrcp.f32 %v758_v4  ;;  %v770_v10 = vand.u32 2147483648, %v758_v4  ;;  %v768_v12 = vand.u32 2147483647, %v758_v4  ;;  %vm764_vm12 = vweird.f32 %v758_v4 }
 0xcf0   :  { %v771_v14 = vor.u32 1.1754944e-38, %v770_v10  ;;  %vm769_vm14 = vcmp.eq.f32.partialorder %v768_v12, 8.507059e+37 }
 0xcf4   :  { %v2634_v7 = vpop.eup %2633 }
 0xcf5   :  { %v760_v8 = vmul.f32 %v2634_v7, %v758_v4  ;;  %vm765_vm11 = vweird.f32 %v2634_v7 }
 0xcf6   :  { %vm766_vm13 = vmor %vm764_vm12, %vm765_vm11 }
 0xcf7   :  { %v761_v9 = vsub.f32 1.0, %v760_v8 }
 0xcf9   :  { %v762_v11 = vmul.f32 %v2634_v7, %v761_v9 }
 0xcfb   :  { %v763_v13 = vadd.f32 %v2634_v7, %v762_v11 }
 0xcfd   :  { %v767_v5 = vsel %vm766_vm13, %v2634_v7, %v763_v13 }
 0xcfe   :  { %v772_v6 = vsel %vm769_vm14, %v771_v14, %v767_v5 }
 0xcff   :  { %v774_v15 = vmul.f32 2.0, %v772_v6 }
 0xd01   :  { %v775_v16 = vmul.f32 %v774_v15, %v686_v47 }
 0xd03   :  { %2491 = vmatmul.msk.f32.vlgmr.msrb.gmra.mxu1 %vm93_vm5, %v775_v16 }
 0xd04   :  { %1176 = vmatpush.msrb.mxu1 %v2960_v17 }
 0xd06   :  { %1177 = vmatpush.msrb.mxu1 %v2966_v18 }
 0xd08   :  { %1178 = vmatpush.msrb.mxu1 %v2971_v19 }
 0xd0a   :  { %1179 = vmatpush.msrb.mxu1 %v2977_v20 }
 0xd0c   :  { %1180 = vmatpush.msrb.mxu1 %v2983_v21 }
 0xd0e   :  { %1181 = vmatpush.msrb.mxu1 %v2989_v22 }
 0xd80   :  { %v796_v24 = vpop.f32.mrf.mxu1 }
 0xd81   :  { %v2492_v25 = vmul.f32 -1.442695, %v796_v24 }
 0xd83   :  { %2635 = vpow2.f32 %v2492_v25  ;;  %v3135_v25 = vld [vmem:[%s3439_s4 + $0x8] sm:$0xff] }
 0xd89   :  { %v2636_v26 = vpop.eup %2635 }
 0xd8a   :  { %v802_v27 = vadd.f32 1.0, %v2636_v26 }
 0xd8c   :  { %2637 = vrcp.f32 %v802_v27  ;;  %v814_v17 = vand.u32 2147483648, %v802_v27  ;;  %v812_v18 = vand.u32 2147483647, %v802_v27  ;;  %vm808_vm0 = vweird.f32 %v802_v27 }
 0xd8e   :  { %v815_v20 = vor.u32 1.1754944e-38, %v814_v17  ;;  %vm813_vm3 = vcmp.eq.f32.partialorder %v812_v18, 8.507059e+37  ;;  %v930_v18 = vld [vmem:[%s3435_s0 + $0xb] sm:$0x1] }
 0xd92   :  { %v2638_v63 = vpop.eup %2637 }
 0xd93   :  { %v804_v28 = vmul.f32 %v2638_v63, %v802_v27  ;;  %vm809_vm15 = vweird.f32 %v2638_v63 }
 0xd94   :  { %vm810_vm1 = vmor %vm808_vm0, %vm809_vm15 }
 0xd95   :  { %v805_v29 = vsub.f32 1.0, %v804_v28 }
 0xd97   :  { %v806_v30 = vmul.f32 %v2638_v63, %v805_v29 }
 0xd99   :  { %v807_v19 = vadd.f32 %v2638_v63, %v806_v30 }
 0xd9b   :  { %v811_v21 = vsel %vm810_vm1, %v2638_v63, %v807_v19 }
 0xd9c   :  { %v816_v22 = vsel %vm813_vm3, %v815_v20, %v811_v21 }
 0xd9d   :  { %v818_v31 = vmul.f32 2.0, %v816_v22  ;;  %v978_v22 = vrot.slane %v930_v18, 7 }
 0xd9f   :  { %v819_v32 = vmul.f32 %v818_v31, %v731_v59 }
 0xda1   :  { %864 = vrot.lane.b32.xlu1 %v819_v32, %s2832_s17  ;;  %2493 = vmatmul.msk.f32.vlgmr.msrb.gmra.mxu3 %vm42_vm10, %v819_v32  ;;  %v929_v32 = vld [vmem:[%s3435_s0 + $0x3] sm:$0x1] }
 0xda2   :  { %1243 = vmatpush.msrb.mxu3 %v3095_v33 }
 0xda4   :  { %1244 = vmatpush.msrb.mxu3 %v3101_v34 }
 0xda6   :  { %1245 = vmatpush.msrb.mxu3 %v3107_v35 }
 0xda8   :  { %1246 = vmatpush.msrb.mxu3 %v3113_v36 }
 0xe13   :  { %v865_v54 = vpop.permute.xlu1 %864 }
 0xe24   :  { %v840_v37 = vpop.f32.mrf.mxu3 }
 0xe25   :  { %v2494_v38 = vmul.f32 -1.442695, %v840_v37 }
 0xe27   :  { %2639 = vpow2.f32 %v2494_v38 }
 0xe2d   :  { %v2640_v39 = vpop.eup %2639 }
 0xe2e   :  { %v846_v40 = vadd.f32 1.0, %v2640_v39 }
 0xe30   :  { %2641 = vrcp.f32 %v846_v40  ;;  %v858_v45 = vand.u32 2147483648, %v846_v40  ;;  %v856_v47 = vand.u32 2147483647, %v846_v40  ;;  %vm852_vm6 = vweird.f32 %v846_v40 }
 0xe32   :  { %v859_v49 = vor.u32 1.1754944e-38, %v858_v45  ;;  %vm857_vm8 = vcmp.eq.f32.partialorder %v856_v47, 8.507059e+37 }
 0xe36   :  { %v2642_v42 = vpop.eup %2641 }
 0xe37   :  { %v848_v43 = vmul.f32 %v2642_v42, %v846_v40  ;;  %vm853_vm4 = vweird.f32 %v2642_v42  ;;  %v979_v40 = vsel %vm89_vm2, %v978_v22, %v929_v32 }
 0xe38   :  { %vm854_vm7 = vmor %vm852_vm6, %vm853_vm4 }
 0xe39   :  { %v849_v44 = vsub.f32 1.0, %v848_v43 }
 0xe3b   :  { %v850_v46 = vmul.f32 %v2642_v42, %v849_v44 }
 0xe3d   :  { %v851_v48 = vadd.f32 %v2642_v42, %v850_v46 }
 0xe3f   :  { %v855_v50 = vsel %vm854_vm7, %v2642_v42, %v851_v48 }
 0xe40   :  { %v860_v51 = vsel %vm857_vm8, %v859_v49, %v855_v50 }
 0xe41   :  { %v862_v52 = vmul.f32 2.0, %v860_v51 }
 0xe43   :  { %v863_v53 = vmul.f32 %v862_v52, %v775_v16 }
 0xe45   :  { %v867_v55 = vsel %vm93_vm5, %v863_v53, %v865_v54 }
 0xe46   :  { %2495 = vmatmul.msk.f32.vlgmr.msra.gmra.mxu0 %vm277_vm9, %v867_v55 }
 0xe47   :  { %1337 = vmatpush.msra.mxu0 %v3095_v33 }
 0xe49   :  { %1338 = vmatpush.msra.mxu0 %v3101_v34 }
 0xe4b   :  { %1339 = vmatpush.msra.mxu0 %v3107_v35 }
 0xe4d   :  { %1340 = vmatpush.msra.mxu0 %v3113_v36 }
 0xec3   :  { %v888_v56 = vpop.f32.mrf.mxu0 }
 0xec4   :  { %v889_v57 = vadd.f32 %v3009_v41, %v888_v56 }
 0xec6   :  { %v2496_v0 = vmul.f32 -1.442695, %v889_v57 }
 0xec8   :  { %2643 = vpow2.f32 %v2496_v0 }
 0xece   :  { %v2644_v1 = vpop.eup %2643 }
 0xecf   :  { %v894_v2 = vadd.f32 1.0, %v2644_v1 }
 0xed1   :  { %2645 = vrcp.f32 %v894_v2  ;;  %v906_v60 = vand.u32 2147483648, %v894_v2  ;;  %v904_v62 = vand.u32 2147483647, %v894_v2  ;;  %vm900_vm12 = vweird.f32 %v894_v2 }
 0xed3   :  { %v907_v7 = vor.u32 1.1754944e-38, %v906_v60  ;;  %vm905_vm14 = vcmp.eq.f32.partialorder %v904_v62, 8.507059e+37 }
 0xed7   :  { %v2646_v3 = vpop.eup %2645 }
 0xed8   :  { %v896_v58 = vmul.f32 %v2646_v3, %v894_v2  ;;  %vm901_vm11 = vweird.f32 %v2646_v3 }
 0xed9   :  { %vm902_vm13 = vmor %vm900_vm12, %vm901_vm11 }
 0xeda   :  { %v897_v59 = vsub.f32 1.0, %v896_v58 }
 0xedc   :  { %v898_v61 = vmul.f32 %v2646_v3, %v897_v59 }
 0xede   :  { %v899_v4 = vadd.f32 %v2646_v3, %v898_v61 }
 0xee0   :  { %v903_v8 = vsel %vm902_vm13, %v2646_v3, %v899_v4 }
 0xee1   :  { %v908_v9 = vsel %vm905_vm14, %v907_v7, %v903_v8 }
 0xee2   :  { %v910_v41 = vmul.f32 2.0, %v908_v9  ;;  %v912_v13 = vmul.f32 %v908_v9, %v3060_v23  ;;  %v3141_v23 = vld [vmem:[%s3439_s4] sm:$0xff] }
 0xee4   :  { %v2497_v10 = vadd.f32 -1.0, %v910_v41 }
 0xee6   :  { %914 = vrot.lane.b32.xlu2 %v2497_v10, %s2833_s9 }
 0xf40   :  { %v915_v11 = vpop.permute.xlu2 %914 }
 0xf41   :  { %v917_v12 = vmul.f32 %v915_v11, %v908_v9 }
 0xf43   :  { %919 = vrot.lane.b32.xlu0 %v917_v12, %s2834_s10 }
 0xfb5   :  { %v920_v14 = vpop.permute.xlu0 %919 }
 0xfb6   :  { %v3126_v5 = vadd.f32 %v920_v14, %v912_v13  ;;  %v3166_v14 = vld [vmem:[%s3436_s1 + $0x28] sm:$0xff] }
 0xfb8   :  { %2647 = vtanh.f32 %v3126_v5 }
 0xfbe   :  { %v2648_v6 = vpop.eup %2647 }
 0xfbf   :  { %925 = vrot.lane.b32.xlu1 %v2648_v6, %s2833_s9  ;;  %v3172_v6 = vld [vmem:[%s3436_s1 + $0x20] sm:$0xff] }
0x1031   :  { %v926_v15 = vpop.permute.xlu1 %925 }
0x1032   :  { %v928_v16 = vmul.f32 %v926_v15, %v908_v9  ;;  %v3178_v15 = vld [vmem:[%s3436_s1 + $0x18] sm:$0xff] }
0x1034   :  { %932 = vrot.lane.b32.xlu2 %v928_v16, %s2834_s10  ;;  %v3184_v16 = vld [vmem:[%s3436_s1 + $0x10] sm:$0xff] }
0x108e   :  { %v933_v24 = vpop.permute.xlu2 %932 }
0x108f   :  { %2498 = vmatmul.msk.f32.vlgmr.msrb.gmra.mxu2 %vm42_vm10, %v933_v24 }
0x1090   :  { %1294 = vmatpush.msrb.mxu2 %v3135_v25 }
0x1092   :  { %1295 = vmatpush.msrb.mxu2 %v3141_v23 }
0x1112   :  { %v953_v26 = vpop.f32.mrf.mxu2 }
0x1113   :  { %v2499_v27 = vmul.f32 -1.442695, %v953_v26  ;;  %v3196_v26 = vld [vmem:[%s3436_s1] sm:$0xff] }
0x1115   :  { %2649 = vpow2.f32 %v2499_v27 }
0x111b   :  { %v2650_v63 = vpop.eup %2649 }
0x111c   :  { %v959_v28 = vadd.f32 1.0, %v2650_v63 }
0x111e   :  { %2651 = vrcp.f32 %v959_v28  ;;  %v971_v19 = vand.u32 2147483648, %v959_v28  ;;  %v969_v21 = vand.u32 2147483647, %v959_v28  ;;  %vm965_vm0 = vweird.f32 %v959_v28 }
0x1120   :  { %v972_v37 = vor.u32 1.1754944e-38, %v971_v19  ;;  %vm970_vm3 = vcmp.eq.f32.partialorder %v969_v21, 8.507059e+37 }
0x1124   :  { %v2652_v29 = vpop.eup %2651 }
0x1125   :  { %v961_v17 = vmul.f32 %v2652_v29, %v959_v28  ;;  %vm966_vm15 = vweird.f32 %v2652_v29 }
0x1126   :  { %vm967_vm1 = vmor %vm965_vm0, %vm966_vm15 }
0x1127   :  { %v962_v30 = vsub.f32 1.0, %v961_v17 }
0x1129   :  { %v963_v20 = vmul.f32 %v2652_v29, %v962_v30 }
0x112b   :  { %v964_v31 = vadd.f32 %v2652_v29, %v963_v20 }
0x112d   :  { %v968_v38 = vsel %vm967_vm1, %v2652_v29, %v964_v31 }
0x112e   :  { %v973_v39 = vsel %vm970_vm3, %v972_v37, %v968_v38 }
0x112f   :  { %v975_v42 = vmul.f32 2.0, %v973_v39 }
0x1131   :  { %v981_v43 = vmul.f32 %v979_v40, %v975_v42 }
0x1133   :  { %2500 = vmatmul.msk.f32.vlgmr.msra.gmra.mxu1 %vm93_vm5, %v981_v43 }
0x1134   :  { %1425 = vmatpush.msra.mxu1 %v3095_v33 }
0x1136   :  { %1426 = vmatpush.msra.mxu1 %v3101_v34 }
0x1138   :  { %1427 = vmatpush.msra.mxu1 %v3107_v35 }
0x113a   :  { %1428 = vmatpush.msra.mxu1 %v3113_v36 }
0x11b0   :  { %v1002_v44 = vpop.f32.mrf.mxu1 }
0x11b1   :  { %v2501_v45 = vmul.f32 -1.442695, %v1002_v44 }
0x11b3   :  { %2653 = vpow2.f32 %v2501_v45 }
0x11b9   :  { %v2654_v46 = vpop.eup %2653 }
0x11ba   :  { %v1008_v47 = vadd.f32 1.0, %v2654_v46 }
0x11bc   :  { %2655 = vrcp.f32 %v1008_v47  ;;  %v1020_v51 = vand.u32 2147483648, %v1008_v47  ;;  %v1018_v53 = vand.u32 2147483647, %v1008_v47  ;;  %vm1014_vm6 = vweird.f32 %v1008_v47 }
0x11be   :  { %v1021_v55 = vor.u32 1.1754944e-38, %v1020_v51  ;;  %vm1019_vm8 = vcmp.eq.f32.partialorder %v1018_v53, 8.507059e+37 }
0x11c2   :  { %v2656_v48 = vpop.eup %2655 }
0x11c3   :  { %v1010_v49 = vmul.f32 %v2656_v48, %v1008_v47  ;;  %vm1015_vm4 = vweird.f32 %v2656_v48 }
0x11c4   :  { %vm1016_vm7 = vmor %vm1014_vm6, %vm1015_vm4 }
0x11c5   :  { %v1011_v50 = vsub.f32 1.0, %v1010_v49 }
0x11c7   :  { %v1012_v52 = vmul.f32 %v2656_v48, %v1011_v50 }
0x11c9   :  { %v1013_v54 = vadd.f32 %v2656_v48, %v1012_v52 }
0x11cb   :  { %v1017_v56 = vsel %vm1016_vm7, %v2656_v48, %v1013_v54 }
0x11cc   :  { %v1022_v57 = vsel %vm1019_vm8, %v1021_v55, %v1017_v56 }
0x11cd   :  { %v1024_v0 = vmul.f32 2.0, %v1022_v57 }
0x11cf   :  { %v1026_v1 = vmul.f32 %v1024_v0, %v933_v24  ;;  %v3190_v24 = vld [vmem:[%s3436_s1 + $0x8] sm:$0xff] }
0x11d1   :  { %2502 = vmatmul.msk.f32.vlgmr.msra.gmra.mxu3 %vm42_vm10, %v1026_v1 }
0x11d2   :  { %1383 = vmatpush.msra.mxu3 %v3135_v25 }
0x11d4   :  { %1384 = vmatpush.msra.mxu3 %v3141_v23 }
0x1254   :  { %v1047_v2 = vpop.f32.mrf.mxu3 }
0x1255   :  { %v2503_v3 = vmul.f32 -1.442695, %v1047_v2  ;;  %v3215_v2 = vld [vmem:[%s3437_s2] ss:$0 sm:$0xff] }
0x1257   :  { %2657 = vpow2.f32 %v2503_v3 }
0x125d   :  { %v2658_v58 = vpop.eup %2657 }
0x125e   :  { %v1053_v59 = vadd.f32 1.0, %v2658_v58 }
0x1260   :  { %2659 = vrcp.f32 %v1053_v59  ;;  %v1065_v4 = vand.u32 2147483648, %v1053_v59  ;;  %v1063_v8 = vand.u32 2147483647, %v1053_v59  ;;  %vm1059_vm12 = vweird.f32 %v1053_v59 }
0x1262   :  { %v1066_v41 = vor.u32 1.1754944e-38, %v1065_v4  ;;  %vm1064_vm14 = vcmp.eq.f32.partialorder %v1063_v8, 8.507059e+37 }
0x1266   :  { %v2660_v60 = vpop.eup %2659 }
0x1267   :  { %v1055_v61 = vmul.f32 %v2660_v60, %v1053_v59  ;;  %vm1060_vm11 = vweird.f32 %v2660_v60 }
0x1268   :  { %vm1061_vm13 = vmor %vm1059_vm12, %vm1060_vm11 }
0x1269   :  { %v1056_v62 = vsub.f32 1.0, %v1055_v61 }
0x126b   :  { %v1057_v7 = vmul.f32 %v2660_v60, %v1056_v62 }
0x126d   :  { %v1058_v9 = vadd.f32 %v2660_v60, %v1057_v7 }
0x126f   :  { %v1062_v10 = vsel %vm1061_vm13, %v2660_v60, %v1058_v9 }
0x1270   :  { %v1067_v11 = vsel %vm1064_vm14, %v1066_v41, %v1062_v10 }
0x1271   :  { %v1069_v12 = vmul.f32 2.0, %v1067_v11 }
0x1273   :  { %v3159_v13 = vmul.f32 %v1069_v12, %v981_v43 }
0x1275   :  { %2504 = vmatmul.msk.f32.vlgmr.msra.gmra.mxu2 %vm93_vm5, %v3159_v13 }
0x1276   :  { %1471 = vmatpush.msra.mxu2 %v3166_v14 }
0x1278   :  { %1472 = vmatpush.msra.mxu2 %v3172_v6 }
0x127a   :  { %1473 = vmatpush.msra.mxu2 %v3178_v15 }
0x127c   :  { %1474 = vmatpush.msra.mxu2 %v3184_v16 }
0x127e   :  { %1475 = vmatpush.msra.mxu2 %v3190_v24 }
0x1280   :  { %1476 = vmatpush.msra.mxu2 %v3196_v26 }
0x12f8   :  { %v1091_v27 = vpop.f32.mrf.mxu2 }
0x12f9   :  { %v2505_v63 = vmul.f32 -1.442695, %v1091_v27 }
0x12fb   :  { %2661 = vpow2.f32 %v2505_v63 }
0x1301   :  { %v2662_v28 = vpop.eup %2661 }
0x1302   :  { %v1097_v29 = vadd.f32 1.0, %v2662_v28 }
0x1304   :  { %2663 = vrcp.f32 %v1097_v29  ;;  %v1109_v19 = vand.u32 2147483648, %v1097_v29  ;;  %v1107_v21 = vand.u32 2147483647, %v1097_v29  ;;  %vm1103_vm0 = vweird.f32 %v1097_v29 }
0x1306   :  { %v1110_v31 = vor.u32 1.1754944e-38, %v1109_v19  ;;  %vm1108_vm3 = vcmp.eq.f32.partialorder %v1107_v21, 8.507059e+37 }
0x130a   :  { %v2664_v17 = vpop.eup %2663 }
0x130b   :  { %v1099_v30 = vmul.f32 %v2664_v17, %v1097_v29  ;;  %vm1104_vm15 = vweird.f32 %v2664_v17 }
0x130c   :  { %vm1105_vm1 = vmor %vm1103_vm0, %vm1104_vm15 }
0x130d   :  { %v1100_v18 = vsub.f32 1.0, %v1099_v30 }
0x130f   :  { %v1101_v20 = vmul.f32 %v2664_v17, %v1100_v18 }
0x1311   :  { %v1102_v22 = vadd.f32 %v2664_v17, %v1101_v20 }
0x1313   :  { %v1106_v32 = vsel %vm1105_vm1, %v2664_v17, %v1102_v22 }
0x1314   :  { %v1111_v37 = vsel %vm1108_vm3, %v1110_v31, %v1106_v32 }
0x1315   :  { %v1113_v38 = vmul.f32 2.0, %v1111_v37 }
0x1317   :  { %v1114_v39 = vmul.f32 %v1113_v38, %v1026_v1 }
0x1319   :  { %1159 = vrot.lane.b32.xlu0 %v1114_v39, %s2832_s17  ;;  %2506 = vmatmul.msk.f32.vlgmr.msrb.gmra.mxu0 %vm42_vm10, %v1114_v39 }
0x131a   :  { %1538 = vmatpush.msrb.mxu0 %v3095_v33 }
0x131c   :  { %1539 = vmatpush.msrb.mxu0 %v3101_v34 }
0x131e   :  { %1540 = vmatpush.msrb.mxu0 %v3107_v35 }
0x1320   :  { %1541 = vmatpush.msrb.mxu0 %v3113_v36 }
0x138b   :  { %v1160_v57 = vpop.permute.xlu0 %1159 }
0x1396   :  { %v1135_v40 = vpop.f32.mrf.mxu0 }
0x1397   :  { %v2507_v42 = vmul.f32 -1.442695, %v1135_v40  ;;  %v1225_v40 = vld [vmem:[%s3435_s0 + $0xc] sm:$0x1] }
0x1399   :  { %2665 = vpow2.f32 %v2507_v42 }
0x139f   :  { %v2666_v43 = vpop.eup %2665 }
0x13a0   :  { %v1141_v44 = vadd.f32 1.0, %v2666_v43 }
0x13a2   :  { %2667 = vrcp.f32 %v1141_v44  ;;  %v1153_v48 = vand.u32 2147483648, %v1141_v44  ;;  %v1151_v50 = vand.u32 2147483647, %v1141_v44  ;;  %vm1147_vm6 = vweird.f32 %v1141_v44 }
0x13a4   :  { %v1154_v52 = vor.u32 1.1754944e-38, %v1153_v48  ;;  %vm1152_vm8 = vcmp.eq.f32.partialorder %v1151_v50, 8.507059e+37 }
0x13a8   :  { %v2668_v45 = vpop.eup %2667 }
0x13a9   :  { %v1143_v46 = vmul.f32 %v2668_v45, %v1141_v44  ;;  %vm1148_vm4 = vweird.f32 %v2668_v45 }
0x13aa   :  { %vm1149_vm7 = vmor %vm1147_vm6, %vm1148_vm4 }
0x13ab   :  { %v1144_v47 = vsub.f32 1.0, %v1143_v46 }
0x13ad   :  { %v1145_v49 = vmul.f32 %v2668_v45, %v1144_v47  ;;  %v1224_v47 = vld [vmem:[%s3435_s0 + $0x4] sm:$0x1] }
0x13af   :  { %v1146_v51 = vadd.f32 %v2668_v45, %v1145_v49 }
0x13b1   :  { %v1150_v53 = vsel %vm1149_vm7, %v2668_v45, %v1146_v51  ;;  %v1273_v45 = vrot.slane %v1225_v40, 7 }
0x13b2   :  { %v1155_v54 = vsel %vm1152_vm8, %v1154_v52, %v1150_v53 }
0x13b3   :  { %v1157_v55 = vmul.f32 2.0, %v1155_v54  ;;  %v1274_v51 = vsel %vm89_vm2, %v1273_v45, %v1224_v47 }
0x13b5   :  { %v1158_v56 = vmul.f32 %v1157_v55, %v3159_v13 }
0x13b7   :  { %v1162_v0 = vsel %vm93_vm5, %v1158_v56, %v1160_v57 }
0x13b8   :  { %2508 = vmatmul.msk.f32.vlgmr.msrb.gmra.mxu1 %vm277_vm9, %v1162_v0 }
0x13b9   :  { %1632 = vmatpush.msrb.mxu1 %v3095_v33 }
0x13bb   :  { %1633 = vmatpush.msrb.mxu1 %v3101_v34 }
0x13bd   :  { %1634 = vmatpush.msrb.mxu1 %v3107_v35 }
0x13bf   :  { %1635 = vmatpush.msrb.mxu1 %v3113_v36 }
0x1435   :  { %v1183_v1 = vpop.f32.mrf.mxu1 }
0x1436   :  { %v1184_v3 = vadd.f32 %v3215_v2, %v1183_v1 }
0x1438   :  { %v2509_v58 = vmul.f32 -1.442695, %v1184_v3 }
0x143a   :  { %2669 = vpow2.f32 %v2509_v58 }
0x1440   :  { %v2670_v59 = vpop.eup %2669 }
0x1441   :  { %v1189_v60 = vadd.f32 1.0, %v2670_v59 }
0x1443   :  { %2671 = vrcp.f32 %v1189_v60  ;;  %v1201_v7 = vand.u32 2147483648, %v1189_v60  ;;  %v1199_v9 = vand.u32 2147483647, %v1189_v60  ;;  %vm1195_vm12 = vweird.f32 %v1189_v60 }
0x1445   :  { %v1202_v10 = vor.u32 1.1754944e-38, %v1201_v7  ;;  %vm1200_vm14 = vcmp.eq.f32.partialorder %v1199_v9, 8.507059e+37 }
0x1449   :  { %v2672_v61 = vpop.eup %2671 }
0x144a   :  { %v1191_v62 = vmul.f32 %v2672_v61, %v1189_v60  ;;  %vm1196_vm11 = vweird.f32 %v2672_v61 }
0x144b   :  { %vm1197_vm13 = vmor %vm1195_vm12, %vm1196_vm11 }
0x144c   :  { %v1192_v4 = vsub.f32 1.0, %v1191_v62 }
0x144e   :  { %v1193_v8 = vmul.f32 %v2672_v61, %v1192_v4 }
0x1450   :  { %v1194_v41 = vadd.f32 %v2672_v61, %v1193_v8 }
0x1452   :  { %v1198_v11 = vsel %vm1197_vm13, %v2672_v61, %v1194_v41 }
0x1453   :  { %v1203_v12 = vsel %vm1200_vm14, %v1202_v10, %v1198_v11 }
0x1454   :  { %v1205_v13 = vmul.f32 2.0, %v1203_v12  ;;  %v1207_v29 = vmul.f32 %v1203_v12, %v3126_v5 }
0x1456   :  { %v2510_v27 = vadd.f32 -1.0, %v1205_v13 }
0x1458   :  { %1209 = vrot.lane.b32.xlu1 %v2510_v27, %s2833_s9 }
0x14ca   :  { %v1210_v63 = vpop.permute.xlu1 %1209 }
0x14cb   :  { %v1212_v28 = vmul.f32 %v1210_v63, %v1203_v12 }
0x14cd   :  { %1214 = vrot.lane.b32.xlu2 %v1212_v28, %s2834_s10 }
0x1527   :  { %v1215_v17 = vpop.permute.xlu2 %1214 }
0x1528   :  { %v3221_v30 = vadd.f32 %v1215_v17, %v1207_v29 }
0x152a   :  { %2673 = vtanh.f32 %v3221_v30 }
0x1530   :  { %v2674_v18 = vpop.eup %2673 }
0x1531   :  { %1220 = vrot.lane.b32.xlu0 %v2674_v18, %s2833_s9 }
0x15a3   :  { %v1221_v19 = vpop.permute.xlu0 %1220 }
0x15a4   :  { %v1223_v20 = vmul.f32 %v1221_v19, %v1203_v12 }
0x15a6   :  { %1227 = vrot.lane.b32.xlu1 %v1223_v20, %s2834_s10 }
0x1618   :  { %v1228_v21 = vpop.permute.xlu1 %1227 }
0x1619   :  { %2511 = vmatmul.msk.f32.vlgmr.msrb.gmra.mxu3 %vm42_vm10, %v1228_v21 }
0x161a   :  { %1589 = vmatpush.msrb.mxu3 %v3135_v25 }
0x161c   :  { %1590 = vmatpush.msrb.mxu3 %v3141_v23 }
0x169c   :  { %v1248_v5 = vpop.f32.mrf.mxu3 }
0x169d   :  { %v2512_v22 = vmul.f32 -1.442695, %v1248_v5 }
0x169f   :  { %2675 = vpow2.f32 %v2512_v22 }
0x16a5   :  { %v2676_v31 = vpop.eup %2675 }
0x16a6   :  { %v1254_v32 = vadd.f32 1.0, %v2676_v31 }
0x16a8   :  { %2677 = vrcp.f32 %v1254_v32  ;;  %v1266_v42 = vand.u32 2147483648, %v1254_v32  ;;  %v1264_v44 = vand.u32 2147483647, %v1254_v32  ;;  %vm1260_vm0 = vweird.f32 %v1254_v32 }
0x16aa   :  { %v1267_v48 = vor.u32 1.1754944e-38, %v1266_v42  ;;  %vm1265_vm3 = vcmp.eq.f32.partialorder %v1264_v44, 8.507059e+37 }
0x16ae   :  { %v2678_v37 = vpop.eup %2677 }
0x16af   :  { %v1256_v38 = vmul.f32 %v2678_v37, %v1254_v32  ;;  %vm1261_vm15 = vweird.f32 %v2678_v37 }
0x16b0   :  { %vm1262_vm1 = vmor %vm1260_vm0, %vm1261_vm15 }
0x16b1   :  { %v1257_v39 = vsub.f32 1.0, %v1256_v38 }
0x16b3   :  { %v1258_v43 = vmul.f32 %v2678_v37, %v1257_v39 }
0x16b5   :  { %v1259_v46 = vadd.f32 %v2678_v37, %v1258_v43 }
0x16b7   :  { %v1263_v49 = vsel %vm1262_vm1, %v2678_v37, %v1259_v46 }
0x16b8   :  { %v1268_v50 = vsel %vm1265_vm3, %v1267_v48, %v1263_v49 }
0x16b9   :  { %v1270_v52 = vmul.f32 2.0, %v1268_v50 }
0x16bb   :  { %v1276_v53 = vmul.f32 %v1274_v51, %v1270_v52 }
0x16bd   :  { %2513 = vmatmul.msk.f32.vlgmr.msrb.gmra.mxu2 %vm93_vm5, %v1276_v53 }
0x16be   :  { %1720 = vmatpush.msrb.mxu2 %v3095_v33 }
0x16c0   :  { %1721 = vmatpush.msrb.mxu2 %v3101_v34 }
0x16c2   :  { %1722 = vmatpush.msrb.mxu2 %v3107_v35 }
0x16c4   :  { %1723 = vmatpush.msrb.mxu2 %v3113_v36 }
0x1740   :  { %v1297_v54 = vpop.f32.mrf.mxu2 }
0x1741   :  { %v2514_v55 = vmul.f32 -1.442695, %v1297_v54 }
0x1743   :  { %2679 = vpow2.f32 %v2514_v55 }
0x1749   :  { %v2680_v56 = vpop.eup %2679 }
0x174a   :  { %v1303_v57 = vadd.f32 1.0, %v2680_v56 }
0x174c   :  { %2681 = vrcp.f32 %v1303_v57  ;;  %v1315_v58 = vand.u32 2147483648, %v1303_v57  ;;  %v1313_v60 = vand.u32 2147483647, %v1303_v57  ;;  %vm1309_vm6 = vweird.f32 %v1303_v57 }
0x174e   :  { %v1316_v62 = vor.u32 1.1754944e-38, %v1315_v58  ;;  %vm1314_vm8 = vcmp.eq.f32.partialorder %v1313_v60, 8.507059e+37 }
0x1752   :  { %v2682_v0 = vpop.eup %2681 }
0x1753   :  { %v1305_v1 = vmul.f32 %v2682_v0, %v1303_v57  ;;  %vm1310_vm4 = vweird.f32 %v2682_v0 }
0x1754   :  { %vm1311_vm7 = vmor %vm1309_vm6, %vm1310_vm4 }
0x1755   :  { %v1306_v3 = vsub.f32 1.0, %v1305_v1 }
0x1757   :  { %v1307_v59 = vmul.f32 %v2682_v0, %v1306_v3 }
0x1759   :  { %v1308_v61 = vadd.f32 %v2682_v0, %v1307_v59 }
0x175b   :  { %v1312_v4 = vsel %vm1311_vm7, %v2682_v0, %v1308_v61 }
0x175c   :  { %v1317_v7 = vsel %vm1314_vm8, %v1316_v62, %v1312_v4 }
0x175d   :  { %v1319_v8 = vmul.f32 2.0, %v1317_v7 }
0x175f   :  { %v1321_v9 = vmul.f32 %v1319_v8, %v1228_v21 }
0x1761   :  { %2515 = vmatmul.msk.f32.vlgmr.msra.gmra.mxu0 %vm42_vm10, %v1321_v9 }
0x1762   :  { %1678 = vmatpush.msra.mxu0 %v3135_v25 }
0x1764   :  { %1679 = vmatpush.msra.mxu0 %v3141_v23 }
0x17de   :  { %v1342_v41 = vpop.f32.mrf.mxu0 }
0x17df   :  { %v2516_v10 = vmul.f32 -1.442695, %v1342_v41 }
0x17e1   :  { %2683 = vpow2.f32 %v2516_v10 }
0x17e7   :  { %v2684_v11 = vpop.eup %2683 }
0x17e8   :  { %v1348_v12 = vadd.f32 1.0, %v2684_v11 }
0x17ea   :  { %2685 = vrcp.f32 %v1348_v12  ;;  %v1360_v28 = vand.u32 2147483648, %v1348_v12  ;;  %v1358_v17 = vand.u32 2147483647, %v1348_v12  ;;  %vm1354_vm12 = vweird.f32 %v1348_v12 }
0x17ec   :  { %v1361_v19 = vor.u32 1.1754944e-38, %v1360_v28  ;;  %vm1359_vm14 = vcmp.eq.f32.partialorder %v1358_v17, 8.507059e+37 }
0x17f0   :  { %v2686_v13 = vpop.eup %2685 }
0x17f1   :  { %v1350_v27 = vmul.f32 %v2686_v13, %v1348_v12  ;;  %vm1355_vm11 = vweird.f32 %v2686_v13 }
0x17f2   :  { %vm1356_vm13 = vmor %vm1354_vm12, %vm1355_vm11 }
0x17f3   :  { %v1351_v63 = vsub.f32 1.0, %v1350_v27 }
0x17f5   :  { %v1352_v29 = vmul.f32 %v2686_v13, %v1351_v63 }
0x17f7   :  { %v1353_v18 = vadd.f32 %v2686_v13, %v1352_v29 }
0x17f9   :  { %v1357_v20 = vsel %vm1356_vm13, %v2686_v13, %v1353_v18 }
0x17fa   :  { %v1362_v21 = vsel %vm1359_vm14, %v1361_v19, %v1357_v20 }
0x17fb   :  { %v1364_v5 = vmul.f32 2.0, %v1362_v21 }
0x17fd   :  { %v1365_v22 = vmul.f32 %v1364_v5, %v1276_v53 }
0x17ff   :  { %2517 = vmatmul.msk.f32.vlgmr.msra.gmra.mxu3 %vm93_vm5, %v1365_v22 }
0x1800   :  { %1766 = vmatpush.msra.mxu3 %v3166_v14 }
0x1802   :  { %1767 = vmatpush.msra.mxu3 %v3172_v6 }
0x1804   :  { %1768 = vmatpush.msra.mxu3 %v3178_v15 }
0x1806   :  { %1769 = vmatpush.msra.mxu3 %v3184_v16 }
0x1808   :  { %1770 = vmatpush.msra.mxu3 %v3190_v24 }
0x180a   :  { %1771 = vmatpush.msra.mxu3 %v3196_v26 }
0x1882   :  { %v1386_v31 = vpop.f32.mrf.mxu3 }
0x1883   :  { %v2518_v32 = vmul.f32 -1.442695, %v1386_v31 }
0x1885   :  { %2687 = vpow2.f32 %v2518_v32 }
0x188b   :  { %v2688_v37 = vpop.eup %2687 }
0x188c   :  { %v1392_v38 = vadd.f32 1.0, %v2688_v37 }
0x188e   :  { %2689 = vrcp.f32 %v1392_v38  ;;  %v1404_v43 = vand.u32 2147483648, %v1392_v38  ;;  %v1402_v45 = vand.u32 2147483647, %v1392_v38  ;;  %vm1398_vm0 = vweird.f32 %v1392_v38 }
0x1890   :  { %v1405_v47 = vor.u32 1.1754944e-38, %v1404_v43  ;;  %vm1403_vm3 = vcmp.eq.f32.partialorder %v1402_v45, 8.507059e+37 }
0x1894   :  { %v2690_v39 = vpop.eup %2689 }
0x1895   :  { %v1394_v40 = vmul.f32 %v2690_v39, %v1392_v38  ;;  %vm1399_vm15 = vweird.f32 %v2690_v39 }
0x1896   :  { %vm1400_vm1 = vmor %vm1398_vm0, %vm1399_vm15 }
0x1897   :  { %v1395_v42 = vsub.f32 1.0, %v1394_v40 }
0x1899   :  { %v1396_v44 = vmul.f32 %v2690_v39, %v1395_v42 }
0x189b   :  { %v1397_v46 = vadd.f32 %v2690_v39, %v1396_v44 }
0x189d   :  { %v1401_v48 = vsel %vm1400_vm1, %v2690_v39, %v1397_v46 }
0x189e   :  { %v1406_v49 = vsel %vm1403_vm3, %v1405_v47, %v1401_v48 }
0x189f   :  { %v1408_v50 = vmul.f32 2.0, %v1406_v49 }
0x18a1   :  { %v1409_v51 = vmul.f32 %v1408_v50, %v1321_v9 }
0x18a3   :  { %1454 = vrot.lane.b32.xlu2 %v1409_v51, %s2832_s17  ;;  %2519 = vmatmul.msk.f32.vlgmr.msra.gmra.mxu1 %vm42_vm10, %v1409_v51 }
0x18a4   :  { %1833 = vmatpush.msra.mxu1 %v3095_v33 }
0x18a6   :  { %1834 = vmatpush.msra.mxu1 %v3101_v34 }
0x18a8   :  { %1835 = vmatpush.msra.mxu1 %v3107_v35 }
0x18aa   :  { %1836 = vmatpush.msra.mxu1 %v3113_v36 }
0x18fd   :  { %v1455_v8 = vpop.permute.xlu2 %1454 }
0x1920   :  { %v1430_v52 = vpop.f32.mrf.mxu1 }
0x1921   :  { %v2520_v53 = vmul.f32 -1.442695, %v1430_v52  ;;  %v1520_v52 = vld [vmem:[%s3435_s0 + $0xd] sm:$0x1] }
0x1923   :  { %2691 = vpow2.f32 %v2520_v53 }
0x1929   :  { %v2692_v54 = vpop.eup %2691 }
0x192a   :  { %v1436_v55 = vadd.f32 1.0, %v2692_v54 }
0x192c   :  { %2693 = vrcp.f32 %v1436_v55  ;;  %v1448_v1 = vand.u32 2147483648, %v1436_v55  ;;  %v1446_v58 = vand.u32 2147483647, %v1436_v55  ;;  %vm1442_vm6 = vweird.f32 %v1436_v55 }
0x192e   :  { %v1449_v60 = vor.u32 1.1754944e-38, %v1448_v1  ;;  %vm1447_vm8 = vcmp.eq.f32.partialorder %v1446_v58, 8.507059e+37 }
0x1932   :  { %v2694_v56 = vpop.eup %2693 }
0x1933   :  { %v1438_v57 = vmul.f32 %v2694_v56, %v1436_v55  ;;  %vm1443_vm4 = vweird.f32 %v2694_v56 }
0x1934   :  { %vm1444_vm7 = vmor %vm1442_vm6, %vm1443_vm4 }
0x1935   :  { %v1439_v0 = vsub.f32 1.0, %v1438_v57 }
0x1937   :  { %v1440_v3 = vmul.f32 %v2694_v56, %v1439_v0  ;;  %v1519_v0 = vld [vmem:[%s3435_s0 + $0x5] sm:$0x1] }
0x1939   :  { %v1441_v59 = vadd.f32 %v2694_v56, %v1440_v3 }
0x193b   :  { %v1445_v61 = vsel %vm1444_vm7, %v2694_v56, %v1441_v59  ;;  %v1568_v56 = vrot.slane %v1520_v52, 7  ;;  %v3308_v52 = vld [vmem:[%s3438_s3 + $0x10] sm:$0xff] }
0x193c   :  { %v1450_v62 = vsel %vm1447_vm8, %v1449_v60, %v1445_v61 }
0x193d   :  { %v1452_v4 = vmul.f32 2.0, %v1450_v62  ;;  %v1569_v59 = vsel %vm89_vm2, %v1568_v56, %v1519_v0 }
0x193f   :  { %v1453_v7 = vmul.f32 %v1452_v4, %v1365_v22 }
0x1941   :  { %v1457_v9 = vsel %vm93_vm5, %v1453_v7, %v1455_v8 }
0x1942   :  { %2521 = vmatmul.msk.f32.vlgmr.msra.gmra.mxu2 %vm277_vm9, %v1457_v9 }
0x1943   :  { %1927 = vmatpush.msra.mxu2 %v3095_v33 }
0x1945   :  { %1928 = vmatpush.msra.mxu2 %v3101_v34 }
0x1947   :  { %1929 = vmatpush.msra.mxu2 %v3107_v35 }
0x1949   :  { %1930 = vmatpush.msra.mxu2 %v3113_v36 }
0x19c5   :  { %v1478_v41 = vpop.f32.mrf.mxu2 }
0x19c6   :  { %v1479_v10 = vadd.f32 %v3215_v2, %v1478_v41 }
0x19c8   :  { %v2522_v11 = vmul.f32 -1.442695, %v1479_v10 }
0x19ca   :  { %2695 = vpow2.f32 %v2522_v11 }
0x19d0   :  { %v2696_v12 = vpop.eup %2695 }
0x19d1   :  { %v1484_v13 = vadd.f32 1.0, %v2696_v12 }
0x19d3   :  { %2697 = vrcp.f32 %v1484_v13  ;;  %v1496_v29 = vand.u32 2147483648, %v1484_v13  ;;  %v1494_v18 = vand.u32 2147483647, %v1484_v13  ;;  %vm1490_vm12 = vweird.f32 %v1484_v13 }
0x19d5   :  { %v1497_v20 = vor.u32 1.1754944e-38, %v1496_v29  ;;  %vm1495_vm14 = vcmp.eq.f32.partialorder %v1494_v18, 8.507059e+37 }
0x19d9   :  { %v2698_v27 = vpop.eup %2697 }
0x19da   :  { %v1486_v63 = vmul.f32 %v2698_v27, %v1484_v13  ;;  %vm1491_vm11 = vweird.f32 %v2698_v27 }
0x19db   :  { %vm1492_vm13 = vmor %vm1490_vm12, %vm1491_vm11 }
0x19dc   :  { %v1487_v28 = vsub.f32 1.0, %v1486_v63 }
0x19de   :  { %v1488_v17 = vmul.f32 %v2698_v27, %v1487_v28 }
0x19e0   :  { %v1489_v19 = vadd.f32 %v2698_v27, %v1488_v17 }
0x19e2   :  { %v1493_v21 = vsel %vm1492_vm13, %v2698_v27, %v1489_v19 }
0x19e3   :  { %v1498_v5 = vsel %vm1495_vm14, %v1497_v20, %v1493_v21 }
0x19e4   :  { %v1500_v22 = vmul.f32 2.0, %v1498_v5  ;;  %v1502_v38 = vmul.f32 %v1498_v5, %v3221_v30 }
0x19e6   :  { %v2523_v31 = vadd.f32 -1.0, %v1500_v22 }
0x19e8   :  { %1504 = vrot.lane.b32.xlu0 %v2523_v31, %s2833_s9 }
0x1a5a   :  { %v1505_v32 = vpop.permute.xlu0 %1504 }
0x1a5b   :  { %v1507_v37 = vmul.f32 %v1505_v32, %v1498_v5 }
0x1a5d   :  { %1509 = vrot.lane.b32.xlu1 %v1507_v37, %s2834_s10 }
0x1acf   :  { %v1510_v39 = vpop.permute.xlu1 %1509 }
0x1ad0   :  { %v3267_v40 = vadd.f32 %v1510_v39, %v1502_v38 }
0x1ad2   :  { %2699 = vtanh.f32 %v3267_v40 }
0x1ad8   :  { %v2700_v42 = vpop.eup %2699 }
0x1ad9   :  { %1515 = vrot.lane.b32.xlu2 %v2700_v42, %s2833_s9 }
0x1b33   :  { %v1516_v43 = vpop.permute.xlu2 %1515 }
0x1b34   :  { %v1518_v44 = vmul.f32 %v1516_v43, %v1498_v5 }
0x1b36   :  { %1522 = vrot.lane.b32.xlu0 %v1518_v44, %s2834_s10 }
0x1ba8   :  { %v1523_v45 = vpop.permute.xlu0 %1522 }
0x1ba9   :  { %2524 = vmatmul.msk.f32.vlgmr.msrb.gmra.mxu0 %vm42_vm10, %v1523_v45 }
0x1baa   :  { %1884 = vmatpush.msrb.mxu0 %v3135_v25 }
0x1bac   :  { %1885 = vmatpush.msrb.mxu0 %v3141_v23 }
0x1c26   :  { %v1543_v30 = vpop.f32.mrf.mxu0 }
0x1c27   :  { %v2525_v46 = vmul.f32 -1.442695, %v1543_v30 }
0x1c29   :  { %2701 = vpow2.f32 %v2525_v46 }
0x1c2f   :  { %v2702_v47 = vpop.eup %2701 }
0x1c30   :  { %v1549_v48 = vadd.f32 1.0, %v2702_v47 }
0x1c32   :  { %2703 = vrcp.f32 %v1549_v48  ;;  %v1561_v53 = vand.u32 2147483648, %v1549_v48  ;;  %v1559_v55 = vand.u32 2147483647, %v1549_v48  ;;  %vm1555_vm0 = vweird.f32 %v1549_v48 }
0x1c34   :  { %v1562_v1 = vor.u32 1.1754944e-38, %v1561_v53  ;;  %vm1560_vm3 = vcmp.eq.f32.partialorder %v1559_v55, 8.507059e+37  ;;  %v3314_v53 = vld [vmem:[%s3438_s3 + $0x8] sm:$0xff] }
0x1c38   :  { %v2704_v49 = vpop.eup %2703 }
0x1c39   :  { %v1551_v50 = vmul.f32 %v2704_v49, %v1549_v48  ;;  %vm1556_vm15 = vweird.f32 %v2704_v49 }
0x1c3a   :  { %vm1557_vm1 = vmor %vm1555_vm0, %vm1556_vm15 }
0x1c3b   :  { %v1552_v51 = vsub.f32 1.0, %v1551_v50 }
0x1c3d   :  { %v1553_v54 = vmul.f32 %v2704_v49, %v1552_v51  ;;  %v3302_v51 = vld [vmem:[%s3438_s3 + $0x18] sm:$0xff] }
0x1c3f   :  { %v1554_v57 = vadd.f32 %v2704_v49, %v1553_v54  ;;  %v3320_v54 = vld [vmem:[%s3438_s3] sm:$0xff] }
0x1c41   :  { %v1558_v3 = vsel %vm1557_vm1, %v2704_v49, %v1554_v57 }
0x1c42   :  { %v1563_v58 = vsel %vm1560_vm3, %v1562_v1, %v1558_v3 }
0x1c43   :  { %v1565_v60 = vmul.f32 2.0, %v1563_v58 }
0x1c45   :  { %v1571_v61 = vmul.f32 %v1569_v59, %v1565_v60 }
0x1c47   :  { %2526 = vmatmul.msk.f32.vlgmr.msrb.gmra.mxu3 %vm93_vm5, %v1571_v61 }
0x1c48   :  { %2015 = vmatpush.msrb.mxu3 %v3095_v33 }
0x1c4a   :  { %2016 = vmatpush.msrb.mxu3 %v3101_v34 }
0x1c4c   :  { %2017 = vmatpush.msrb.mxu3 %v3107_v35 }
0x1c4e   :  { %2018 = vmatpush.msrb.mxu3 %v3113_v36 }
0x1cca   :  { %v1592_v62 = vpop.f32.mrf.mxu3 }
0x1ccb   :  { %v2527_v4 = vmul.f32 -1.442695, %v1592_v62 }
0x1ccd   :  { %2705 = vpow2.f32 %v2527_v4 }
0x1cd3   :  { %v2706_v7 = vpop.eup %2705 }
0x1cd4   :  { %v1598_v8 = vadd.f32 1.0, %v2706_v7 }
0x1cd6   :  { %2707 = vrcp.f32 %v1598_v8  ;;  %v1610_v11 = vand.u32 2147483648, %v1598_v8  ;;  %v1608_v13 = vand.u32 2147483647, %v1598_v8  ;;  %vm1604_vm6 = vweird.f32 %v1598_v8 }
0x1cd8   :  { %v1611_v34 = vor.u32 1.1754944e-38, %v1610_v11  ;;  %vm1609_vm8 = vcmp.eq.f32.partialorder %v1608_v13, 8.507059e+37 }
0x1cdc   :  { %v2708_v9 = vpop.eup %2707 }
0x1cdd   :  { %v1600_v41 = vmul.f32 %v2708_v9, %v1598_v8  ;;  %vm1605_vm4 = vweird.f32 %v2708_v9 }
0x1cde   :  { %vm1606_vm7 = vmor %vm1604_vm6, %vm1605_vm4 }
0x1cdf   :  { %v1601_v10 = vsub.f32 1.0, %v1600_v41 }
0x1ce1   :  { %v1602_v12 = vmul.f32 %v2708_v9, %v1601_v10 }
0x1ce3   :  { %v1603_v33 = vadd.f32 %v2708_v9, %v1602_v12 }
0x1ce5   :  { %v1607_v35 = vsel %vm1606_vm7, %v2708_v9, %v1603_v33 }
0x1ce6   :  { %v1612_v36 = vsel %vm1609_vm8, %v1611_v34, %v1607_v35 }
0x1ce7   :  { %v1614_v27 = vmul.f32 2.0, %v1612_v36 }
0x1ce9   :  { %v1616_v63 = vmul.f32 %v1614_v27, %v1523_v45 }
0x1ceb   :  { %2528 = vmatmul.msk.f32.vlgmr.msrb.gmra.mxu1 %vm42_vm10, %v1616_v63 }
0x1cec   :  { %1973 = vmatpush.msrb.mxu1 %v3135_v25 }
0x1cee   :  { %1974 = vmatpush.msrb.mxu1 %v3141_v23 }
0x1d68   :  { %v1637_v28 = vpop.f32.mrf.mxu1 }
0x1d69   :  { %v2529_v29 = vmul.f32 -1.442695, %v1637_v28 }
0x1d6b   :  { %2709 = vpow2.f32 %v2529_v29 }
0x1d71   :  { %v2710_v17 = vpop.eup %2709 }
0x1d72   :  { %v1643_v18 = vadd.f32 1.0, %v2710_v17 }
0x1d74   :  { %2711 = vrcp.f32 %v1643_v18  ;;  %v1655_v5 = vand.u32 2147483648, %v1643_v18  ;;  %v1653_v31 = vand.u32 2147483647, %v1643_v18  ;;  %vm1649_vm12 = vweird.f32 %v1643_v18 }
0x1d76   :  { %v1656_v37 = vor.u32 1.1754944e-38, %v1655_v5  ;;  %vm1654_vm14 = vcmp.eq.f32.partialorder %v1653_v31, 8.507059e+37 }
0x1d7a   :  { %v2712_v19 = vpop.eup %2711 }
0x1d7b   :  { %v1645_v20 = vmul.f32 %v2712_v19, %v1643_v18  ;;  %vm1650_vm11 = vweird.f32 %v2712_v19 }
0x1d7c   :  { %vm1651_vm13 = vmor %vm1649_vm12, %vm1650_vm11 }
0x1d7d   :  { %v1646_v21 = vsub.f32 1.0, %v1645_v20 }
0x1d7f   :  { %v1647_v22 = vmul.f32 %v2712_v19, %v1646_v21 }
0x1d81   :  { %v1648_v32 = vadd.f32 %v2712_v19, %v1647_v22 }
0x1d83   :  { %v1652_v25 = vsel %vm1651_vm13, %v2712_v19, %v1648_v32 }
0x1d84   :  { %v1657_v23 = vsel %vm1654_vm14, %v1656_v37, %v1652_v25 }
0x1d85   :  { %v1659_v38 = vmul.f32 2.0, %v1657_v23 }
0x1d87   :  { %v1660_v39 = vmul.f32 %v1659_v38, %v1571_v61 }
0x1d89   :  { %2530 = vmatmul.msk.f32.vlgmr.msra.gmra.mxu0 %vm93_vm5, %v1660_v39 }
0x1d8a   :  { %2061 = vmatpush.msra.mxu0 %v3166_v14 }
0x1d8c   :  { %2062 = vmatpush.msra.mxu0 %v3172_v6 }
0x1d8e   :  { %2063 = vmatpush.msra.mxu0 %v3178_v15 }
0x1d90   :  { %2064 = vmatpush.msra.mxu0 %v3184_v16 }
0x1d92   :  { %2065 = vmatpush.msra.mxu0 %v3190_v24 }
0x1d94   :  { %2066 = vmatpush.msra.mxu0 %v3196_v26 }
0x1e06   :  { %v1681_v42 = vpop.f32.mrf.mxu0 }
0x1e07   :  { %v2531_v43 = vmul.f32 -1.442695, %v1681_v42 }
0x1e09   :  { %2713 = vpow2.f32 %v2531_v43  ;;  %v2796_v43 = vld [vmem:[%s3439_s4 + $0x8] sm:$0xff] }
0x1e0f   :  { %v2714_v44 = vpop.eup %2713 }
0x1e10   :  { %v1687_v45 = vadd.f32 1.0, %v2714_v44 }
0x1e12   :  { %2715 = vrcp.f32 %v1687_v45  ;;  %v1699_v14 = vand.u32 2147483648, %v1687_v45  ;;  %v1697_v6 = vand.u32 2147483647, %v1687_v45  ;;  %vm1693_vm0 = vweird.f32 %v1687_v45 }
0x1e14   :  { %v1700_v16 = vor.u32 1.1754944e-38, %v1699_v14  ;;  %vm1698_vm3 = vcmp.eq.f32.partialorder %v1697_v6, 8.507059e+37  ;;  %v1815_v6 = vld [vmem:[%s3435_s0 + $0xe] sm:$0x1] }
0x1e18   :  { %v2716_v30 = vpop.eup %2715 }
0x1e19   :  { %v1689_v46 = vmul.f32 %v2716_v30, %v1687_v45  ;;  %vm1694_vm15 = vweird.f32 %v2716_v30 }
0x1e1a   :  { %vm1695_vm1 = vmor %vm1693_vm0, %vm1694_vm15 }
0x1e1b   :  { %v1690_v47 = vsub.f32 1.0, %v1689_v46 }
0x1e1d   :  { %v1691_v48 = vmul.f32 %v2716_v30, %v1690_v47 }
0x1e1f   :  { %v1692_v15 = vadd.f32 %v2716_v30, %v1691_v48 }
0x1e21   :  { %v1696_v24 = vsel %vm1695_vm1, %v2716_v30, %v1692_v15 }
0x1e22   :  { %v1701_v26 = vsel %vm1698_vm3, %v1700_v16, %v1696_v24 }
0x1e23   :  { %v1703_v49 = vmul.f32 2.0, %v1701_v26  ;;  %v1863_v26 = vrot.slane %v1815_v6, 7 }
0x1e25   :  { %v1704_v50 = vmul.f32 %v1703_v49, %v1616_v63 }
0x1e27   :  { %1749 = vrot.lane.b32.xlu1 %v1704_v50, %s2832_s17  ;;  %2532 = vmatmul.msk.f32.vlgmr.msrb.gmra.mxu2 %vm42_vm10, %v1704_v50  ;;  %v1814_v50 = vld [vmem:[%s3435_s0 + $0x6] sm:$0x1] }
0x1e28   :  { %2128 = vmatpush.msrb.mxu2 %v3302_v51 }
0x1e2a   :  { %2129 = vmatpush.msrb.mxu2 %v3308_v52 }
0x1e2c   :  { %2130 = vmatpush.msrb.mxu2 %v3314_v53 }
0x1e2e   :  { %2131 = vmatpush.msrb.mxu2 %v3320_v54 }
0x1e99   :  { %v1750_v10 = vpop.permute.xlu1 %1749 }
0x1eaa   :  { %v1725_v55 = vpop.f32.mrf.mxu2 }
0x1eab   :  { %v2533_v56 = vmul.f32 -1.442695, %v1725_v55 }
0x1ead   :  { %2717 = vpow2.f32 %v2533_v56 }
0x1eb3   :  { %v2718_v57 = vpop.eup %2717 }
0x1eb4   :  { %v1731_v0 = vadd.f32 1.0, %v2718_v57 }
0x1eb6   :  { %2719 = vrcp.f32 %v1731_v0  ;;  %v1743_v59 = vand.u32 2147483648, %v1731_v0  ;;  %v1741_v61 = vand.u32 2147483647, %v1731_v0  ;;  %vm1737_vm6 = vweird.f32 %v1731_v0 }
0x1eb8   :  { %v1744_v4 = vor.u32 1.1754944e-38, %v1743_v59  ;;  %vm1742_vm8 = vcmp.eq.f32.partialorder %v1741_v61, 8.507059e+37 }
0x1ebc   :  { %v2720_v1 = vpop.eup %2719 }
0x1ebd   :  { %v1733_v3 = vmul.f32 %v2720_v1, %v1731_v0  ;;  %vm1738_vm4 = vweird.f32 %v2720_v1  ;;  %v1864_v0 = vsel %vm89_vm2, %v1863_v26, %v1814_v50 }
0x1ebe   :  { %vm1739_vm7 = vmor %vm1737_vm6, %vm1738_vm4 }
0x1ebf   :  { %v1734_v58 = vsub.f32 1.0, %v1733_v3 }
0x1ec1   :  { %v1735_v60 = vmul.f32 %v2720_v1, %v1734_v58 }
0x1ec3   :  { %v1736_v62 = vadd.f32 %v2720_v1, %v1735_v60 }
0x1ec5   :  { %v1740_v7 = vsel %vm1739_vm7, %v2720_v1, %v1736_v62 }
0x1ec6   :  { %v1745_v8 = vsel %vm1742_vm8, %v1744_v4, %v1740_v7 }
0x1ec7   :  { %v1747_v9 = vmul.f32 2.0, %v1745_v8 }
0x1ec9   :  { %v1748_v41 = vmul.f32 %v1747_v9, %v1660_v39 }
0x1ecb   :  { %v1752_v11 = vsel %vm93_vm5, %v1748_v41, %v1750_v10 }
0x1ecc   :  { %2534 = vmatmul.msk.f32.vlgmr.msra.gmra.mxu3 %vm277_vm9, %v1752_v11 }
0x1ecd   :  { %2222 = vmatpush.msra.mxu3 %v3302_v51 }
0x1ecf   :  { %2223 = vmatpush.msra.mxu3 %v3308_v52 }
0x1ed1   :  { %2224 = vmatpush.msra.mxu3 %v3314_v53 }
0x1ed3   :  { %2225 = vmatpush.msra.mxu3 %v3320_v54 }
0x1f4f   :  { %v1773_v12 = vpop.f32.mrf.mxu3 }
0x1f50   :  { %v1774_v13 = vadd.f32 %v3215_v2, %v1773_v12 }
0x1f52   :  { %v2535_v33 = vmul.f32 -1.442695, %v1774_v13 }
0x1f54   :  { %2721 = vpow2.f32 %v2535_v33 }
0x1f5a   :  { %v2722_v34 = vpop.eup %2721 }
0x1f5b   :  { %v1779_v35 = vadd.f32 1.0, %v2722_v34 }
0x1f5d   :  { %2723 = vrcp.f32 %v1779_v35  ;;  %v1791_v28 = vand.u32 2147483648, %v1779_v35  ;;  %v1789_v17 = vand.u32 2147483647, %v1779_v35  ;;  %vm1785_vm12 = vweird.f32 %v1779_v35 }
0x1f5f   :  { %v1792_v19 = vor.u32 1.1754944e-38, %v1791_v28  ;;  %vm1790_vm14 = vcmp.eq.f32.partialorder %v1789_v17, 8.507059e+37 }
0x1f63   :  { %v2724_v36 = vpop.eup %2723 }
0x1f64   :  { %v1781_v27 = vmul.f32 %v2724_v36, %v1779_v35  ;;  %vm1786_vm11 = vweird.f32 %v2724_v36 }
0x1f65   :  { %vm1787_vm13 = vmor %vm1785_vm12, %vm1786_vm11 }
0x1f66   :  { %v1782_v63 = vsub.f32 1.0, %v1781_v27 }
0x1f68   :  { %v1783_v29 = vmul.f32 %v2724_v36, %v1782_v63 }
0x1f6a   :  { %v1784_v18 = vadd.f32 %v2724_v36, %v1783_v29 }
0x1f6c   :  { %v1788_v20 = vsel %vm1787_vm13, %v2724_v36, %v1784_v18 }
0x1f6d   :  { %v1793_v21 = vsel %vm1790_vm14, %v1792_v19, %v1788_v20 }
0x1f6e   :  { %v1795_v2 = vmul.f32 2.0, %v1793_v21  ;;  %v1797_v32 = vmul.f32 %v1793_v21, %v3267_v40  ;;  %v2797_v40 = vld [vmem:[%s3439_s4] sm:$0xff] }
0x1f70   :  { %v2536_v5 = vadd.f32 -1.0, %v1795_v2 }
0x1f72   :  { %1799 = vrot.lane.b32.xlu2 %v2536_v5, %s2833_s9  ;;  %v2798_v5 = vld [vmem:[%s3436_s1 + $0x28] sm:$0xff] }
0x1fcc   :  { %v1800_v22 = vpop.permute.xlu2 %1799 }
0x1fcd   :  { %v1802_v31 = vmul.f32 %v1800_v22, %v1793_v21  ;;  %v2799_v22 = vld [vmem:[%s3436_s1 + $0x20] sm:$0xff] }
0x1fcf   :  { %1804 = vrot.lane.b32.xlu0 %v1802_v31, %s2834_s10  ;;  %v2800_v31 = vld [vmem:[%s3436_s1 + $0x18] sm:$0xff] }
0x2041   :  { %v1805_v37 = vpop.permute.xlu0 %1804 }
0x2042   :  { %v3333_v25 = vadd.f32 %v1805_v37, %v1797_v32  ;;  %v2801_v32 = vld [vmem:[%s3436_s1 + $0x10] sm:$0xff]  ;;  %v2802_v37 = vld [vmem:[%s3436_s1 + $0x8] sm:$0xff] }
0x2044   :  { %2725 = vtanh.f32 %v3333_v25 }
0x204a   :  { %v2726_v23 = vpop.eup %2725 }
0x204b   :  { %1810 = vrot.lane.b32.xlu1 %v2726_v23, %s2833_s9  ;;  %v2803_v23 = vld [vmem:[%s3436_s1] sm:$0xff] }
0x20bd   :  { %v1811_v38 = vpop.permute.xlu1 %1810 }
0x20be   :  { %v1813_v39 = vmul.f32 %v1811_v38, %v1793_v21 }
0x20c0   :  { %1817 = vrot.lane.b32.xlu2 %v1813_v39, %s2834_s10 }
0x211a   :  { %v1818_v42 = vpop.permute.xlu2 %1817 }
0x211b   :  { %2537 = vmatmul.msk.f32.vlgmr.msra.gmra.mxu1 %vm42_vm10, %v1818_v42 }
0x211c   :  { %2179 = vmatpush.msra.mxu1 %v2796_v43 }
0x211e   :  { %2180 = vmatpush.msra.mxu1 %v2797_v40 }
0x2198   :  { %v1838_v44 = vpop.f32.mrf.mxu1 }
0x2199   :  { %v2538_v45 = vmul.f32 -1.442695, %v1838_v44 }
0x219b   :  { %2727 = vpow2.f32 %v2538_v45 }
0x21a1   :  { %v2728_v30 = vpop.eup %2727 }
0x21a2   :  { %v1844_v46 = vadd.f32 1.0, %v2728_v30 }
0x21a4   :  { %2729 = vrcp.f32 %v1844_v46  ;;  %v1856_v15 = vand.u32 2147483648, %v1844_v46  ;;  %v1854_v24 = vand.u32 2147483647, %v1844_v46  ;;  %vm1850_vm0 = vweird.f32 %v1844_v46 }
0x21a6   :  { %v1857_v55 = vor.u32 1.1754944e-38, %v1856_v15  ;;  %vm1855_vm3 = vcmp.eq.f32.partialorder %v1854_v24, 8.507059e+37 }
0x21aa   :  { %v2730_v47 = vpop.eup %2729 }
0x21ab   :  { %v1846_v14 = vmul.f32 %v2730_v47, %v1844_v46  ;;  %vm1851_vm15 = vweird.f32 %v2730_v47 }
0x21ac   :  { %vm1852_vm1 = vmor %vm1850_vm0, %vm1851_vm15 }
0x21ad   :  { %v1847_v48 = vsub.f32 1.0, %v1846_v14 }
0x21af   :  { %v1848_v16 = vmul.f32 %v2730_v47, %v1847_v48 }
0x21b1   :  { %v1849_v49 = vadd.f32 %v2730_v47, %v1848_v16 }
0x21b3   :  { %v1853_v56 = vsel %vm1852_vm1, %v2730_v47, %v1849_v49 }
0x21b4   :  { %v1858_v57 = vsel %vm1855_vm3, %v1857_v55, %v1853_v56 }
0x21b5   :  { %v1860_v1 = vmul.f32 2.0, %v1858_v57 }
0x21b7   :  { %v1866_v3 = vmul.f32 %v1864_v0, %v1860_v1 }
0x21b9   :  { %2539 = vmatmul.msk.f32.vlgmr.msrb.gmra.mxu0 %vm93_vm5, %v1866_v3 }
0x21ba   :  { %2310 = vmatpush.msrb.mxu0 %v3302_v51 }
0x21bc   :  { %2311 = vmatpush.msrb.mxu0 %v3308_v52 }
0x21be   :  { %2312 = vmatpush.msrb.mxu0 %v3314_v53 }
0x21c0   :  { %2313 = vmatpush.msrb.mxu0 %v3320_v54 }
0x2236   :  { %v1887_v58 = vpop.f32.mrf.mxu0 }
0x2237   :  { %v2540_v59 = vmul.f32 -1.442695, %v1887_v58 }
0x2239   :  { %2731 = vpow2.f32 %v2540_v59 }
0x223f   :  { %v2732_v60 = vpop.eup %2731 }
0x2240   :  { %v1893_v61 = vadd.f32 1.0, %v2732_v60 }
0x2242   :  { %2733 = vrcp.f32 %v1893_v61  ;;  %v1905_v8 = vand.u32 2147483648, %v1893_v61  ;;  %v1903_v41 = vand.u32 2147483647, %v1893_v61  ;;  %vm1899_vm6 = vweird.f32 %v1893_v61 }
0x2244   :  { %v1906_v52 = vor.u32 1.1754944e-38, %v1905_v8  ;;  %vm1904_vm8 = vcmp.eq.f32.partialorder %v1903_v41, 8.507059e+37 }
0x2248   :  { %v2734_v62 = vpop.eup %2733 }
0x2249   :  { %v1895_v4 = vmul.f32 %v2734_v62, %v1893_v61  ;;  %vm1900_vm4 = vweird.f32 %v2734_v62 }
0x224a   :  { %vm1901_vm7 = vmor %vm1899_vm6, %vm1900_vm4 }
0x224b   :  { %v1896_v7 = vsub.f32 1.0, %v1895_v4 }
0x224d   :  { %v1897_v9 = vmul.f32 %v2734_v62, %v1896_v7 }
0x224f   :  { %v1898_v51 = vadd.f32 %v2734_v62, %v1897_v9 }
0x2251   :  { %v1902_v53 = vsel %vm1901_vm7, %v2734_v62, %v1898_v51  ;;  %v3384_v51 = vld [vmem:[%s3437_s2] ss:$0 sm:$0xff] }
0x2252   :  { %v1907_v54 = vsel %vm1904_vm8, %v1906_v52, %v1902_v53 }
0x2253   :  { %v1909_v10 = vmul.f32 2.0, %v1907_v54 }
0x2255   :  { %v1911_v11 = vmul.f32 %v1909_v10, %v1818_v42 }
0x2257   :  { %2541 = vmatmul.msk.f32.vlgmr.msra.gmra.mxu2 %vm42_vm10, %v1911_v11 }
0x2258   :  { %2268 = vmatpush.msra.mxu2 %v2796_v43 }
0x225a   :  { %2269 = vmatpush.msra.mxu2 %v2797_v40 }
0x22da   :  { %v1932_v12 = vpop.f32.mrf.mxu2 }
0x22db   :  { %v2542_v13 = vmul.f32 -1.442695, %v1932_v12 }
0x22dd   :  { %2735 = vpow2.f32 %v2542_v13 }
0x22e3   :  { %v2736_v33 = vpop.eup %2735 }
0x22e4   :  { %v1938_v34 = vadd.f32 1.0, %v2736_v33 }
0x22e6   :  { %2737 = vrcp.f32 %v1938_v34  ;;  %v1950_v63 = vand.u32 2147483648, %v1938_v34  ;;  %v1948_v29 = vand.u32 2147483647, %v1938_v34  ;;  %vm1944_vm12 = vweird.f32 %v1938_v34 }
0x22e8   :  { %v1951_v18 = vor.u32 1.1754944e-38, %v1950_v63  ;;  %vm1949_vm14 = vcmp.eq.f32.partialorder %v1948_v29, 8.507059e+37 }
0x22ec   :  { %v2738_v35 = vpop.eup %2737 }
0x22ed   :  { %v1940_v36 = vmul.f32 %v2738_v35, %v1938_v34  ;;  %vm1945_vm11 = vweird.f32 %v2738_v35 }
0x22ee   :  { %vm1946_vm13 = vmor %vm1944_vm12, %vm1945_vm11 }
0x22ef   :  { %v1941_v27 = vsub.f32 1.0, %v1940_v36 }
0x22f1   :  { %v1942_v28 = vmul.f32 %v2738_v35, %v1941_v27 }
0x22f3   :  { %v1943_v17 = vadd.f32 %v2738_v35, %v1942_v28 }
0x22f5   :  { %v1947_v19 = vsel %vm1946_vm13, %v2738_v35, %v1943_v17 }
0x22f6   :  { %v1952_v20 = vsel %vm1949_vm14, %v1951_v18, %v1947_v19 }
0x22f7   :  { %v1954_v21 = vmul.f32 2.0, %v1952_v20 }
0x22f9   :  { %v1955_v2 = vmul.f32 %v1954_v21, %v1866_v3 }
0x22fb   :  { %2543 = vmatmul.msk.f32.vlgmr.msrb.gmra.mxu1 %vm93_vm5, %v1955_v2 }
0x22fc   :  { %2356 = vmatpush.msrb.mxu1 %v2798_v5 }
0x22fe   :  { %2357 = vmatpush.msrb.mxu1 %v2799_v22 }
0x2300   :  { %2358 = vmatpush.msrb.mxu1 %v2800_v31 }
0x2302   :  { %2359 = vmatpush.msrb.mxu1 %v2801_v32 }
0x2304   :  { %2360 = vmatpush.msrb.mxu1 %v2802_v37 }
0x2306   :  { %2361 = vmatpush.msrb.mxu1 %v2803_v23 }
0x2378   :  { %v1976_v38 = vpop.f32.mrf.mxu1 }
0x2379   :  { %v2544_v39 = vmul.f32 -1.442695, %v1976_v38 }
0x237b   :  { %2739 = vpow2.f32 %v2544_v39 }
0x2381   :  { %v2740_v42 = vpop.eup %2739 }
0x2382   :  { %v1982_v43 = vadd.f32 1.0, %v2740_v42 }
0x2384   :  { %2741 = vrcp.f32 %v1982_v43  ;;  %v1994_v30 = vand.u32 2147483648, %v1982_v43  ;;  %v1992_v47 = vand.u32 2147483647, %v1982_v43  ;;  %vm1988_vm0 = vweird.f32 %v1982_v43 }
0x2386   :  { %v1995_v48 = vor.u32 1.1754944e-38, %v1994_v30  ;;  %vm1993_vm3 = vcmp.eq.f32.partialorder %v1992_v47, 8.507059e+37 }
0x238a   :  { %v2742_v40 = vpop.eup %2741 }
0x238b   :  { %v1984_v44 = vmul.f32 %v2742_v40, %v1982_v43  ;;  %vm1989_vm15 = vweird.f32 %v2742_v40 }
0x238c   :  { %vm1990_vm1 = vmor %vm1988_vm0, %vm1989_vm15 }
0x238d   :  { %v1985_v45 = vsub.f32 1.0, %v1984_v44 }
0x238f   :  { %v1986_v46 = vmul.f32 %v2742_v40, %v1985_v45 }
0x2391   :  { %v1987_v14 = vadd.f32 %v2742_v40, %v1986_v46 }
0x2393   :  { %v1991_v6 = vsel %vm1990_vm1, %v2742_v40, %v1987_v14  ;;  %v2110_v40 = vld [vmem:[%s3435_s0 + $0xf] sm:$0x1]  ;;  %v2109_v14 = vld [vmem:[%s3435_s0 + $0x7] sm:$0x1] }
0x2394   :  { %v1996_v15 = vsel %vm1993_vm3, %v1995_v48, %v1991_v6  ;;  %v2158_v46 = vrot.slane %v2110_v40, 7 }
0x2395   :  { %v1998_v16 = vmul.f32 2.0, %v1996_v15 }
0x2397   :  { %v1999_v24 = vmul.f32 %v1998_v16, %v1911_v11  ;;  %v2159_v16 = vsel %vm89_vm2, %v2158_v46, %v2109_v14 }
0x2399   :  { %2044 = vrot.lane.b32.xlu0 %v1999_v24, %s2832_s17  ;;  %2545 = vmatmul.msk.f32.vlgmr.msrb.gmra.mxu3 %vm42_vm10, %v1999_v24 }
0x240b   :  { %v2045_v8 = vpop.permute.xlu0 %2044 }
0x241c   :  { %v2020_v26 = vpop.f32.mrf.mxu3 }
0x241d   :  { %v2546_v49 = vmul.f32 -1.442695, %v2020_v26 }
0x241f   :  { %2743 = vpow2.f32 %v2546_v49 }
0x2425   :  { %v2744_v50 = vpop.eup %2743 }
0x2426   :  { %v2026_v55 = vadd.f32 1.0, %v2744_v50 }
0x2428   :  { %2745 = vrcp.f32 %v2026_v55  ;;  %v2038_v1 = vand.u32 2147483648, %v2026_v55  ;;  %v2036_v58 = vand.u32 2147483647, %v2026_v55  ;;  %vm2032_vm6 = vweird.f32 %v2026_v55 }
0x242a   :  { %v2039_v60 = vor.u32 1.1754944e-38, %v2038_v1  ;;  %vm2037_vm8 = vcmp.eq.f32.partialorder %v2036_v58, 8.507059e+37 }
0x242e   :  { %v2746_v56 = vpop.eup %2745 }
0x242f   :  { %v2028_v57 = vmul.f32 %v2746_v56, %v2026_v55  ;;  %vm2033_vm4 = vweird.f32 %v2746_v56 }
0x2430   :  { %vm2034_vm7 = vmor %vm2032_vm6, %vm2033_vm4 }
0x2431   :  { %v2029_v0 = vsub.f32 1.0, %v2028_v57 }
0x2433   :  { %v2030_v3 = vmul.f32 %v2746_v56, %v2029_v0 }
0x2435   :  { %v2031_v59 = vadd.f32 %v2746_v56, %v2030_v3 }
0x2437   :  { %v2035_v61 = vsel %vm2034_vm7, %v2746_v56, %v2031_v59 }
0x2438   :  { %v2040_v62 = vsel %vm2037_vm8, %v2039_v60, %v2035_v61 }
0x2439   :  { %v2042_v4 = vmul.f32 2.0, %v2040_v62 }
0x243b   :  { %v2043_v7 = vmul.f32 %v2042_v4, %v1955_v2 }
0x243d   :  { %v2047_v9 = vsel %vm93_vm5, %v2043_v7, %v2045_v8 }
0x243e   :  { %2547 = vmatmul.msk.f32.vlgmr.msra.gmra.mxu0 %vm277_vm9, %v2047_v9 }
0x24bb   :  { %v2068_v41 = vpop.f32.mrf.mxu0 }
0x24bc   :  { %v2069_v52 = vadd.f32 %v3384_v51, %v2068_v41 }
0x24be   :  { %v2548_v53 = vmul.f32 -1.442695, %v2069_v52 }
0x24c0   :  { %2747 = vpow2.f32 %v2548_v53 }
0x24c6   :  { %v2748_v54 = vpop.eup %2747 }
0x24c7   :  { %v2074_v10 = vadd.f32 1.0, %v2748_v54 }
0x24c9   :  { %2749 = vrcp.f32 %v2074_v10  ;;  %v2086_v33 = vand.u32 2147483648, %v2074_v10  ;;  %v2084_v35 = vand.u32 2147483647, %v2074_v10  ;;  %vm2080_vm12 = vweird.f32 %v2074_v10 }
0x24cb   :  { %v2087_v27 = vor.u32 1.1754944e-38, %v2086_v33  ;;  %vm2085_vm14 = vcmp.eq.f32.partialorder %v2084_v35, 8.507059e+37 }
0x24cf   :  { %v2750_v11 = vpop.eup %2749 }
0x24d0   :  { %v2076_v12 = vmul.f32 %v2750_v11, %v2074_v10  ;;  %vm2081_vm11 = vweird.f32 %v2750_v11 }
0x24d1   :  { %vm2082_vm13 = vmor %vm2080_vm12, %vm2081_vm11 }
0x24d2   :  { %v2077_v13 = vsub.f32 1.0, %v2076_v12 }
0x24d4   :  { %v2078_v34 = vmul.f32 %v2750_v11, %v2077_v13 }
0x24d6   :  { %v2079_v36 = vadd.f32 %v2750_v11, %v2078_v34 }
0x24d8   :  { %v2083_v63 = vsel %vm2082_vm13, %v2750_v11, %v2079_v36 }
0x24d9   :  { %v2088_v28 = vsel %vm2085_vm14, %v2087_v27, %v2083_v63 }
0x24da   :  { %v2090_v29 = vmul.f32 2.0, %v2088_v28  ;;  %v2092_v20 = vmul.f32 %v2088_v28, %v3333_v25 }
0x24dc   :  { %v2549_v17 = vadd.f32 -1.0, %v2090_v29 }
0x24de   :  { %2094 = vrot.lane.b32.xlu1 %v2549_v17, %s2833_s9 }
0x2550   :  { %v2095_v18 = vpop.permute.xlu1 %2094 }
0x2551   :  { %v2097_v19 = vmul.f32 %v2095_v18, %v2088_v28 }
0x2553   :  { %2099 = vrot.lane.b32.xlu2 %v2097_v19, %s2834_s10 }
0x25ad   :  { %v2100_v21 = vpop.permute.xlu2 %2099 }
0x25ae   :  { %v3390_v2 = vadd.f32 %v2100_v21, %v2092_v20 }
0x25b0   :  { %2751 = vtanh.f32 %v3390_v2 }
0x25b6   :  { %v2752_v5 = vpop.eup %2751 }
0x25b7   :  { %2105 = vrot.lane.b32.xlu0 %v2752_v5, %s2833_s9 }
0x2629   :  { %v2106_v22 = vpop.permute.xlu0 %2105 }
0x262a   :  { %v2108_v31 = vmul.f32 %v2106_v22, %v2088_v28 }
0x262c   :  { %2112 = vrot.lane.b32.xlu1 %v2108_v31, %s2834_s10 }
0x269e   :  { %v2113_v32 = vpop.permute.xlu1 %2112 }
0x269f   :  { %2550 = vmatmul.msk.f32.vlgmr.msrb.gmra.mxu2 %vm42_vm10, %v2113_v32 }
0x2722   :  { %v2133_v37 = vpop.f32.mrf.mxu2 }
0x2723   :  { %v2551_v23 = vmul.f32 -1.442695, %v2133_v37 }
0x2725   :  { %2753 = vpow2.f32 %v2551_v23 }
0x272b   :  { %v2754_v38 = vpop.eup %2753 }
0x272c   :  { %v2139_v25 = vadd.f32 1.0, %v2754_v38 }
0x272e   :  { %2755 = vrcp.f32 %v2139_v25  ;;  %v2151_v44 = vand.u32 2147483648, %v2139_v25  ;;  %v2149_v30 = vand.u32 2147483647, %v2139_v25  ;;  %vm2145_vm0 = vweird.f32 %v2139_v25 }
0x2730   :  { %v2152_v48 = vor.u32 1.1754944e-38, %v2151_v44  ;;  %vm2150_vm3 = vcmp.eq.f32.partialorder %v2149_v30, 8.507059e+37 }
0x2734   :  { %v2756_v39 = vpop.eup %2755 }
0x2735   :  { %v2141_v42 = vmul.f32 %v2756_v39, %v2139_v25  ;;  %vm2146_vm15 = vweird.f32 %v2756_v39 }
0x2736   :  { %vm2147_vm1 = vmor %vm2145_vm0, %vm2146_vm15 }
0x2737   :  { %v2142_v43 = vsub.f32 1.0, %v2141_v42 }
0x2739   :  { %v2143_v45 = vmul.f32 %v2756_v39, %v2142_v43 }
0x273b   :  { %v2144_v47 = vadd.f32 %v2756_v39, %v2143_v45 }
0x273d   :  { %v2148_v6 = vsel %vm2147_vm1, %v2756_v39, %v2144_v47 }
0x273e   :  { %v2153_v15 = vsel %vm2150_vm3, %v2152_v48, %v2148_v6 }
0x273f   :  { %v2155_v24 = vmul.f32 2.0, %v2153_v15 }
0x2741   :  { %v2161_v26 = vmul.f32 %v2159_v16, %v2155_v24 }
0x2743   :  { %2552 = vmatmul.msk.f32.vlgmr.msra.gmra.mxu1 %vm93_vm5, %v2161_v26 }
0x27c0   :  { %v2182_v49 = vpop.f32.mrf.mxu1 }
0x27c1   :  { %v2553_v50 = vmul.f32 -1.442695, %v2182_v49 }
0x27c3   :  { %2757 = vpow2.f32 %v2553_v50 }
0x27c9   :  { %v2758_v55 = vpop.eup %2757 }
0x27ca   :  { %v2188_v56 = vadd.f32 1.0, %v2758_v55 }
0x27cc   :  { %2759 = vrcp.f32 %v2188_v56  ;;  %v2200_v3 = vand.u32 2147483648, %v2188_v56  ;;  %v2198_v59 = vand.u32 2147483647, %v2188_v56  ;;  %vm2194_vm6 = vweird.f32 %v2188_v56 }
0x27ce   :  { %v2201_v61 = vor.u32 1.1754944e-38, %v2200_v3  ;;  %vm2199_vm7 = vcmp.eq.f32.partialorder %v2198_v59, 8.507059e+37 }
0x27d2   :  { %v2760_v57 = vpop.eup %2759 }
0x27d3   :  { %v2190_v0 = vmul.f32 %v2760_v57, %v2188_v56  ;;  %vm2195_vm4 = vweird.f32 %v2760_v57 }
0x27d4   :  { %vm2196_vm2 = vmor %vm2194_vm6, %vm2195_vm4 }
0x27d5   :  { %v2191_v1 = vsub.f32 1.0, %v2190_v0 }
0x27d7   :  { %v2192_v58 = vmul.f32 %v2760_v57, %v2191_v1 }
0x27d9   :  { %v2193_v60 = vadd.f32 %v2760_v57, %v2192_v58 }
0x27db   :  { %v2197_v62 = vsel %vm2196_vm2, %v2760_v57, %v2193_v60 }
0x27dc   :  { %v2202_v4 = vsel %vm2199_vm7, %v2201_v61, %v2197_v62 }
0x27dd   :  { %v2204_v7 = vmul.f32 2.0, %v2202_v4 }
0x27df   :  { %v2206_v8 = vmul.f32 %v2204_v7, %v2113_v32 }
0x27e1   :  { %2554 = vmatmul.msk.f32.vlgmr.msra.gmra.mxu3 %vm42_vm10, %v2206_v8 }
0x2864   :  { %v2227_v9 = vpop.f32.mrf.mxu3 }
0x2865   :  { %v2555_v41 = vmul.f32 -1.442695, %v2227_v9 }
0x2867   :  { %2761 = vpow2.f32 %v2555_v41 }
0x286d   :  { %v2762_v52 = vpop.eup %2761 }
0x286e   :  { %v2233_v53 = vadd.f32 1.0, %v2762_v52 }
0x2870   :  { %2763 = vrcp.f32 %v2233_v53  ;;  %v2245_v12 = vand.u32 2147483648, %v2233_v53  ;;  %v2243_v33 = vand.u32 2147483647, %v2233_v53  ;;  %vm2239_vm11 = vweird.f32 %v2233_v53 }
0x2872   :  { %v2246_v35 = vor.u32 1.1754944e-38, %v2245_v12  ;;  %vm2244_vm13 = vcmp.eq.f32.partialorder %v2243_v33, 8.507059e+37 }
0x2876   :  { %v2764_v54 = vpop.eup %2763 }
0x2877   :  { %v2235_v10 = vmul.f32 %v2764_v54, %v2233_v53  ;;  %vm2240_vm8 = vweird.f32 %v2764_v54 }
0x2878   :  { %vm2241_vm12 = vmor %vm2239_vm11, %vm2240_vm8 }
0x2879   :  { %v2236_v11 = vsub.f32 1.0, %v2235_v10 }
0x287b   :  { %v2237_v13 = vmul.f32 %v2764_v54, %v2236_v11 }
0x287d   :  { %v2238_v34 = vadd.f32 %v2764_v54, %v2237_v13 }
0x287f   :  { %v2242_v36 = vsel %vm2241_vm12, %v2764_v54, %v2238_v34  ;;  %v2407_v34 = vld [vmem:[%s3440_s5 + $0x18] sm:$0xff]  ;;  %vm2442_vm12 = vcmask 122880  }
0x2880   :  { %v2247_v27 = vsel %vm2244_vm13, %v2246_v35, %v2242_v36  ;;  %v2406_v35 = vld [vmem:[%s3440_s5 + $0x10] sm:$0xff]  ;;  %2427 = vmatpush.msrb.mxu3 %v2407_v34  ;;  %v2405_v36 = vld [vmem:[%s3440_s5 + $0x8] sm:$0xff] }
0x2881   :  { %v2249_v63 = vmul.f32 2.0, %v2247_v27 }
0x2882   :  { %2428 = vmatpush.msrb.mxu3 %v2406_v35 }
0x2883   :  { %v2250_v28 = vmul.f32 %v2249_v63, %v2161_v26 }
0x2884   :  { %2429 = vmatpush.msrb.mxu3 %v2405_v36 }
0x2885   :  { %2556 = vmatmul.msk.f32.vlgmr.msra.gmra.mxu2 %vm93_vm5, %v2250_v28 }
0x2908   :  { %v2271_v29 = vpop.f32.mrf.mxu2 }
0x2909   :  { %v2557_v17 = vmul.f32 -1.442695, %v2271_v29 }
0x290b   :  { %2765 = vpow2.f32 %v2557_v17  ;;  %v2435_v17 = vlaneseq }
0x2911   :  { %v2766_v18 = vpop.eup %2765 }
0x2912   :  { %v2277_v19 = vadd.f32 1.0, %v2766_v18  ;;  %v2408_v18 = vld [vmem:[%s3441_s6] sm:$0x1] }
0x2914   :  { %2767 = vrcp.f32 %v2277_v19  ;;  %v2289_v22 = vand.u32 2147483648, %v2277_v19  ;;  %v2287_v32 = vand.u32 2147483647, %v2277_v19  ;;  %vm2283_vm15 = vweird.f32 %v2277_v19 }
0x2916   :  { %v2290_v23 = vor.u32 1.1754944e-38, %v2289_v22  ;;  %vm2288_vm1 = vcmp.eq.f32.partialorder %v2287_v32, 8.507059e+37 }
0x291a   :  { %v2768_v20 = vpop.eup %2767 }
0x291b   :  { %v2279_v21 = vmul.f32 %v2768_v20, %v2277_v19  ;;  %vm2284_vm14 = vweird.f32 %v2768_v20  ;;  %v2436_v19 = vand.u32 127, %v2435_v17 }
0x291c   :  { %vm2285_vm0 = vmor %vm2283_vm15, %vm2284_vm14 }
0x291d   :  { %v2280_v5 = vsub.f32 1.0, %v2279_v21  ;;  %vm2437_vm11 = vcmp.eq.s32.totalorder %v2436_v19, 0 }
0x291f   :  { %v2281_v31 = vmul.f32 %v2768_v20, %v2280_v5 }
0x2921   :  { %v2282_v37 = vadd.f32 %v2768_v20, %v2281_v31 }
0x2923   :  { %v2286_v38 = vsel %vm2285_vm0, %v2768_v20, %v2282_v37 }
0x2924   :  { %v2291_v25 = vsel %vm2288_vm1, %v2290_v23, %v2286_v38 }
0x2925   :  { %v2293_v39 = vmul.f32 2.0, %v2291_v25 }
0x2927   :  { %v2294_v42 = vmul.f32 %v2293_v39, %v2206_v8 }
0x2929   :  { %2339 = vrot.lane.b32.xlu2 %v2294_v42, %s2832_s17  ;;  %2558 = vmatmul.msk.f32.vlgmr.msrb.gmra.mxu0 %vm42_vm10, %v2294_v42 }
0x2983   :  { %v2340_v55 = vpop.permute.xlu2 %2339 }
0x29a6   :  { %v2315_v43 = vpop.f32.mrf.mxu0 }
0x29a7   :  { %v2559_v40 = vmul.f32 -1.442695, %v2315_v43 }
0x29a9   :  { %2769 = vpow2.f32 %v2559_v40 }
0x29af   :  { %v2770_v44 = vpop.eup %2769 }
0x29b0   :  { %v2321_v45 = vadd.f32 1.0, %v2770_v44 }
0x29b2   :  { %2771 = vrcp.f32 %v2321_v45  ;;  %v2333_v14 = vand.u32 2147483648, %v2321_v45  ;;  %v2331_v6 = vand.u32 2147483647, %v2321_v45  ;;  %vm2327_vm4 = vweird.f32 %v2321_v45 }
0x29b4   :  { %v2334_v16 = vor.u32 1.1754944e-38, %v2333_v14  ;;  %vm2332_vm2 = vcmp.eq.f32.partialorder %v2331_v6, 8.507059e+37 }
0x29b8   :  { %v2772_v30 = vpop.eup %2771 }
0x29b9   :  { %v2323_v46 = vmul.f32 %v2772_v30, %v2321_v45  ;;  %vm2328_vm3 = vweird.f32 %v2772_v30 }
0x29ba   :  { %vm2329_vm6 = vmor %vm2327_vm4, %vm2328_vm3 }
0x29bb   :  { %v2324_v47 = vsub.f32 1.0, %v2323_v46 }
0x29bd   :  { %v2325_v48 = vmul.f32 %v2772_v30, %v2324_v47 }
0x29bf   :  { %v2326_v15 = vadd.f32 %v2772_v30, %v2325_v48 }
0x29c1   :  { %v2330_v24 = vsel %vm2329_vm6, %v2772_v30, %v2326_v15 }
0x29c2   :  { %v2335_v26 = vsel %vm2332_vm2, %v2334_v16, %v2330_v24 }
0x29c3   :  { %v2337_v49 = vmul.f32 2.0, %v2335_v26 }
0x29c5   :  { %v2338_v50 = vmul.f32 %v2337_v49, %v2250_v28 }
0x29c7   :  { %v2342_v56 = vsel %vm93_vm5, %v2338_v50, %v2340_v55 }
0x29c8   :  { %2560 = vmatmul.msk.f32.vlgmr.msrb.gmra.mxu1 %vm277_vm9, %v2342_v56 }
0x2a45   :  { %v2363_v57 = vpop.f32.mrf.mxu1 }
0x2a46   :  { %v2364_v0 = vadd.f32 %v3384_v51, %v2363_v57 }
0x2a48   :  { %v2561_v1 = vmul.f32 -1.442695, %v2364_v0 }
0x2a4a   :  { %2773 = vpow2.f32 %v2561_v1 }
0x2a50   :  { %v2774_v3 = vpop.eup %2773 }
0x2a51   :  { %v2369_v58 = vadd.f32 1.0, %v2774_v3 }
0x2a53   :  { %2775 = vrcp.f32 %v2369_v58  ;;  %v2381_v62 = vand.u32 2147483648, %v2369_v58  ;;  %v2379_v7 = vand.u32 2147483647, %v2369_v58  ;;  %vm2375_vm8 = vweird.f32 %v2369_v58 }
0x2a55   :  { %v2382_v9 = vor.u32 1.1754944e-38, %v2381_v62  ;;  %vm2380_vm9 = vcmp.eq.f32.partialorder %v2379_v7, 8.507059e+37 }
0x2a59   :  { %v2776_v59 = vpop.eup %2775 }
0x2a5a   :  { %v2371_v60 = vmul.f32 %v2776_v59, %v2369_v58  ;;  %vm2376_vm7 = vweird.f32 %v2776_v59 }
0x2a5b   :  { %vm2377_vm5 = vmor %vm2375_vm8, %vm2376_vm7 }
0x2a5c   :  { %v2372_v61 = vsub.f32 1.0, %v2371_v60 }
0x2a5e   :  { %v2373_v4 = vmul.f32 %v2776_v59, %v2372_v61 }
0x2a60   :  { %v2374_v8 = vadd.f32 %v2776_v59, %v2373_v4 }
0x2a62   :  { %v2378_v41 = vsel %vm2377_vm5, %v2776_v59, %v2374_v8 }
0x2a63   :  { %v2383_v52 = vsel %vm2380_vm9, %v2382_v9, %v2378_v41 }
0x2a64   :  { %v2385_v51 = vmul.f32 2.0, %v2383_v52  ;;  %v2387_v11 = vmul.f32 %v2383_v52, %v3390_v2  ;;  %v2404_v2 = vld [vmem:[%s3440_s5] sm:$0xff]  ;;  %s2449_s5 = sshll.u32 %s2835_s12, 4  ;;  %s2450_s5 = int_to_ptr.vmem [resolvable:$true] %s2449_s5 }
0x2a65   :  { %2430 = vmatpush.msrb.mxu3 %v2404_v2 }
0x2a66   :  { %v2562_v53 = vadd.f32 -1.0, %v2385_v51 }
0x2a68   :  { %2389 = vrot.lane.b32.xlu0 %v2562_v53, %s2833_s9 }
0x2ada   :  { %v2390_v54 = vpop.permute.xlu0 %2389 }
0x2adb   :  { %v2392_v10 = vmul.f32 %v2390_v54, %v2383_v52 }
0x2add   :  { %2394 = vrot.lane.b32.xlu1 %v2392_v10, %s2834_s10 }
0x2b4f   :  { %v2395_v12 = vpop.permute.xlu1 %2394 }
0x2b50   :  { %v2397_v13 = vadd.f32 %v2395_v12, %v2387_v11 }
0x2b52   :  { %2777 = vtanh.f32 %v2397_v13 }
0x2b58   :  { %v2778_v33 = vpop.eup %2777 }
0x2b59   :  { %2400 = vrot.lane.b32.xlu2 %v2778_v33, %s2833_s9 }
0x2bb3   :  { %v2401_v27 = vpop.permute.xlu2 %2400 }
0x2bb4   :  { %v2403_v63 = vmul.f32 %v2401_v27, %v2383_v52 }
0x2bb6   :  { %v2410_v28 = vrot.slane %v2403_v63, 1 }
0x2bb8   :  { %2411 = vrot.lane.b32.xlu0 %v2410_v28, %s2834_s10 }
0x2c2a   :  { %v2412_v29 = vpop.permute.xlu0 %2411 }
0x2c2b   :  { %2563 = vmatmul.msk.f32.vlgmr.msrb.gmra.mxu3 %vm42_vm10, %v2412_v29 }
0x2cae   :  { %v2432_v20 = vpop.f32.mrf.mxu3 }
0x2caf   :  { %v2433_v21 = vadd.f32 %v2432_v20, %v2408_v18 }
0x2cb1   :  { %v2438_v5 = vmax.f32 %v2433_v21, 0.0  ;;  %v2564_v22 = vclamps-f32 %v2433_v21, 10.0 }
0x2cb3   :  { %v2441_v31 = vsel %vm2437_vm11, %v2438_v5, %v2564_v22 }
0x2cb4   :  { %2443 = vst.msk [vmem:[#allocation2] sm:$0x1] %vm2442_vm12, %v2441_v31 }
0x2cb5   :  { %2454 = dma.vmem_to_hbm [thread:$0]  %s2450_s5, 16, %s2452_s15, [#allocation3]  }
0x2cb6   :  { %2829 = dma.done.wait [#allocation3], 16  }
0x2cb7   :  { %2830 = vsyncadd [#allocation3], 4294967280 }
0x2cb8   :  { %2459 = vsyncpa [#allocation3], 1 }

</bundles_post_ra>
